<compile_context>
chip_gen: v7x
topology: tpu7x:2x2x1
jax: 0.10.0
libtpu: 0.0.40
codegen_flags: <defaults>
</compile_context>

<pallas_src>
import functools

import numpy as np
import jax
import jax.numpy as jnp
from jax.experimental import pallas as pl
from jax.experimental.pallas import tpu as pltpu


_COMPUTE_DTYPE = jnp.bfloat16          # MXU operand dtype (accumulation stays f32)
_VMEM_LIMIT = 32 * 1024 * 1024         # safe scoped-VMEM limit on v5e/v6e/v7x


def _round_up(x, m):
    return ((x + m - 1) // m) * m


def _pick_block(T, max_block=32):
    """Largest divisor of T that is <= max_block (timesteps per grid step)."""
    for k in range(min(T, max_block), 0, -1):
        if T % k == 0:
            return k
    return 1


# ----------------------------------------------------------------------------
# Pallas kernels
# ----------------------------------------------------------------------------
def _make_proj_kernel(ndir, G):
    """y = x @ W_in + b_in for all rows of a tile, split per direction. G = 3*Hp."""
    def kernel(x_ref, w_ref, b_ref, *o_refs):
        x = x_ref[...].astype(w_ref.dtype)                       # bf16 MXU operands
        y = jnp.dot(x, w_ref[...], preferred_element_type=jnp.float32) + b_ref[...]
        for d in range(ndir):
            o_refs[d][...] = y[:, d * G:(d + 1) * G]             # 128-aligned lane slices
    return kernel


def _make_gru_kernel(K, Hp, ndir):
    """K fused-direction GRU timesteps per grid step; hidden carried in VMEM scratch."""
    def kernel(*refs):
        proj_refs = refs[:ndir]            # each (K, Bs, 3*Hp); bwd proj is block-time-reversed
        whh_ref, bhh_ref, out_ref, h_scr = refs[ndir:]
        s = pl.program_id(0)

        @pl.when(s == 0)
        def _():
            h_scr[...] = jnp.zeros_like(h_scr)

        cdt = whh_ref.dtype

        def step(j, h):                    # h: (Bs, ndir*Hp) f32 carry
            # one fused hidden matmul for both directions (block-diagonal W_hh)
            gh = jnp.dot(h.astype(cdt), whh_ref[...],
                         preferred_element_type=jnp.float32) + bhh_ref[...]
            hs = []
            for d in range(ndir):
                idx = j if d == 0 else (K - 1 - j)    # bwd direction runs reversed time
                p = proj_refs[d][idx]                 # (Bs, 3*Hp): x @ W_ih + b_ih (precomputed)
                g = gh[:, d * 3 * Hp:(d + 1) * 3 * Hp]
                h_d = h[:, d * Hp:(d + 1) * Hp]
                r = jax.nn.sigmoid(p[:, 0:Hp] + g[:, 0:Hp])
                z = jax.nn.sigmoid(p[:, Hp:2 * Hp] + g[:, Hp:2 * Hp])
                n = jnp.tanh(p[:, 2 * Hp:3 * Hp] + r * g[:, 2 * Hp:3 * Hp])
                hs.append((1.0 - z) * n + z * h_d)
            h_new = hs[0] if ndir == 1 else jnp.concatenate(hs, axis=-1)
            out_ref[j] = h_new                        # lane-dense (Bs, ndir*Hp) store
            return h_new

        h_last = jax.lax.fori_loop(0, K, step, h_scr[...], unroll=True)
        h_scr[...] = h_last

    return kernel


def _make_epilogue_kernel(K, Hp, ndir, eps, normalize):
    """Time-aligned (fwd+bwd)/2 + l2norm, K timesteps per grid step."""
    def kernel(*refs):
        if ndir == 2:
            hf_ref, hb_ref, o_ref = refs
        else:
            hf_ref, o_ref = refs

        def step(j, carry):
            h = hf_ref[j][:, 0:Hp]
            if ndir == 2:
                hb = hb_ref[K - 1 - j][:, Hp:2 * Hp]  # bwd hidden at the same original time
                h = (h + hb) * 0.5
            if normalize:
                # padded lanes are exactly zero, so summing over Hp == summing over H
                norm = jnp.sqrt(jnp.sum(h * h, axis=-1, keepdims=True)) + eps
                h = h / norm
            o_ref[j] = h
            return carry

        jax.lax.fori_loop(0, K, step, 0, unroll=True)

    return kernel


# ----------------------------------------------------------------------------
# pallas_call wrappers
# ----------------------------------------------------------------------------
def _input_projection(x_flat, w_in, b_in, *, ndir, Hp):
    """x_flat: (T*Bs, Din) -> ndir arrays of shape (T*Bs, 3*Hp) = x @ W_ih + b_ih."""
    M, Din = x_flat.shape
    N = w_in.shape[1]
    G = 3 * Hp
    TM = M if M <= 512 else 512
    grid = (pl.cdiv(M, TM),)

    out_spec = pl.BlockSpec((TM, G), lambda i: (i, 0))
    out_sds = jax.ShapeDtypeStruct((M, G), jnp.float32)
    if ndir == 2:
        out_shape = (out_sds, out_sds)
        out_specs = (out_spec, out_spec)
    else:
        out_shape = out_sds
        out_specs = out_spec

    res = pl.pallas_call(
        _make_proj_kernel(ndir, G),
        out_shape=out_shape,
        grid_spec=pltpu.PrefetchScalarGridSpec(
            num_scalar_prefetch=0,
            grid=grid,
            in_specs=[pl.BlockSpec((TM, Din), lambda i: (i, 0)),
                      pl.BlockSpec((Din, N), lambda i: (0, 0)),   # resident weight
                      pl.BlockSpec((1, N), lambda i: (0, 0))],
            out_specs=out_specs),
        compiler_params=pltpu.CompilerParams(
            dimension_semantics=("parallel",),
            vmem_limit_bytes=_VMEM_LIMIT),
    )(x_flat, w_in, b_in)
    return res if ndir == 2 else (res,)


def _gru_recurrence(projs, w_hh, b_hh, *, T, Bs, Hp, ndir, K):
    """Fused-direction GRU over time. projs: ndir arrays (T, Bs, 3*Hp). Returns (T, Bs, ndir*Hp)."""
    DH = ndir * Hp
    G = 3 * Hp
    Tb = T // K

    in_specs = [pl.BlockSpec((K, Bs, G), lambda s: (s, 0, 0))]
    if ndir == 2:
        # backward direction streams its (precomputed) input projection block-reversed in time
        in_specs.append(pl.BlockSpec((K, Bs, G), lambda s: (Tb - 1 - s, 0, 0)))
    in_specs += [pl.BlockSpec((DH, 3 * DH), lambda s: (0, 0)),
                 pl.BlockSpec((1, 3 * DH), lambda s: (0, 0))]

    return pl.pallas_call(
        _make_gru_kernel(K, Hp, ndir),
        out_shape=jax.ShapeDtypeStruct((T, Bs, DH), jnp.float32),
        grid_spec=pltpu.PrefetchScalarGridSpec(
            num_scalar_prefetch=0,
            grid=(Tb,),
            in_specs=in_specs,
            out_specs=pl.BlockSpec((K, Bs, DH), lambda s: (s, 0, 0)),
            scratch_shapes=[pltpu.VMEM((Bs, DH), jnp.float32)]),   # hidden carry
        compiler_params=pltpu.CompilerParams(
            dimension_semantics=("arbitrary",),
            vmem_limit_bytes=_VMEM_LIMIT),
    )(*projs, w_hh, b_hh)


def _avg_norm_epilogue(h_all, *, T, Bs, Hp, ndir, eps, normalize, K):
    """Fused (fwd+bwd)/2 + l2norm reading the recurrence output directly."""
    DH = ndir * Hp
    Tb = T // K

    in_specs = [pl.BlockSpec((K, Bs, DH), lambda s: (s, 0, 0))]
    operands = [h_all]
    if ndir == 2:
        in_specs.append(pl.BlockSpec((K, Bs, DH), lambda s: (Tb - 1 - s, 0, 0)))
        operands.append(h_all)

    return pl.pallas_call(
        _make_epilogue_kernel(K, Hp, ndir, eps, normalize),
        out_shape=jax.ShapeDtypeStruct((T, Bs, Hp), jnp.float32),
        grid_spec=pltpu.PrefetchScalarGridSpec(
            num_scalar_prefetch=0,
            grid=(Tb,),
            in_specs=in_specs,
            out_specs=pl.BlockSpec((K, Bs, Hp), lambda s: (s, 0, 0))),
        compiler_params=pltpu.CompilerParams(
            dimension_semantics=("parallel",),
            vmem_limit_bytes=_VMEM_LIMIT),
    )(*operands)


# ----------------------------------------------------------------------------
# End-to-end encode
# ----------------------------------------------------------------------------
def _encode(embed_table, layers_dev, tokens, *, H, Hp, ndir, eps, normalize):
    """tokens: (Bs, T) int32 -> (Bs, T, H) f32 text embeddings."""
    Bs, T = tokens.shape
    K = _pick_block(T)

    # TODO(synk): embedding lookup (gather) kept in plain JAX glue (tiny table); ids are
    # transposed (cheap int op) so the gather lands directly in time-major row order.
    flat_ids = jnp.transpose(tokens, (1, 0)).reshape(-1)
    x_flat = jnp.take(embed_table, flat_ids, axis=0).astype(jnp.float32)   # (T*Bs, D)

    h_all = None
    for li, lyr in enumerate(layers_dev):
        projs = _input_projection(x_flat, lyr["w_in"], lyr["b_in"], ndir=ndir, Hp=Hp)
        projs = [p.reshape(T, Bs, 3 * Hp) for p in projs]                  # contiguous reshape
        h_all = _gru_recurrence(projs, lyr["w_hh"], lyr["b_hh"],
                                T=T, Bs=Bs, Hp=Hp, ndir=ndir, K=K)
        if li + 1 < len(layers_dev):
            # TODO(synk): inter-layer time re-alignment of the bwd direction kept in JAX glue
            # (only runs for num_layers > 1).
            hf = h_all[:, :, :H]
            if ndir == 2:
                hb = jnp.flip(h_all, axis=0)[:, :, Hp:Hp + H]
                x_next = jnp.concatenate([hf, hb], axis=-1)
            else:
                x_next = hf
            x_flat = x_next.reshape(T * Bs, ndir * H)

    cap_tm = _avg_norm_epilogue(h_all, T=T, Bs=Bs, Hp=Hp, ndir=ndir,
                                eps=eps, normalize=normalize, K=K)         # (T, Bs, Hp)
    # final batch-first layout + un-pad (tiny tensor; kept in glue)
    return jnp.transpose(cap_tm[:, :, :H], (1, 0, 2))                      # (Bs, T, H)


# ----------------------------------------------------------------------------
# Parameters / model
# ----------------------------------------------------------------------------
def init_params(key, vocab_size, word_dim, embed_size, num_layers, bi_gru):
    n_dir = 2 if bi_gru else 1
    params = {}
    key, k_embed = jax.random.split(key)
    params["embed"] = jax.random.uniform(
        k_embed, (vocab_size, word_dim), jnp.float32, -0.1, 0.1)

    bound = 1.0 / np.sqrt(embed_size)
    layers = []
    for layer in range(num_layers):
        in_dim = word_dim if layer == 0 else embed_size * n_dir
        dirs = []
        for _d in range(n_dir):
            key, k1, k2, k3, k4 = jax.random.split(key, 5)
            w_ih = jax.random.uniform(k1, (in_dim, 3 * embed_size), jnp.float32, -bound, bound)
            w_hh = jax.random.uniform(k2, (embed_size, 3 * embed_size), jnp.float32, -bound, bound)
            b_ih = jax.random.uniform(k3, (1, 3 * embed_size), jnp.float32, -bound, bound)
            b_hh = jax.random.uniform(k4, (1, 3 * embed_size), jnp.float32, -bound, bound)
            dirs.append((w_ih, w_hh, b_ih, b_hh))
        layers.append(dirs)
    params["gru"] = layers
    return params


def _assemble_layer(dirs, in_dim, H, Hp, ndir, cdt):
    """Lane-padded, direction-fused, bf16 device weights from canonical params.

    Column layout (shared by W_in / W_hh / biases): per direction d a 3*Hp slab [r | z | n],
    each gate padded from H to Hp with zeros.  W_hh rows are [h_fwd(Hp) ; h_bwd(Hp)] with the
    cross-direction blocks zero, so one matmul computes both directions.  Padded hidden lanes
    stay exactly zero through the recurrence.
    """
    G = 3 * Hp
    w_in = jnp.zeros((in_dim, ndir * G), jnp.float32)
    b_in = jnp.zeros((1, ndir * G), jnp.float32)
    w_hh = jnp.zeros((ndir * Hp, ndir * G), jnp.float32)
    b_hh = jnp.zeros((1, ndir * G), jnp.float32)
    for d, (wi, wh, bi, bh) in enumerate(dirs):
        for g in range(3):
            c = d * G + g * Hp
            w_in = w_in.at[:, c:c + H].set(wi[:, g * H:(g + 1) * H])
            b_in = b_in.at[0, c:c + H].set(bi[0, g * H:(g + 1) * H])
            w_hh = w_hh.at[d * Hp:d * Hp + H, c:c + H].set(wh[:, g * H:(g + 1) * H])
            b_hh = b_hh.at[0, c:c + H].set(bh[0, g * H:(g + 1) * H])
    return dict(w_in=w_in.astype(cdt), b_in=b_in,
                w_hh=w_hh.astype(cdt), b_hh=b_hh)


class TextRepresentationPallas:
    """JAX/Pallas re-implementation of TextRepresentation.forward (spec-matching signature)."""

    def __init__(self, args, key):
        self.args = args
        self.H = args["embed_size"]
        self.Hp = _round_up(self.H, 128)       # lane-padded hidden width
        self.ndir = 2 if args["bi_gru"] else 1
        self.normalize = not args.get("no_txtnorm", False)

        self.params = init_params(
            key, args["vocab_size"], args["word_dim"], args["embed_size"],
            args["num_layers"], args["bi_gru"])

        self.layers_dev = []
        for li, dirs in enumerate(self.params["gru"]):
            in_dim = args["word_dim"] if li == 0 else self.H * self.ndir
            self.layers_dev.append(
                _assemble_layer(dirs, in_dim, self.H, self.Hp, self.ndir, _COMPUTE_DTYPE))

        self._encode = jax.jit(functools.partial(
            _encode, H=self.H, Hp=self.Hp, ndir=self.ndir,
            eps=1e-8, normalize=self.normalize))

    def encode_text(self, tokens):
        return self._encode(self.params["embed"], self.layers_dev, tokens)

    def __call__(self, x):
        """forward(x): x (B, T) int tokens -> (cap_emb (B, T, H), len (B,))."""
        out = self.encode_text(x)
        # torch uses int64; JAX without x64 -> int32
        length = jnp.full((out.shape[0],), 128, dtype=jnp.int32)
        return out, length


# ----------------------------------------------------------------------------
# Pure-JAX reference (mirrors the bf16 operand casts of the kernels)
# ----------------------------------------------------------------------------
def _ref_gru_dir(x_tbd, w_ih, w_hh, b_ih, b_hh, reverse, cdt):
    T, B, D = x_tbd.shape
    H = w_hh.shape[0]
    xs = x_tbd[::-1] if reverse else x_tbd
    wih = w_ih.astype(cdt)
    whh = w_hh.astype(cdt)

    def step(h, x_t):
        gx = jnp.dot(x_t.astype(cdt), wih, preferred_element_type=jnp.float32) + b_ih
        gh = jnp.dot(h.astype(cdt), whh, preferred_element_type=jnp.float32) + b_hh
        r = jax.nn.sigmoid(gx[:, :H] + gh[:, :H])
        z = jax.nn.sigmoid(gx[:, H:2 * H] + gh[:, H:2 * H])
        n = jnp.tanh(gx[:, 2 * H:] + r * gh[:, 2 * H:])
        h_new = (1.0 - z) * n + z * h
        return h_new, h_new

    _, hs = jax.lax.scan(step, jnp.zeros((B, H), jnp.float32), xs)
    return hs[::-1] if reverse else hs


def _ref_encode_text(tokens, params, bi, H, normalize, cdt):
    emb = jnp.take(params["embed"], tokens, axis=0)
    x = jnp.transpose(emb, (1, 0, 2)).astype(jnp.float32)
    for dirs in params["gru"]:
        hf = _ref_gru_dir(x, *dirs[0], reverse=False, cdt=cdt)
        if bi:
            hb = _ref_gru_dir(x, *dirs[1], reverse=True, cdt=cdt)
            x = jnp.concatenate([hf, hb], axis=-1)
        else:
            x = hf
    if bi:
        x = (x[..., :H] + x[..., H:]) * 0.5
    if normalize:
        norm = jnp.sqrt(jnp.sum(x * x, axis=-1, keepdims=True)) + 1e-8
        x = x / norm
    return jnp.transpose(x, (1, 0, 2))


# ----------------------------------------------------------------------------
if __name__ == "__main__":
    args = dict(
        max_seq_length=8,
        vocab_size=50,
        word_dim=32,
        embed_size=32,
        num_layers=1,
        bi_gru=True,
        no_txtnorm=False,
    )
    B, T = 2, 8

    key = jax.random.PRNGKey(0)
    key, k_params, k_tok = jax.random.split(key, 3)

    model = TextRepresentationPallas(args, k_params)

    tokens = jax.random.randint(k_tok, (B, T), 0, args["vocab_size"], dtype=jnp.int32)

    cap_emb, length = model(tokens)
    jax.block_until_ready((cap_emb, length))

    # correctness check vs. a pure-JAX reference (same bf16 operand quantization points)
    ref = _ref_encode_text(tokens, model.params, args["bi_gru"],
                           args["embed_size"], not args["no_txtnorm"], _COMPUTE_DTYPE)

    assert cap_emb.shape == (B, T, args["embed_size"])
    assert length.shape == (B,) and int(length[0]) == 128
    np.testing.assert_allclose(np.asarray(cap_emb), np.asarray(ref),
                               rtol=5e-4, atol=5e-4)

    print("KERNEL_OK")
</pallas_src>

<mosaic_0001>
module attributes {stable_mosaic.version = 11 : i64} {
  func.func @kernel(%arg0: i32, %arg1: memref<16x32xf32, #tpu.memory_space<vmem>>, %arg2: memref<32x768xbf16, #tpu.memory_space<vmem>>, %arg3: memref<1x768xf32, #tpu.memory_space<vmem>>, %arg4: memref<16x384xf32, #tpu.memory_space<vmem>>, %arg5: memref<16x384xf32, #tpu.memory_space<vmem>>) attributes {dimension_semantics = [#tpu.dimension_semantics<parallel>], iteration_bounds = array<i64: 1>, scalar_prefetch = 0 : i64, scratch_operands = 0 : i64, tpu.core_type = #tpu.core_type<tc>, window_params = [{transform_indices = @transform_0, window_bounds = array<i64: 16, 32>}, {pipeline_mode = #tpu.pipeline_mode<synchronous>, transform_indices = @transform_1, window_bounds = array<i64: 32, 768>}, {pipeline_mode = #tpu.pipeline_mode<synchronous>, transform_indices = @transform_2, window_bounds = array<i64: 1, 768>}, {transform_indices = @transform_3, window_bounds = array<i64: 16, 384>}, {transform_indices = @transform_4, window_bounds = array<i64: 16, 384>}]} {
    %c0 = arith.constant 0 : index
    %c0_0 = arith.constant 0 : index
    %0 = vector.load %arg1[%c0, %c0_0] : memref<16x32xf32, #tpu.memory_space<vmem>>, vector<16x32xf32>
    %1 = arith.truncf %0 : vector<16x32xf32> to vector<16x32xbf16>
    %c0_1 = arith.constant 0 : index
    %c0_2 = arith.constant 0 : index
    %2 = vector.load %arg2[%c0_1, %c0_2] : memref<32x768xbf16, #tpu.memory_space<vmem>>, vector<32x768xbf16>
    %cst = arith.constant dense<0.000000e+00> : vector<16x768xf32>
    %3 = tpu.matmul %1, %2, %cst {dimension_numbers = #tpu.dot_dimension_numbers<[1], [0], [0], [1], [0, 0, 1, 1], [], []>} : vector<16x32xbf16>, vector<32x768xbf16>, vector<16x768xf32> -> vector<16x768xf32>
    %c0_3 = arith.constant 0 : index
    %c0_4 = arith.constant 0 : index
    %4 = vector.load %arg3[%c0_3, %c0_4] : memref<1x768xf32, #tpu.memory_space<vmem>>, vector<1x768xf32>
    %5 = vector.broadcast %4 : vector<1x768xf32> to vector<16x768xf32>
    %6 = arith.addf %3, %5 : vector<16x768xf32>
    %7 = vector.extract_strided_slice %6 {offsets = [0, 0], sizes = [16, 384], strides = [1, 1]} : vector<16x768xf32> to vector<16x384xf32>
    %c0_5 = arith.constant 0 : index
    %c0_6 = arith.constant 0 : index
    %8 = vector.load %arg4[%c0_5, %c0_6] : memref<16x384xf32, #tpu.memory_space<vmem>>, vector<16x384xf32>
    tpu.vector_store %arg4[%c0_5, %c0_6], %7 {strides = array<i32>} : memref<16x384xf32, #tpu.memory_space<vmem>>, vector<16x384xf32>,
    %9 = vector.extract_strided_slice %6 {offsets = [0, 384], sizes = [16, 384], strides = [1, 1]} : vector<16x768xf32> to vector<16x384xf32>
    %c0_7 = arith.constant 0 : index
    %c0_8 = arith.constant 0 : index
    %10 = vector.load %arg5[%c0_7, %c0_8] : memref<16x384xf32, #tpu.memory_space<vmem>>, vector<16x384xf32>
    tpu.vector_store %arg5[%c0_7, %c0_8], %9 {strides = array<i32>} : memref<16x384xf32, #tpu.memory_space<vmem>>, vector<16x384xf32>,
    return
  }
  func.func @transform_0(%arg0: i32) -> (i32, i32) {
    %c0_i32 = arith.constant 0 : i32
    %c0_i32_0 = arith.constant 0 : i32
    return %arg0, %c0_i32 : i32, i32
  }
  func.func @transform_1(%arg0: i32) -> (i32, i32) {
    %c0_i32 = arith.constant 0 : i32
    %c0_i32_0 = arith.constant 0 : i32
    %c0_i32_1 = arith.constant 0 : i32
    return %c0_i32, %c0_i32_0 : i32, i32
  }
  func.func @transform_2(%arg0: i32) -> (i32, i32) {
    %c0_i32 = arith.constant 0 : i32
    %c0_i32_0 = arith.constant 0 : i32
    %c0_i32_1 = arith.constant 0 : i32
    return %c0_i32, %c0_i32_0 : i32, i32
  }
  func.func @transform_3(%arg0: i32) -> (i32, i32) {
    %c0_i32 = arith.constant 0 : i32
    %c0_i32_0 = arith.constant 0 : i32
    return %arg0, %c0_i32 : i32, i32
  }
  func.func @transform_4(%arg0: i32) -> (i32, i32) {
    %c0_i32 = arith.constant 0 : i32
    %c0_i32_0 = arith.constant 0 : i32
    return %arg0, %c0_i32 : i32, i32
  }
}

module attributes {stable_mosaic.version = 11 : i64} {
  func.func @kernel(%arg0: i32, %arg1: memref<8x2x256xf32, #tpu.memory_space<vmem>>, %arg2: memref<8x2x256xf32, #tpu.memory_space<vmem>>, %arg3: memref<8x2x128xf32, #tpu.memory_space<vmem>>) attributes {dimension_semantics = [#tpu.dimension_semantics<parallel>], iteration_bounds = array<i64: 1>, scalar_prefetch = 0 : i64, scratch_operands = 0 : i64, tpu.core_type = #tpu.core_type<tc>, window_params = [{transform_indices = @transform_0, window_bounds = array<i64: 8, 2, 256>}, {transform_indices = @transform_1, window_bounds = array<i64: 8, 2, 256>}, {transform_indices = @transform_2, window_bounds = array<i64: 8, 2, 128>}]} {
    %c0_i32 = arith.constant 0 : i32
    %0 = arith.index_cast %c0_i32 : i32 to index
    %c0 = arith.constant 0 : index
    %c0_0 = arith.constant 0 : index
    %1 = vector.load %arg1[%0, %c0, %c0_0] : memref<8x2x256xf32, #tpu.memory_space<vmem>>, vector<1x2x256xf32>
    %2 = vector.shape_cast %1 : vector<1x2x256xf32> to vector<2x256xf32>
    %3 = vector.extract_strided_slice %2 {offsets = [0, 0], sizes = [2, 128], strides = [1, 1]} : vector<2x256xf32> to vector<2x128xf32>
    %c7_i32 = arith.constant 7 : i32
    %4 = arith.subi %c7_i32, %c0_i32 : i32
    %5 = arith.index_cast %4 : i32 to index
    %c0_1 = arith.constant 0 : index
    %c0_2 = arith.constant 0 : index
    %6 = vector.load %arg2[%5, %c0_1, %c0_2] : memref<8x2x256xf32, #tpu.memory_space<vmem>>, vector<1x2x256xf32>
    %7 = vector.shape_cast %6 : vector<1x2x256xf32> to vector<2x256xf32>
    %8 = vector.extract_strided_slice %7 {offsets = [0, 128], sizes = [2, 128], strides = [1, 1]} : vector<2x256xf32> to vector<2x128xf32>
    %9 = arith.addf %3, %8 : vector<2x128xf32>
    %cst = arith.constant 5.000000e-01 : f32
    %10 = vector.broadcast %cst : f32 to vector<2x128xf32>
    %11 = arith.mulf %9, %10 : vector<2x128xf32>
    %12 = arith.mulf %11, %11 : vector<2x128xf32>
    %cst_3 = arith.constant dense<0.000000e+00> : vector<2xf32>
    %13 = vector.multi_reduction <add>, %12, %cst_3 [1] : vector<2x128xf32> to vector<2xf32>
    %14 = vector.shape_cast %13 : vector<2xf32> to vector<2x1xf32>
    %15 = math.sqrt %14 : vector<2x1xf32>
    %cst_4 = arith.constant 9.99999993E-9 : f32
    %16 = vector.broadcast %cst_4 : f32 to vector<2x1xf32>
    %17 = arith.addf %15, %16 : vector<2x1xf32>
    %18 = vector.broadcast %17 : vector<2x1xf32> to vector<2x128xf32>
    %19 = arith.divf %11, %18 : vector<2x128xf32>
    %20 = arith.index_cast %c0_i32 : i32 to index
    %c0_5 = arith.constant 0 : index
    %c0_6 = arith.constant 0 : index
    %21 = vector.load %arg3[%20, %c0_5, %c0_6] : memref<8x2x128xf32, #tpu.memory_space<vmem>>, vector<1x2x128xf32>
    %22 = vector.shape_cast %21 : vector<1x2x128xf32> to vector<2x128xf32>
    %23 = vector.shape_cast %19 : vector<2x128xf32> to vector<1x2x128xf32>
    tpu.vector_store %arg3[%20, %c0_5, %c0_6], %23 {strides = array<i32>} : memref<8x2x128xf32, #tpu.memory_space<vmem>>, vector<1x2x128xf32>,
    %c1_i32 = arith.constant 1 : i32
    %24 = arith.index_cast %c1_i32 : i32 to index
    %c0_7 = arith.constant 0 : index
    %c0_8 = arith.constant 0 : index
    %25 = vector.load %arg1[%24, %c0_7, %c0_8] : memref<8x2x256xf32, #tpu.memory_space<vmem>>, vector<1x2x256xf32>
    %26 = vector.shape_cast %25 : vector<1x2x256xf32> to vector<2x256xf32>
    %27 = vector.extract_strided_slice %26 {offsets = [0, 0], sizes = [2, 128], strides = [1, 1]} : vector<2x256xf32> to vector<2x128xf32>
    %c7_i32_9 = arith.constant 7 : i32
    %28 = arith.subi %c7_i32_9, %c1_i32 : i32
    %29 = arith.index_cast %28 : i32 to index
    %c0_10 = arith.constant 0 : index
    %c0_11 = arith.constant 0 : index
    %30 = vector.load %arg2[%29, %c0_10, %c0_11] : memref<8x2x256xf32, #tpu.memory_space<vmem>>, vector<1x2x256xf32>
    %31 = vector.shape_cast %30 : vector<1x2x256xf32> to vector<2x256xf32>
    %32 = vector.extract_strided_slice %31 {offsets = [0, 128], sizes = [2, 128], strides = [1, 1]} : vector<2x256xf32> to vector<2x128xf32>
    %33 = arith.addf %27, %32 : vector<2x128xf32>
    %cst_12 = arith.constant 5.000000e-01 : f32
    %34 = vector.broadcast %cst_12 : f32 to vector<2x128xf32>
    %35 = arith.mulf %33, %34 : vector<2x128xf32>
    %36 = arith.mulf %35, %35 : vector<2x128xf32>
    %cst_13 = arith.constant dense<0.000000e+00> : vector<2xf32>
    %37 = vector.multi_reduction <add>, %36, %cst_13 [1] : vector<2x128xf32> to vector<2xf32>
    %38 = vector.shape_cast %37 : vector<2xf32> to vector<2x1xf32>
    %39 = math.sqrt %38 : vector<2x1xf32>
    %cst_14 = arith.constant 9.99999993E-9 : f32
    %40 = vector.broadcast %cst_14 : f32 to vector<2x1xf32>
    %41 = arith.addf %39, %40 : vector<2x1xf32>
    %42 = vector.broadcast %41 : vector<2x1xf32> to vector<2x128xf32>
    %43 = arith.divf %35, %42 : vector<2x128xf32>
    %44 = arith.index_cast %c1_i32 : i32 to index
    %c0_15 = arith.constant 0 : index
    %c0_16 = arith.constant 0 : index
    %45 = vector.load %arg3[%44, %c0_15, %c0_16] : memref<8x2x128xf32, #tpu.memory_space<vmem>>, vector<1x2x128xf32>
    %46 = vector.shape_cast %45 : vector<1x2x128xf32> to vector<2x128xf32>
    %47 = vector.shape_cast %43 : vector<2x128xf32> to vector<1x2x128xf32>
    tpu.vector_store %arg3[%44, %c0_15, %c0_16], %47 {strides = array<i32>} : memref<8x2x128xf32, #tpu.memory_space<vmem>>, vector<1x2x128xf32>,
    %c2_i32 = arith.constant 2 : i32
    %48 = arith.index_cast %c2_i32 : i32 to index
    %c0_17 = arith.constant 0 : index
    %c0_18 = arith.constant 0 : index
    %49 = vector.load %arg1[%48, %c0_17, %c0_18] : memref<8x2x256xf32, #tpu.memory_space<vmem>>, vector<1x2x256xf32>
    %50 = vector.shape_cast %49 : vector<1x2x256xf32> to vector<2x256xf32>
    %51 = vector.extract_strided_slice %50 {offsets = [0, 0], sizes = [2, 128], strides = [1, 1]} : vector<2x256xf32> to vector<2x128xf32>
    %c7_i32_19 = arith.constant 7 : i32
    %52 = arith.subi %c7_i32_19, %c2_i32 : i32
    %53 = arith.index_cast %52 : i32 to index
    %c0_20 = arith.constant 0 : index
    %c0_21 = arith.constant 0 : index
    %54 = vector.load %arg2[%53, %c0_20, %c0_21] : memref<8x2x256xf32, #tpu.memory_space<vmem>>, vector<1x2x256xf32>
    %55 = vector.shape_cast %54 : vector<1x2x256xf32> to vector<2x256xf32>
    %56 = vector.extract_strided_slice %55 {offsets = [0, 128], sizes = [2, 128], strides = [1, 1]} : vector<2x256xf32> to vector<2x128xf32>
    %57 = arith.addf %51, %56 : vector<2x128xf32>
    %cst_22 = arith.constant 5.000000e-01 : f32
    %58 = vector.broadcast %cst_22 : f32 to vector<2x128xf32>
    %59 = arith.mulf %57, %58 : vector<2x128xf32>
    %60 = arith.mulf %59, %59 : vector<2x128xf32>
    %cst_23 = arith.constant dense<0.000000e+00> : vector<2xf32>
    %61 = vector.multi_reduction <add>, %60, %cst_23 [1] : vector<2x128xf32> to vector<2xf32>
    %62 = vector.shape_cast %61 : vector<2xf32> to vector<2x1xf32>
    %63 = math.sqrt %62 : vector<2x1xf32>
    %cst_24 = arith.constant 9.99999993E-9 : f32
    %64 = vector.broadcast %cst_24 : f32 to vector<2x1xf32>
    %65 = arith.addf %63, %64 : vector<2x1xf32>
    %66 = vector.broadcast %65 : vector<2x1xf32> to vector<2x128xf32>
    %67 = arith.divf %59, %66 : vector<2x128xf32>
    %68 = arith.index_cast %c2_i32 : i32 to index
    %c0_25 = arith.constant 0 : index
    %c0_26 = arith.constant 0 : index
    %69 = vector.load %arg3[%68, %c0_25, %c0_26] : memref<8x2x128xf32, #tpu.memory_space<vmem>>, vector<1x2x128xf32>
    %70 = vector.shape_cast %69 : vector<1x2x128xf32> to vector<2x128xf32>
    %71 = vector.shape_cast %67 : vector<2x128xf32> to vector<1x2x128xf32>
    tpu.vector_store %arg3[%68, %c0_25, %c0_26], %71 {strides = array<i32>} : memref<8x2x128xf32, #tpu.memory_space<vmem>>, vector<1x2x128xf32>,
    %c3_i32 = arith.constant 3 : i32
    %72 = arith.index_cast %c3_i32 : i32 to index
    %c0_27 = arith.constant 0 : index
    %c0_28 = arith.constant 0 : index
    %73 = vector.load %arg1[%72, %c0_27, %c0_28] : memref<8x2x256xf32, #tpu.memory_space<vmem>>, vector<1x2x256xf32>
    %74 = vector.shape_cast %73 : vector<1x2x256xf32> to vector<2x256xf32>
    %75 = vector.extract_strided_slice %74 {offsets = [0, 0], sizes = [2, 128], strides = [1, 1]} : vector<2x256xf32> to vector<2x128xf32>
    %c7_i32_29 = arith.constant 7 : i32
    %76 = arith.subi %c7_i32_29, %c3_i32 : i32
    %77 = arith.index_cast %76 : i32 to index
    %c0_30 = arith.constant 0 : index
    %c0_31 = arith.constant 0 : index
    %78 = vector.load %arg2[%77, %c0_30, %c0_31] : memref<8x2x256xf32, #tpu.memory_space<vmem>>, vector<1x2x256xf32>
    %79 = vector.shape_cast %78 : vector<1x2x256xf32> to vector<2x256xf32>
    %80 = vector.extract_strided_slice %79 {offsets = [0, 128], sizes = [2, 128], strides = [1, 1]} : vector<2x256xf32> to vector<2x128xf32>
    %81 = arith.addf %75, %80 : vector<2x128xf32>
    %cst_32 = arith.constant 5.000000e-01 : f32
    %82 = vector.broadcast %cst_32 : f32 to vector<2x128xf32>
    %83 = arith.mulf %81, %82 : vector<2x128xf32>
    %84 = arith.mulf %83, %83 : vector<2x128xf32>
    %cst_33 = arith.constant dense<0.000000e+00> : vector<2xf32>
    %85 = vector.multi_reduction <add>, %84, %cst_33 [1] : vector<2x128xf32> to vector<2xf32>
    %86 = vector.shape_cast %85 : vector<2xf32> to vector<2x1xf32>
    %87 = math.sqrt %86 : vector<2x1xf32>
    %cst_34 = arith.constant 9.99999993E-9 : f32
    %88 = vector.broadcast %cst_34 : f32 to vector<2x1xf32>
    %89 = arith.addf %87, %88 : vector<2x1xf32>
    %90 = vector.broadcast %89 : vector<2x1xf32> to vector<2x128xf32>
    %91 = arith.divf %83, %90 : vector<2x128xf32>
    %92 = arith.index_cast %c3_i32 : i32 to index
    %c0_35 = arith.constant 0 : index
    %c0_36 = arith.constant 0 : index
    %93 = vector.load %arg3[%92, %c0_35, %c0_36] : memref<8x2x128xf32, #tpu.memory_space<vmem>>, vector<1x2x128xf32>
    %94 = vector.shape_cast %93 : vector<1x2x128xf32> to vector<2x128xf32>
    %95 = vector.shape_cast %91 : vector<2x128xf32> to vector<1x2x128xf32>
    tpu.vector_store %arg3[%92, %c0_35, %c0_36], %95 {strides = array<i32>} : memref<8x2x128xf32, #tpu.memory_space<vmem>>, vector<1x2x128xf32>,
    %c4_i32 = arith.constant 4 : i32
    %96 = arith.index_cast %c4_i32 : i32 to index
    %c0_37 = arith.constant 0 : index
    %c0_38 = arith.constant 0 : index
    %97 = vector.load %arg1[%96, %c0_37, %c0_38] : memref<8x2x256xf32, #tpu.memory_space<vmem>>, vector<1x2x256xf32>
    %98 = vector.shape_cast %97 : vector<1x2x256xf32> to vector<2x256xf32>
    %99 = vector.extract_strided_slice %98 {offsets = [0, 0], sizes = [2, 128], strides = [1, 1]} : vector<2x256xf32> to vector<2x128xf32>
    %c7_i32_39 = arith.constant 7 : i32
    %100 = arith.subi %c7_i32_39, %c4_i32 : i32
    %101 = arith.index_cast %100 : i32 to index
    %c0_40 = arith.constant 0 : index
    %c0_41 = arith.constant 0 : index
    %102 = vector.load %arg2[%101, %c0_40, %c0_41] : memref<8x2x256xf32, #tpu.memory_space<vmem>>, vector<1x2x256xf32>
    %103 = vector.shape_cast %102 : vector<1x2x256xf32> to vector<2x256xf32>
    %104 = vector.extract_strided_slice %103 {offsets = [0, 128], sizes = [2, 128], strides = [1, 1]} : vector<2x256xf32> to vector<2x128xf32>
    %105 = arith.addf %99, %104 : vector<2x128xf32>
    %cst_42 = arith.constant 5.000000e-01 : f32
    %106 = vector.broadcast %cst_42 : f32 to vector<2x128xf32>
    %107 = arith.mulf %105, %106 : vector<2x128xf32>
    %108 = arith.mulf %107, %107 : vector<2x128xf32>
    %cst_43 = arith.constant dense<0.000000e+00> : vector<2xf32>
    %109 = vector.multi_reduction <add>, %108, %cst_43 [1] : vector<2x128xf32> to vector<2xf32>
    %110 = vector.shape_cast %109 : vector<2xf32> to vector<2x1xf32>
    %111 = math.sqrt %110 : vector<2x1xf32>
    %cst_44 = arith.constant 9.99999993E-9 : f32
    %112 = vector.broadcast %cst_44 : f32 to vector<2x1xf32>
    %113 = arith.addf %111, %112 : vector<2x1xf32>
    %114 = vector.broadcast %113 : vector<2x1xf32> to vector<2x128xf32>
    %115 = arith.divf %107, %114 : vector<2x128xf32>
    %116 = arith.index_cast %c4_i32 : i32 to index
    %c0_45 = arith.constant 0 : index
    %c0_46 = arith.constant 0 : index
    %117 = vector.load %arg3[%116, %c0_45, %c0_46] : memref<8x2x128xf32, #tpu.memory_space<vmem>>, vector<1x2x128xf32>
    %118 = vector.shape_cast %117 : vector<1x2x128xf32> to vector<2x128xf32>
    %119 = vector.shape_cast %115 : vector<2x128xf32> to vector<1x2x128xf32>
    tpu.vector_store %arg3[%116, %c0_45, %c0_46], %119 {strides = array<i32>} : memref<8x2x128xf32, #tpu.memory_space<vmem>>, vector<1x2x128xf32>,
    %c5_i32 = arith.constant 5 : i32
    %120 = arith.index_cast %c5_i32 : i32 to index
    %c0_47 = arith.constant 0 : index
    %c0_48 = arith.constant 0 : index
    %121 = vector.load %arg1[%120, %c0_47, %c0_48] : memref<8x2x256xf32, #tpu.memory_space<vmem>>, vector<1x2x256xf32>
    %122 = vector.shape_cast %121 : vector<1x2x256xf32> to vector<2x256xf32>
    %123 = vector.extract_strided_slice %122 {offsets = [0, 0], sizes = [2, 128], strides = [1, 1]} : vector<2x256xf32> to vector<2x128xf32>
    %c7_i32_49 = arith.constant 7 : i32
    %124 = arith.subi %c7_i32_49, %c5_i32 : i32
    %125 = arith.index_cast %124 : i32 to index
    %c0_50 = arith.constant 0 : index
    %c0_51 = arith.constant 0 : index
    %126 = vector.load %arg2[%125, %c0_50, %c0_51] : memref<8x2x256xf32, #tpu.memory_space<vmem>>, vector<1x2x256xf32>
    %127 = vector.shape_cast %126 : vector<1x2x256xf32> to vector<2x256xf32>
    %128 = vector.extract_strided_slice %127 {offsets = [0, 128], sizes = [2, 128], strides = [1, 1]} : vector<2x256xf32> to vector<2x128xf32>
    %129 = arith.addf %123, %128 : vector<2x128xf32>
    %cst_52 = arith.constant 5.000000e-01 : f32
    %130 = vector.broadcast %cst_52 : f32 to vector<2x128xf32>
    %131 = arith.mulf %129, %130 : vector<2x128xf32>
    %132 = arith.mulf %131, %131 : vector<2x128xf32>
    %cst_53 = arith.constant dense<0.000000e+00> : vector<2xf32>
    %133 = vector.multi_reduction <add>, %132, %cst_53 [1] : vector<2x128xf32> to vector<2xf32>
    %134 = vector.shape_cast %133 : vector<2xf32> to vector<2x1xf32>
    %135 = math.sqrt %134 : vector<2x1xf32>
    %cst_54 = arith.constant 9.99999993E-9 : f32
    %136 = vector.broadcast %cst_54 : f32 to vector<2x1xf32>
    %137 = arith.addf %135, %136 : vector<2x1xf32>
    %138 = vector.broadcast %137 : vector<2x1xf32> to vector<2x128xf32>
    %139 = arith.divf %131, %138 : vector<2x128xf32>
    %140 = arith.index_cast %c5_i32 : i32 to index
    %c0_55 = arith.constant 0 : index
    %c0_56 = arith.constant 0 : index
    %141 = vector.load %arg3[%140, %c0_55, %c0_56] : memref<8x2x128xf32, #tpu.memory_space<vmem>>, vector<1x2x128xf32>
    %142 = vector.shape_cast %141 : vector<1x2x128xf32> to vector<2x128xf32>
    %143 = vector.shape_cast %139 : vector<2x128xf32> to vector<1x2x128xf32>
    tpu.vector_store %arg3[%140, %c0_55, %c0_56], %143 {strides = array<i32>} : memref<8x2x128xf32, #tpu.memory_space<vmem>>, vector<1x2x128xf32>,
    %c6_i32 = arith.constant 6 : i32
    %144 = arith.index_cast %c6_i32 : i32 to index
    %c0_57 = arith.constant 0 : index
    %c0_58 = arith.constant 0 : index
    %145 = vector.load %arg1[%144, %c0_57, %c0_58] : memref<8x2x256xf32, #tpu.memory_space<vmem>>, vector<1x2x256xf32>
    %146 = vector.shape_cast %145 : vector<1x2x256xf32> to vector<2x256xf32>
    %147 = vector.extract_strided_slice %146 {offsets = [0, 0], sizes = [2, 128], strides = [1, 1]} : vector<2x256xf32> to vector<2x128xf32>
    %c7_i32_59 = arith.constant 7 : i32
    %148 = arith.subi %c7_i32_59, %c6_i32 : i32
    %149 = arith.index_cast %148 : i32 to index
    %c0_60 = arith.constant 0 : index
    %c0_61 = arith.constant 0 : index
    %150 = vector.load %arg2[%149, %c0_60, %c0_61] : memref<8x2x256xf32, #tpu.memory_space<vmem>>, vector<1x2x256xf32>
    %151 = vector.shape_cast %150 : vector<1x2x256xf32> to vector<2x256xf32>
    %152 = vector.extract_strided_slice %151 {offsets = [0, 128], sizes = [2, 128], strides = [1, 1]} : vector<2x256xf32> to vector<2x128xf32>
    %153 = arith.addf %147, %152 : vector<2x128xf32>
    %cst_62 = arith.constant 5.000000e-01 : f32
    %154 = vector.broadcast %cst_62 : f32 to vector<2x128xf32>
    %155 = arith.mulf %153, %154 : vector<2x128xf32>
    %156 = arith.mulf %155, %155 : vector<2x128xf32>
    %cst_63 = arith.constant dense<0.000000e+00> : vector<2xf32>
    %157 = vector.multi_reduction <add>, %156, %cst_63 [1] : vector<2x128xf32> to vector<2xf32>
    %158 = vector.shape_cast %157 : vector<2xf32> to vector<2x1xf32>
    %159 = math.sqrt %158 : vector<2x1xf32>
    %cst_64 = arith.constant 9.99999993E-9 : f32
    %160 = vector.broadcast %cst_64 : f32 to vector<2x1xf32>
    %161 = arith.addf %159, %160 : vector<2x1xf32>
    %162 = vector.broadcast %161 : vector<2x1xf32> to vector<2x128xf32>
    %163 = arith.divf %155, %162 : vector<2x128xf32>
    %164 = arith.index_cast %c6_i32 : i32 to index
    %c0_65 = arith.constant 0 : index
    %c0_66 = arith.constant 0 : index
    %165 = vector.load %arg3[%164, %c0_65, %c0_66] : memref<8x2x128xf32, #tpu.memory_space<vmem>>, vector<1x2x128xf32>
    %166 = vector.shape_cast %165 : vector<1x2x128xf32> to vector<2x128xf32>
    %167 = vector.shape_cast %163 : vector<2x128xf32> to vector<1x2x128xf32>
    tpu.vector_store %arg3[%164, %c0_65, %c0_66], %167 {strides = array<i32>} : memref<8x2x128xf32, #tpu.memory_space<vmem>>, vector<1x2x128xf32>,
    %c7_i32_67 = arith.constant 7 : i32
    %168 = arith.index_cast %c7_i32_67 : i32 to index
    %c0_68 = arith.constant 0 : index
    %c0_69 = arith.constant 0 : index
    %169 = vector.load %arg1[%168, %c0_68, %c0_69] : memref<8x2x256xf32, #tpu.memory_space<vmem>>, vector<1x2x256xf32>
    %170 = vector.shape_cast %169 : vector<1x2x256xf32> to vector<2x256xf32>
    %171 = vector.extract_strided_slice %170 {offsets = [0, 0], sizes = [2, 128], strides = [1, 1]} : vector<2x256xf32> to vector<2x128xf32>
    %c7_i32_70 = arith.constant 7 : i32
    %172 = arith.subi %c7_i32_70, %c7_i32_67 : i32
    %173 = arith.index_cast %172 : i32 to index
    %c0_71 = arith.constant 0 : index
    %c0_72 = arith.constant 0 : index
    %174 = vector.load %arg2[%173, %c0_71, %c0_72] : memref<8x2x256xf32, #tpu.memory_space<vmem>>, vector<1x2x256xf32>
    %175 = vector.shape_cast %174 : vector<1x2x256xf32> to vector<2x256xf32>
    %176 = vector.extract_strided_slice %175 {offsets = [0, 128], sizes = [2, 128], strides = [1, 1]} : vector<2x256xf32> to vector<2x128xf32>
    %177 = arith.addf %171, %176 : vector<2x128xf32>
    %cst_73 = arith.constant 5.000000e-01 : f32
    %178 = vector.broadcast %cst_73 : f32 to vector<2x128xf32>
    %179 = arith.mulf %177, %178 : vector<2x128xf32>
    %180 = arith.mulf %179, %179 : vector<2x128xf32>
    %cst_74 = arith.constant dense<0.000000e+00> : vector<2xf32>
    %181 = vector.multi_reduction <add>, %180, %cst_74 [1] : vector<2x128xf32> to vector<2xf32>
    %182 = vector.shape_cast %181 : vector<2xf32> to vector<2x1xf32>
    %183 = math.sqrt %182 : vector<2x1xf32>
    %cst_75 = arith.constant 9.99999993E-9 : f32
    %184 = vector.broadcast %cst_75 : f32 to vector<2x1xf32>
    %185 = arith.addf %183, %184 : vector<2x1xf32>
    %186 = vector.broadcast %185 : vector<2x1xf32> to vector<2x128xf32>
    %187 = arith.divf %179, %186 : vector<2x128xf32>
    %188 = arith.index_cast %c7_i32_67 : i32 to index
    %c0_76 = arith.constant 0 : index
    %c0_77 = arith.constant 0 : index
    %189 = vector.load %arg3[%188, %c0_76, %c0_77] : memref<8x2x128xf32, #tpu.memory_space<vmem>>, vector<1x2x128xf32>
    %190 = vector.shape_cast %189 : vector<1x2x128xf32> to vector<2x128xf32>
    %191 = vector.shape_cast %187 : vector<2x128xf32> to vector<1x2x128xf32>
    tpu.vector_store %arg3[%188, %c0_76, %c0_77], %191 {strides = array<i32>} : memref<8x2x128xf32, #tpu.memory_space<vmem>>, vector<1x2x128xf32>,
    %c8_i32 = arith.constant 8 : i32
    return
  }
  func.func @transform_0(%arg0: i32) -> (i32, i32, i32) {
    %c0_i32 = arith.constant 0 : i32
    %c0_i32_0 = arith.constant 0 : i32
    %c0_i32_1 = arith.constant 0 : i32
    return %arg0, %c0_i32, %c0_i32_0 : i32, i32, i32
  }
  func.func @transform_1(%arg0: i32) -> (i32, i32, i32) {
    %c0_i32 = arith.constant 0 : i32
    %0 = arith.subi %c0_i32, %arg0 : i32
    %c0_i32_0 = arith.constant 0 : i32
    %c0_i32_1 = arith.constant 0 : i32
    %c0_i32_2 = arith.constant 0 : i32
    return %0, %c0_i32_0, %c0_i32_1 : i32, i32, i32
  }
  func.func @transform_2(%arg0: i32) -> (i32, i32, i32) {
    %c0_i32 = arith.constant 0 : i32
    %c0_i32_0 = arith.constant 0 : i32
    %c0_i32_1 = arith.constant 0 : i32
    return %arg0, %c0_i32, %c0_i32_0 : i32, i32, i32
  }
}

module attributes {stable_mosaic.version = 11 : i64} {
  func.func @kernel(%arg0: i32, %arg1: memref<8x2x384xf32, #tpu.memory_space<vmem>>, %arg2: memref<8x2x384xf32, #tpu.memory_space<vmem>>, %arg3: memref<256x768xbf16, #tpu.memory_space<vmem>>, %arg4: memref<1x768xf32, #tpu.memory_space<vmem>>, %arg5: memref<8x2x256xf32, #tpu.memory_space<vmem>>, %arg6: memref<2x256xf32, #tpu.memory_space<vmem>>) attributes {dimension_semantics = [#tpu.dimension_semantics<arbitrary>], iteration_bounds = array<i64: 1>, scalar_prefetch = 0 : i64, scratch_operands = 1 : i64, tpu.core_type = #tpu.core_type<tc>, window_params = [{transform_indices = @transform_0, window_bounds = array<i64: 8, 2, 384>}, {transform_indices = @transform_1, window_bounds = array<i64: 8, 2, 384>}, {pipeline_mode = #tpu.pipeline_mode<synchronous>, transform_indices = @transform_2, window_bounds = array<i64: 256, 768>}, {pipeline_mode = #tpu.pipeline_mode<synchronous>, transform_indices = @transform_3, window_bounds = array<i64: 1, 768>}, {transform_indices = @transform_4, window_bounds = array<i64: 8, 2, 256>}]} {
    %c0_i32 = arith.constant 0 : i32
    %0 = arith.cmpi eq, %arg0, %c0_i32 : i32
    %1 = arith.extui %0 : i1 to i32
    %c0_i32_0 = arith.constant 0 : i32
    %2 = arith.cmpi ne, %1, %c0_i32_0 : i32
    scf.if %2 {
      %cst_148 = arith.constant 0.000000e+00 : f32
      %597 = vector.broadcast %cst_148 : f32 to vector<2x256xf32>
      %c0_149 = arith.constant 0 : index
      %c0_150 = arith.constant 0 : index
      %598 = vector.load %arg6[%c0_149, %c0_150] : memref<2x256xf32, #tpu.memory_space<vmem>>, vector<2x256xf32>
      tpu.vector_store %arg6[%c0_149, %c0_150], %597 {strides = array<i32>} : memref<2x256xf32, #tpu.memory_space<vmem>>, vector<2x256xf32>,
    } else {
    }
    %c0 = arith.constant 0 : index
    %c0_1 = arith.constant 0 : index
    %3 = vector.load %arg6[%c0, %c0_1] : memref<2x256xf32, #tpu.memory_space<vmem>>, vector<2x256xf32>
    %c0_i32_2 = arith.constant 0 : i32
    %4 = arith.truncf %3 : vector<2x256xf32> to vector<2x256xbf16>
    %c0_3 = arith.constant 0 : index
    %c0_4 = arith.constant 0 : index
    %5 = vector.load %arg3[%c0_3, %c0_4] : memref<256x768xbf16, #tpu.memory_space<vmem>>, vector<256x768xbf16>
    %cst = arith.constant dense<0.000000e+00> : vector<2x768xf32>
    %6 = tpu.matmul %4, %5, %cst {dimension_numbers = #tpu.dot_dimension_numbers<[1], [0], [0], [1], [0, 0, 1, 1], [], []>} : vector<2x256xbf16>, vector<256x768xbf16>, vector<2x768xf32> -> vector<2x768xf32>
    %c0_5 = arith.constant 0 : index
    %c0_6 = arith.constant 0 : index
    %7 = vector.load %arg4[%c0_5, %c0_6] : memref<1x768xf32, #tpu.memory_space<vmem>>, vector<1x768xf32>
    %8 = vector.broadcast %7 : vector<1x768xf32> to vector<2x768xf32>
    %9 = arith.addf %6, %8 : vector<2x768xf32>
    %10 = arith.index_cast %c0_i32_2 : i32 to index
    %c0_7 = arith.constant 0 : index
    %c0_8 = arith.constant 0 : index
    %11 = vector.load %arg1[%10, %c0_7, %c0_8] : memref<8x2x384xf32, #tpu.memory_space<vmem>>, vector<1x2x384xf32>
    %12 = vector.shape_cast %11 : vector<1x2x384xf32> to vector<2x384xf32>
    %13 = vector.extract_strided_slice %9 {offsets = [0, 0], sizes = [2, 384], strides = [1, 1]} : vector<2x768xf32> to vector<2x384xf32>
    %14 = vector.extract_strided_slice %3 {offsets = [0, 0], sizes = [2, 128], strides = [1, 1]} : vector<2x256xf32> to vector<2x128xf32>
    %15 = vector.extract_strided_slice %12 {offsets = [0, 0], sizes = [2, 128], strides = [1, 1]} : vector<2x384xf32> to vector<2x128xf32>
    %16 = vector.extract_strided_slice %13 {offsets = [0, 0], sizes = [2, 128], strides = [1, 1]} : vector<2x384xf32> to vector<2x128xf32>
    %17 = arith.addf %15, %16 : vector<2x128xf32>
    %18 = arith.negf %17 : vector<2x128xf32>
    %19 = math.exp %18 : vector<2x128xf32>
    %cst_9 = arith.constant 1.000000e+00 : f32
    %20 = vector.broadcast %cst_9 : f32 to vector<2x128xf32>
    %21 = arith.addf %20, %19 : vector<2x128xf32>
    %22 = arith.divf %20, %21 : vector<2x128xf32>
    %23 = vector.extract_strided_slice %12 {offsets = [0, 128], sizes = [2, 128], strides = [1, 1]} : vector<2x384xf32> to vector<2x128xf32>
    %24 = vector.extract_strided_slice %13 {offsets = [0, 128], sizes = [2, 128], strides = [1, 1]} : vector<2x384xf32> to vector<2x128xf32>
    %25 = arith.addf %23, %24 : vector<2x128xf32>
    %26 = arith.negf %25 : vector<2x128xf32>
    %27 = math.exp %26 : vector<2x128xf32>
    %cst_10 = arith.constant 1.000000e+00 : f32
    %28 = vector.broadcast %cst_10 : f32 to vector<2x128xf32>
    %29 = arith.addf %28, %27 : vector<2x128xf32>
    %30 = arith.divf %28, %29 : vector<2x128xf32>
    %31 = vector.extract_strided_slice %12 {offsets = [0, 256], sizes = [2, 128], strides = [1, 1]} : vector<2x384xf32> to vector<2x128xf32>
    %32 = vector.extract_strided_slice %13 {offsets = [0, 256], sizes = [2, 128], strides = [1, 1]} : vector<2x384xf32> to vector<2x128xf32>
    %33 = arith.mulf %22, %32 : vector<2x128xf32>
    %34 = arith.addf %31, %33 : vector<2x128xf32>
    %35 = math.tanh %34 : vector<2x128xf32>
    %cst_11 = arith.constant 1.000000e+00 : f32
    %36 = vector.broadcast %cst_11 : f32 to vector<2x128xf32>
    %37 = arith.subf %36, %30 : vector<2x128xf32>
    %38 = arith.mulf %37, %35 : vector<2x128xf32>
    %39 = arith.mulf %30, %14 : vector<2x128xf32>
    %40 = arith.addf %38, %39 : vector<2x128xf32>
    %c7_i32 = arith.constant 7 : i32
    %41 = arith.subi %c7_i32, %c0_i32_2 : i32
    %42 = arith.index_cast %41 : i32 to index
    %c0_12 = arith.constant 0 : index
    %c0_13 = arith.constant 0 : index
    %43 = vector.load %arg2[%42, %c0_12, %c0_13] : memref<8x2x384xf32, #tpu.memory_space<vmem>>, vector<1x2x384xf32>
    %44 = vector.shape_cast %43 : vector<1x2x384xf32> to vector<2x384xf32>
    %45 = vector.extract_strided_slice %9 {offsets = [0, 384], sizes = [2, 384], strides = [1, 1]} : vector<2x768xf32> to vector<2x384xf32>
    %46 = vector.extract_strided_slice %3 {offsets = [0, 128], sizes = [2, 128], strides = [1, 1]} : vector<2x256xf32> to vector<2x128xf32>
    %47 = vector.extract_strided_slice %44 {offsets = [0, 0], sizes = [2, 128], strides = [1, 1]} : vector<2x384xf32> to vector<2x128xf32>
    %48 = vector.extract_strided_slice %45 {offsets = [0, 0], sizes = [2, 128], strides = [1, 1]} : vector<2x384xf32> to vector<2x128xf32>
    %49 = arith.addf %47, %48 : vector<2x128xf32>
    %50 = arith.negf %49 : vector<2x128xf32>
    %51 = math.exp %50 : vector<2x128xf32>
    %cst_14 = arith.constant 1.000000e+00 : f32
    %52 = vector.broadcast %cst_14 : f32 to vector<2x128xf32>
    %53 = arith.addf %52, %51 : vector<2x128xf32>
    %54 = arith.divf %52, %53 : vector<2x128xf32>
    %55 = vector.extract_strided_slice %44 {offsets = [0, 128], sizes = [2, 128], strides = [1, 1]} : vector<2x384xf32> to vector<2x128xf32>
    %56 = vector.extract_strided_slice %45 {offsets = [0, 128], sizes = [2, 128], strides = [1, 1]} : vector<2x384xf32> to vector<2x128xf32>
    %57 = arith.addf %55, %56 : vector<2x128xf32>
    %58 = arith.negf %57 : vector<2x128xf32>
    %59 = math.exp %58 : vector<2x128xf32>
    %cst_15 = arith.constant 1.000000e+00 : f32
    %60 = vector.broadcast %cst_15 : f32 to vector<2x128xf32>
    %61 = arith.addf %60, %59 : vector<2x128xf32>
    %62 = arith.divf %60, %61 : vector<2x128xf32>
    %63 = vector.extract_strided_slice %44 {offsets = [0, 256], sizes = [2, 128], strides = [1, 1]} : vector<2x384xf32> to vector<2x128xf32>
    %64 = vector.extract_strided_slice %45 {offsets = [0, 256], sizes = [2, 128], strides = [1, 1]} : vector<2x384xf32> to vector<2x128xf32>
    %65 = arith.mulf %54, %64 : vector<2x128xf32>
    %66 = arith.addf %63, %65 : vector<2x128xf32>
    %67 = math.tanh %66 : vector<2x128xf32>
    %cst_16 = arith.constant 1.000000e+00 : f32
    %68 = vector.broadcast %cst_16 : f32 to vector<2x128xf32>
    %69 = arith.subf %68, %62 : vector<2x128xf32>
    %70 = arith.mulf %69, %67 : vector<2x128xf32>
    %71 = arith.mulf %62, %46 : vector<2x128xf32>
    %72 = arith.addf %70, %71 : vector<2x128xf32>
    %73 = tpu.concatenate %40, %72 in 1 : vector<2x128xf32>, vector<2x128xf32> -> vector<2x256xf32>
    %74 = arith.index_cast %c0_i32_2 : i32 to index
    %c0_17 = arith.constant 0 : index
    %c0_18 = arith.constant 0 : index
    %75 = vector.load %arg5[%74, %c0_17, %c0_18] : memref<8x2x256xf32, #tpu.memory_space<vmem>>, vector<1x2x256xf32>
    %76 = vector.shape_cast %75 : vector<1x2x256xf32> to vector<2x256xf32>
    %77 = vector.shape_cast %73 : vector<2x256xf32> to vector<1x2x256xf32>
    tpu.vector_store %arg5[%74, %c0_17, %c0_18], %77 {strides = array<i32>} : memref<8x2x256xf32, #tpu.memory_space<vmem>>, vector<1x2x256xf32>,
    %c1_i32 = arith.constant 1 : i32
    %78 = arith.truncf %73 : vector<2x256xf32> to vector<2x256xbf16>
    %c0_19 = arith.constant 0 : index
    %c0_20 = arith.constant 0 : index
    %79 = vector.load %arg3[%c0_19, %c0_20] : memref<256x768xbf16, #tpu.memory_space<vmem>>, vector<256x768xbf16>
    %cst_21 = arith.constant dense<0.000000e+00> : vector<2x768xf32>
    %80 = tpu.matmul %78, %79, %cst_21 {dimension_numbers = #tpu.dot_dimension_numbers<[1], [0], [0], [1], [0, 0, 1, 1], [], []>} : vector<2x256xbf16>, vector<256x768xbf16>, vector<2x768xf32> -> vector<2x768xf32>
    %c0_22 = arith.constant 0 : index
    %c0_23 = arith.constant 0 : index
    %81 = vector.load %arg4[%c0_22, %c0_23] : memref<1x768xf32, #tpu.memory_space<vmem>>, vector<1x768xf32>
    %82 = vector.broadcast %81 : vector<1x768xf32> to vector<2x768xf32>
    %83 = arith.addf %80, %82 : vector<2x768xf32>
    %84 = arith.index_cast %c1_i32 : i32 to index
    %c0_24 = arith.constant 0 : index
    %c0_25 = arith.constant 0 : index
    %85 = vector.load %arg1[%84, %c0_24, %c0_25] : memref<8x2x384xf32, #tpu.memory_space<vmem>>, vector<1x2x384xf32>
    %86 = vector.shape_cast %85 : vector<1x2x384xf32> to vector<2x384xf32>
    %87 = vector.extract_strided_slice %83 {offsets = [0, 0], sizes = [2, 384], strides = [1, 1]} : vector<2x768xf32> to vector<2x384xf32>
    %88 = vector.extract_strided_slice %73 {offsets = [0, 0], sizes = [2, 128], strides = [1, 1]} : vector<2x256xf32> to vector<2x128xf32>
    %89 = vector.extract_strided_slice %86 {offsets = [0, 0], sizes = [2, 128], strides = [1, 1]} : vector<2x384xf32> to vector<2x128xf32>
    %90 = vector.extract_strided_slice %87 {offsets = [0, 0], sizes = [2, 128], strides = [1, 1]} : vector<2x384xf32> to vector<2x128xf32>
    %91 = arith.addf %89, %90 : vector<2x128xf32>
    %92 = arith.negf %91 : vector<2x128xf32>
    %93 = math.exp %92 : vector<2x128xf32>
    %cst_26 = arith.constant 1.000000e+00 : f32
    %94 = vector.broadcast %cst_26 : f32 to vector<2x128xf32>
    %95 = arith.addf %94, %93 : vector<2x128xf32>
    %96 = arith.divf %94, %95 : vector<2x128xf32>
    %97 = vector.extract_strided_slice %86 {offsets = [0, 128], sizes = [2, 128], strides = [1, 1]} : vector<2x384xf32> to vector<2x128xf32>
    %98 = vector.extract_strided_slice %87 {offsets = [0, 128], sizes = [2, 128], strides = [1, 1]} : vector<2x384xf32> to vector<2x128xf32>
    %99 = arith.addf %97, %98 : vector<2x128xf32>
    %100 = arith.negf %99 : vector<2x128xf32>
    %101 = math.exp %100 : vector<2x128xf32>
    %cst_27 = arith.constant 1.000000e+00 : f32
    %102 = vector.broadcast %cst_27 : f32 to vector<2x128xf32>
    %103 = arith.addf %102, %101 : vector<2x128xf32>
    %104 = arith.divf %102, %103 : vector<2x128xf32>
    %105 = vector.extract_strided_slice %86 {offsets = [0, 256], sizes = [2, 128], strides = [1, 1]} : vector<2x384xf32> to vector<2x128xf32>
    %106 = vector.extract_strided_slice %87 {offsets = [0, 256], sizes = [2, 128], strides = [1, 1]} : vector<2x384xf32> to vector<2x128xf32>
    %107 = arith.mulf %96, %106 : vector<2x128xf32>
    %108 = arith.addf %105, %107 : vector<2x128xf32>
    %109 = math.tanh %108 : vector<2x128xf32>
    %cst_28 = arith.constant 1.000000e+00 : f32
    %110 = vector.broadcast %cst_28 : f32 to vector<2x128xf32>
    %111 = arith.subf %110, %104 : vector<2x128xf32>
    %112 = arith.mulf %111, %109 : vector<2x128xf32>
    %113 = arith.mulf %104, %88 : vector<2x128xf32>
    %114 = arith.addf %112, %113 : vector<2x128xf32>
    %c7_i32_29 = arith.constant 7 : i32
    %115 = arith.subi %c7_i32_29, %c1_i32 : i32
    %116 = arith.index_cast %115 : i32 to index
    %c0_30 = arith.constant 0 : index
    %c0_31 = arith.constant 0 : index
    %117 = vector.load %arg2[%116, %c0_30, %c0_31] : memref<8x2x384xf32, #tpu.memory_space<vmem>>, vector<1x2x384xf32>
    %118 = vector.shape_cast %117 : vector<1x2x384xf32> to vector<2x384xf32>
    %119 = vector.extract_strided_slice %83 {offsets = [0, 384], sizes = [2, 384], strides = [1, 1]} : vector<2x768xf32> to vector<2x384xf32>
    %120 = vector.extract_strided_slice %73 {offsets = [0, 128], sizes = [2, 128], strides = [1, 1]} : vector<2x256xf32> to vector<2x128xf32>
    %121 = vector.extract_strided_slice %118 {offsets = [0, 0], sizes = [2, 128], strides = [1, 1]} : vector<2x384xf32> to vector<2x128xf32>
    %122 = vector.extract_strided_slice %119 {offsets = [0, 0], sizes = [2, 128], strides = [1, 1]} : vector<2x384xf32> to vector<2x128xf32>
    %123 = arith.addf %121, %122 : vector<2x128xf32>
    %124 = arith.negf %123 : vector<2x128xf32>
    %125 = math.exp %124 : vector<2x128xf32>
    %cst_32 = arith.constant 1.000000e+00 : f32
    %126 = vector.broadcast %cst_32 : f32 to vector<2x128xf32>
    %127 = arith.addf %126, %125 : vector<2x128xf32>
    %128 = arith.divf %126, %127 : vector<2x128xf32>
    %129 = vector.extract_strided_slice %118 {offsets = [0, 128], sizes = [2, 128], strides = [1, 1]} : vector<2x384xf32> to vector<2x128xf32>
    %130 = vector.extract_strided_slice %119 {offsets = [0, 128], sizes = [2, 128], strides = [1, 1]} : vector<2x384xf32> to vector<2x128xf32>
    %131 = arith.addf %129, %130 : vector<2x128xf32>
    %132 = arith.negf %131 : vector<2x128xf32>
    %133 = math.exp %132 : vector<2x128xf32>
    %cst_33 = arith.constant 1.000000e+00 : f32
    %134 = vector.broadcast %cst_33 : f32 to vector<2x128xf32>
    %135 = arith.addf %134, %133 : vector<2x128xf32>
    %136 = arith.divf %134, %135 : vector<2x128xf32>
    %137 = vector.extract_strided_slice %118 {offsets = [0, 256], sizes = [2, 128], strides = [1, 1]} : vector<2x384xf32> to vector<2x128xf32>
    %138 = vector.extract_strided_slice %119 {offsets = [0, 256], sizes = [2, 128], strides = [1, 1]} : vector<2x384xf32> to vector<2x128xf32>
    %139 = arith.mulf %128, %138 : vector<2x128xf32>
    %140 = arith.addf %137, %139 : vector<2x128xf32>
    %141 = math.tanh %140 : vector<2x128xf32>
    %cst_34 = arith.constant 1.000000e+00 : f32
    %142 = vector.broadcast %cst_34 : f32 to vector<2x128xf32>
    %143 = arith.subf %142, %136 : vector<2x128xf32>
    %144 = arith.mulf %143, %141 : vector<2x128xf32>
    %145 = arith.mulf %136, %120 : vector<2x128xf32>
    %146 = arith.addf %144, %145 : vector<2x128xf32>
    %147 = tpu.concatenate %114, %146 in 1 : vector<2x128xf32>, vector<2x128xf32> -> vector<2x256xf32>
    %148 = arith.index_cast %c1_i32 : i32 to index
    %c0_35 = arith.constant 0 : index
    %c0_36 = arith.constant 0 : index
    %149 = vector.load %arg5[%148, %c0_35, %c0_36] : memref<8x2x256xf32, #tpu.memory_space<vmem>>, vector<1x2x256xf32>
    %150 = vector.shape_cast %149 : vector<1x2x256xf32> to vector<2x256xf32>
    %151 = vector.shape_cast %147 : vector<2x256xf32> to vector<1x2x256xf32>
    tpu.vector_store %arg5[%148, %c0_35, %c0_36], %151 {strides = array<i32>} : memref<8x2x256xf32, #tpu.memory_space<vmem>>, vector<1x2x256xf32>,
    %c2_i32 = arith.constant 2 : i32
    %152 = arith.truncf %147 : vector<2x256xf32> to vector<2x256xbf16>
    %c0_37 = arith.constant 0 : index
    %c0_38 = arith.constant 0 : index
    %153 = vector.load %arg3[%c0_37, %c0_38] : memref<256x768xbf16, #tpu.memory_space<vmem>>, vector<256x768xbf16>
    %cst_39 = arith.constant dense<0.000000e+00> : vector<2x768xf32>
    %154 = tpu.matmul %152, %153, %cst_39 {dimension_numbers = #tpu.dot_dimension_numbers<[1], [0], [0], [1], [0, 0, 1, 1], [], []>} : vector<2x256xbf16>, vector<256x768xbf16>, vector<2x768xf32> -> vector<2x768xf32>
    %c0_40 = arith.constant 0 : index
    %c0_41 = arith.constant 0 : index
    %155 = vector.load %arg4[%c0_40, %c0_41] : memref<1x768xf32, #tpu.memory_space<vmem>>, vector<1x768xf32>
    %156 = vector.broadcast %155 : vector<1x768xf32> to vector<2x768xf32>
    %157 = arith.addf %154, %156 : vector<2x768xf32>
    %158 = arith.index_cast %c2_i32 : i32 to index
    %c0_42 = arith.constant 0 : index
    %c0_43 = arith.constant 0 : index
    %159 = vector.load %arg1[%158, %c0_42, %c0_43] : memref<8x2x384xf32, #tpu.memory_space<vmem>>, vector<1x2x384xf32>
    %160 = vector.shape_cast %159 : vector<1x2x384xf32> to vector<2x384xf32>
    %161 = vector.extract_strided_slice %157 {offsets = [0, 0], sizes = [2, 384], strides = [1, 1]} : vector<2x768xf32> to vector<2x384xf32>
    %162 = vector.extract_strided_slice %147 {offsets = [0, 0], sizes = [2, 128], strides = [1, 1]} : vector<2x256xf32> to vector<2x128xf32>
    %163 = vector.extract_strided_slice %160 {offsets = [0, 0], sizes = [2, 128], strides = [1, 1]} : vector<2x384xf32> to vector<2x128xf32>
    %164 = vector.extract_strided_slice %161 {offsets = [0, 0], sizes = [2, 128], strides = [1, 1]} : vector<2x384xf32> to vector<2x128xf32>
    %165 = arith.addf %163, %164 : vector<2x128xf32>
    %166 = arith.negf %165 : vector<2x128xf32>
    %167 = math.exp %166 : vector<2x128xf32>
    %cst_44 = arith.constant 1.000000e+00 : f32
    %168 = vector.broadcast %cst_44 : f32 to vector<2x128xf32>
    %169 = arith.addf %168, %167 : vector<2x128xf32>
    %170 = arith.divf %168, %169 : vector<2x128xf32>
    %171 = vector.extract_strided_slice %160 {offsets = [0, 128], sizes = [2, 128], strides = [1, 1]} : vector<2x384xf32> to vector<2x128xf32>
    %172 = vector.extract_strided_slice %161 {offsets = [0, 128], sizes = [2, 128], strides = [1, 1]} : vector<2x384xf32> to vector<2x128xf32>
    %173 = arith.addf %171, %172 : vector<2x128xf32>
    %174 = arith.negf %173 : vector<2x128xf32>
    %175 = math.exp %174 : vector<2x128xf32>
    %cst_45 = arith.constant 1.000000e+00 : f32
    %176 = vector.broadcast %cst_45 : f32 to vector<2x128xf32>
    %177 = arith.addf %176, %175 : vector<2x128xf32>
    %178 = arith.divf %176, %177 : vector<2x128xf32>
    %179 = vector.extract_strided_slice %160 {offsets = [0, 256], sizes = [2, 128], strides = [1, 1]} : vector<2x384xf32> to vector<2x128xf32>
    %180 = vector.extract_strided_slice %161 {offsets = [0, 256], sizes = [2, 128], strides = [1, 1]} : vector<2x384xf32> to vector<2x128xf32>
    %181 = arith.mulf %170, %180 : vector<2x128xf32>
    %182 = arith.addf %179, %181 : vector<2x128xf32>
    %183 = math.tanh %182 : vector<2x128xf32>
    %cst_46 = arith.constant 1.000000e+00 : f32
    %184 = vector.broadcast %cst_46 : f32 to vector<2x128xf32>
    %185 = arith.subf %184, %178 : vector<2x128xf32>
    %186 = arith.mulf %185, %183 : vector<2x128xf32>
    %187 = arith.mulf %178, %162 : vector<2x128xf32>
    %188 = arith.addf %186, %187 : vector<2x128xf32>
    %c7_i32_47 = arith.constant 7 : i32
    %189 = arith.subi %c7_i32_47, %c2_i32 : i32
    %190 = arith.index_cast %189 : i32 to index
    %c0_48 = arith.constant 0 : index
    %c0_49 = arith.constant 0 : index
    %191 = vector.load %arg2[%190, %c0_48, %c0_49] : memref<8x2x384xf32, #tpu.memory_space<vmem>>, vector<1x2x384xf32>
    %192 = vector.shape_cast %191 : vector<1x2x384xf32> to vector<2x384xf32>
    %193 = vector.extract_strided_slice %157 {offsets = [0, 384], sizes = [2, 384], strides = [1, 1]} : vector<2x768xf32> to vector<2x384xf32>
    %194 = vector.extract_strided_slice %147 {offsets = [0, 128], sizes = [2, 128], strides = [1, 1]} : vector<2x256xf32> to vector<2x128xf32>
    %195 = vector.extract_strided_slice %192 {offsets = [0, 0], sizes = [2, 128], strides = [1, 1]} : vector<2x384xf32> to vector<2x128xf32>
    %196 = vector.extract_strided_slice %193 {offsets = [0, 0], sizes = [2, 128], strides = [1, 1]} : vector<2x384xf32> to vector<2x128xf32>
    %197 = arith.addf %195, %196 : vector<2x128xf32>
    %198 = arith.negf %197 : vector<2x128xf32>
    %199 = math.exp %198 : vector<2x128xf32>
    %cst_50 = arith.constant 1.000000e+00 : f32
    %200 = vector.broadcast %cst_50 : f32 to vector<2x128xf32>
    %201 = arith.addf %200, %199 : vector<2x128xf32>
    %202 = arith.divf %200, %201 : vector<2x128xf32>
    %203 = vector.extract_strided_slice %192 {offsets = [0, 128], sizes = [2, 128], strides = [1, 1]} : vector<2x384xf32> to vector<2x128xf32>
    %204 = vector.extract_strided_slice %193 {offsets = [0, 128], sizes = [2, 128], strides = [1, 1]} : vector<2x384xf32> to vector<2x128xf32>
    %205 = arith.addf %203, %204 : vector<2x128xf32>
    %206 = arith.negf %205 : vector<2x128xf32>
    %207 = math.exp %206 : vector<2x128xf32>
    %cst_51 = arith.constant 1.000000e+00 : f32
    %208 = vector.broadcast %cst_51 : f32 to vector<2x128xf32>
    %209 = arith.addf %208, %207 : vector<2x128xf32>
    %210 = arith.divf %208, %209 : vector<2x128xf32>
    %211 = vector.extract_strided_slice %192 {offsets = [0, 256], sizes = [2, 128], strides = [1, 1]} : vector<2x384xf32> to vector<2x128xf32>
    %212 = vector.extract_strided_slice %193 {offsets = [0, 256], sizes = [2, 128], strides = [1, 1]} : vector<2x384xf32> to vector<2x128xf32>
    %213 = arith.mulf %202, %212 : vector<2x128xf32>
    %214 = arith.addf %211, %213 : vector<2x128xf32>
    %215 = math.tanh %214 : vector<2x128xf32>
    %cst_52 = arith.constant 1.000000e+00 : f32
    %216 = vector.broadcast %cst_52 : f32 to vector<2x128xf32>
    %217 = arith.subf %216, %210 : vector<2x128xf32>
    %218 = arith.mulf %217, %215 : vector<2x128xf32>
    %219 = arith.mulf %210, %194 : vector<2x128xf32>
    %220 = arith.addf %218, %219 : vector<2x128xf32>
    %221 = tpu.concatenate %188, %220 in 1 : vector<2x128xf32>, vector<2x128xf32> -> vector<2x256xf32>
    %222 = arith.index_cast %c2_i32 : i32 to index
    %c0_53 = arith.constant 0 : index
    %c0_54 = arith.constant 0 : index
    %223 = vector.load %arg5[%222, %c0_53, %c0_54] : memref<8x2x256xf32, #tpu.memory_space<vmem>>, vector<1x2x256xf32>
    %224 = vector.shape_cast %223 : vector<1x2x256xf32> to vector<2x256xf32>
    %225 = vector.shape_cast %221 : vector<2x256xf32> to vector<1x2x256xf32>
    tpu.vector_store %arg5[%222, %c0_53, %c0_54], %225 {strides = array<i32>} : memref<8x2x256xf32, #tpu.memory_space<vmem>>, vector<1x2x256xf32>,
    %c3_i32 = arith.constant 3 : i32
    %226 = arith.truncf %221 : vector<2x256xf32> to vector<2x256xbf16>
    %c0_55 = arith.constant 0 : index
    %c0_56 = arith.constant 0 : index
    %227 = vector.load %arg3[%c0_55, %c0_56] : memref<256x768xbf16, #tpu.memory_space<vmem>>, vector<256x768xbf16>
    %cst_57 = arith.constant dense<0.000000e+00> : vector<2x768xf32>
    %228 = tpu.matmul %226, %227, %cst_57 {dimension_numbers = #tpu.dot_dimension_numbers<[1], [0], [0], [1], [0, 0, 1, 1], [], []>} : vector<2x256xbf16>, vector<256x768xbf16>, vector<2x768xf32> -> vector<2x768xf32>
    %c0_58 = arith.constant 0 : index
    %c0_59 = arith.constant 0 : index
    %229 = vector.load %arg4[%c0_58, %c0_59] : memref<1x768xf32, #tpu.memory_space<vmem>>, vector<1x768xf32>
    %230 = vector.broadcast %229 : vector<1x768xf32> to vector<2x768xf32>
    %231 = arith.addf %228, %230 : vector<2x768xf32>
    %232 = arith.index_cast %c3_i32 : i32 to index
    %c0_60 = arith.constant 0 : index
    %c0_61 = arith.constant 0 : index
    %233 = vector.load %arg1[%232, %c0_60, %c0_61] : memref<8x2x384xf32, #tpu.memory_space<vmem>>, vector<1x2x384xf32>
    %234 = vector.shape_cast %233 : vector<1x2x384xf32> to vector<2x384xf32>
    %235 = vector.extract_strided_slice %231 {offsets = [0, 0], sizes = [2, 384], strides = [1, 1]} : vector<2x768xf32> to vector<2x384xf32>
    %236 = vector.extract_strided_slice %221 {offsets = [0, 0], sizes = [2, 128], strides = [1, 1]} : vector<2x256xf32> to vector<2x128xf32>
    %237 = vector.extract_strided_slice %234 {offsets = [0, 0], sizes = [2, 128], strides = [1, 1]} : vector<2x384xf32> to vector<2x128xf32>
    %238 = vector.extract_strided_slice %235 {offsets = [0, 0], sizes = [2, 128], strides = [1, 1]} : vector<2x384xf32> to vector<2x128xf32>
    %239 = arith.addf %237, %238 : vector<2x128xf32>
    %240 = arith.negf %239 : vector<2x128xf32>
    %241 = math.exp %240 : vector<2x128xf32>
    %cst_62 = arith.constant 1.000000e+00 : f32
    %242 = vector.broadcast %cst_62 : f32 to vector<2x128xf32>
    %243 = arith.addf %242, %241 : vector<2x128xf32>
    %244 = arith.divf %242, %243 : vector<2x128xf32>
    %245 = vector.extract_strided_slice %234 {offsets = [0, 128], sizes = [2, 128], strides = [1, 1]} : vector<2x384xf32> to vector<2x128xf32>
    %246 = vector.extract_strided_slice %235 {offsets = [0, 128], sizes = [2, 128], strides = [1, 1]} : vector<2x384xf32> to vector<2x128xf32>
    %247 = arith.addf %245, %246 : vector<2x128xf32>
    %248 = arith.negf %247 : vector<2x128xf32>
    %249 = math.exp %248 : vector<2x128xf32>
    %cst_63 = arith.constant 1.000000e+00 : f32
    %250 = vector.broadcast %cst_63 : f32 to vector<2x128xf32>
    %251 = arith.addf %250, %249 : vector<2x128xf32>
    %252 = arith.divf %250, %251 : vector<2x128xf32>
    %253 = vector.extract_strided_slice %234 {offsets = [0, 256], sizes = [2, 128], strides = [1, 1]} : vector<2x384xf32> to vector<2x128xf32>
    %254 = vector.extract_strided_slice %235 {offsets = [0, 256], sizes = [2, 128], strides = [1, 1]} : vector<2x384xf32> to vector<2x128xf32>
    %255 = arith.mulf %244, %254 : vector<2x128xf32>
    %256 = arith.addf %253, %255 : vector<2x128xf32>
    %257 = math.tanh %256 : vector<2x128xf32>
    %cst_64 = arith.constant 1.000000e+00 : f32
    %258 = vector.broadcast %cst_64 : f32 to vector<2x128xf32>
    %259 = arith.subf %258, %252 : vector<2x128xf32>
    %260 = arith.mulf %259, %257 : vector<2x128xf32>
    %261 = arith.mulf %252, %236 : vector<2x128xf32>
    %262 = arith.addf %260, %261 : vector<2x128xf32>
    %c7_i32_65 = arith.constant 7 : i32
    %263 = arith.subi %c7_i32_65, %c3_i32 : i32
    %264 = arith.index_cast %263 : i32 to index
    %c0_66 = arith.constant 0 : index
    %c0_67 = arith.constant 0 : index
    %265 = vector.load %arg2[%264, %c0_66, %c0_67] : memref<8x2x384xf32, #tpu.memory_space<vmem>>, vector<1x2x384xf32>
    %266 = vector.shape_cast %265 : vector<1x2x384xf32> to vector<2x384xf32>
    %267 = vector.extract_strided_slice %231 {offsets = [0, 384], sizes = [2, 384], strides = [1, 1]} : vector<2x768xf32> to vector<2x384xf32>
    %268 = vector.extract_strided_slice %221 {offsets = [0, 128], sizes = [2, 128], strides = [1, 1]} : vector<2x256xf32> to vector<2x128xf32>
    %269 = vector.extract_strided_slice %266 {offsets = [0, 0], sizes = [2, 128], strides = [1, 1]} : vector<2x384xf32> to vector<2x128xf32>
    %270 = vector.extract_strided_slice %267 {offsets = [0, 0], sizes = [2, 128], strides = [1, 1]} : vector<2x384xf32> to vector<2x128xf32>
    %271 = arith.addf %269, %270 : vector<2x128xf32>
    %272 = arith.negf %271 : vector<2x128xf32>
    %273 = math.exp %272 : vector<2x128xf32>
    %cst_68 = arith.constant 1.000000e+00 : f32
    %274 = vector.broadcast %cst_68 : f32 to vector<2x128xf32>
    %275 = arith.addf %274, %273 : vector<2x128xf32>
    %276 = arith.divf %274, %275 : vector<2x128xf32>
    %277 = vector.extract_strided_slice %266 {offsets = [0, 128], sizes = [2, 128], strides = [1, 1]} : vector<2x384xf32> to vector<2x128xf32>
    %278 = vector.extract_strided_slice %267 {offsets = [0, 128], sizes = [2, 128], strides = [1, 1]} : vector<2x384xf32> to vector<2x128xf32>
    %279 = arith.addf %277, %278 : vector<2x128xf32>
    %280 = arith.negf %279 : vector<2x128xf32>
    %281 = math.exp %280 : vector<2x128xf32>
    %cst_69 = arith.constant 1.000000e+00 : f32
    %282 = vector.broadcast %cst_69 : f32 to vector<2x128xf32>
    %283 = arith.addf %282, %281 : vector<2x128xf32>
    %284 = arith.divf %282, %283 : vector<2x128xf32>
    %285 = vector.extract_strided_slice %266 {offsets = [0, 256], sizes = [2, 128], strides = [1, 1]} : vector<2x384xf32> to vector<2x128xf32>
    %286 = vector.extract_strided_slice %267 {offsets = [0, 256], sizes = [2, 128], strides = [1, 1]} : vector<2x384xf32> to vector<2x128xf32>
    %287 = arith.mulf %276, %286 : vector<2x128xf32>
    %288 = arith.addf %285, %287 : vector<2x128xf32>
    %289 = math.tanh %288 : vector<2x128xf32>
    %cst_70 = arith.constant 1.000000e+00 : f32
    %290 = vector.broadcast %cst_70 : f32 to vector<2x128xf32>
    %291 = arith.subf %290, %284 : vector<2x128xf32>
    %292 = arith.mulf %291, %289 : vector<2x128xf32>
    %293 = arith.mulf %284, %268 : vector<2x128xf32>
    %294 = arith.addf %292, %293 : vector<2x128xf32>
    %295 = tpu.concatenate %262, %294 in 1 : vector<2x128xf32>, vector<2x128xf32> -> vector<2x256xf32>
    %296 = arith.index_cast %c3_i32 : i32 to index
    %c0_71 = arith.constant 0 : index
    %c0_72 = arith.constant 0 : index
    %297 = vector.load %arg5[%296, %c0_71, %c0_72] : memref<8x2x256xf32, #tpu.memory_space<vmem>>, vector<1x2x256xf32>
    %298 = vector.shape_cast %297 : vector<1x2x256xf32> to vector<2x256xf32>
    %299 = vector.shape_cast %295 : vector<2x256xf32> to vector<1x2x256xf32>
    tpu.vector_store %arg5[%296, %c0_71, %c0_72], %299 {strides = array<i32>} : memref<8x2x256xf32, #tpu.memory_space<vmem>>, vector<1x2x256xf32>,
    %c4_i32 = arith.constant 4 : i32
    %300 = arith.truncf %295 : vector<2x256xf32> to vector<2x256xbf16>
    %c0_73 = arith.constant 0 : index
    %c0_74 = arith.constant 0 : index
    %301 = vector.load %arg3[%c0_73, %c0_74] : memref<256x768xbf16, #tpu.memory_space<vmem>>, vector<256x768xbf16>
    %cst_75 = arith.constant dense<0.000000e+00> : vector<2x768xf32>
    %302 = tpu.matmul %300, %301, %cst_75 {dimension_numbers = #tpu.dot_dimension_numbers<[1], [0], [0], [1], [0, 0, 1, 1], [], []>} : vector<2x256xbf16>, vector<256x768xbf16>, vector<2x768xf32> -> vector<2x768xf32>
    %c0_76 = arith.constant 0 : index
    %c0_77 = arith.constant 0 : index
    %303 = vector.load %arg4[%c0_76, %c0_77] : memref<1x768xf32, #tpu.memory_space<vmem>>, vector<1x768xf32>
    %304 = vector.broadcast %303 : vector<1x768xf32> to vector<2x768xf32>
    %305 = arith.addf %302, %304 : vector<2x768xf32>
    %306 = arith.index_cast %c4_i32 : i32 to index
    %c0_78 = arith.constant 0 : index
    %c0_79 = arith.constant 0 : index
    %307 = vector.load %arg1[%306, %c0_78, %c0_79] : memref<8x2x384xf32, #tpu.memory_space<vmem>>, vector<1x2x384xf32>
    %308 = vector.shape_cast %307 : vector<1x2x384xf32> to vector<2x384xf32>
    %309 = vector.extract_strided_slice %305 {offsets = [0, 0], sizes = [2, 384], strides = [1, 1]} : vector<2x768xf32> to vector<2x384xf32>
    %310 = vector.extract_strided_slice %295 {offsets = [0, 0], sizes = [2, 128], strides = [1, 1]} : vector<2x256xf32> to vector<2x128xf32>
    %311 = vector.extract_strided_slice %308 {offsets = [0, 0], sizes = [2, 128], strides = [1, 1]} : vector<2x384xf32> to vector<2x128xf32>
    %312 = vector.extract_strided_slice %309 {offsets = [0, 0], sizes = [2, 128], strides = [1, 1]} : vector<2x384xf32> to vector<2x128xf32>
    %313 = arith.addf %311, %312 : vector<2x128xf32>
    %314 = arith.negf %313 : vector<2x128xf32>
    %315 = math.exp %314 : vector<2x128xf32>
    %cst_80 = arith.constant 1.000000e+00 : f32
    %316 = vector.broadcast %cst_80 : f32 to vector<2x128xf32>
    %317 = arith.addf %316, %315 : vector<2x128xf32>
    %318 = arith.divf %316, %317 : vector<2x128xf32>
    %319 = vector.extract_strided_slice %308 {offsets = [0, 128], sizes = [2, 128], strides = [1, 1]} : vector<2x384xf32> to vector<2x128xf32>
    %320 = vector.extract_strided_slice %309 {offsets = [0, 128], sizes = [2, 128], strides = [1, 1]} : vector<2x384xf32> to vector<2x128xf32>
    %321 = arith.addf %319, %320 : vector<2x128xf32>
    %322 = arith.negf %321 : vector<2x128xf32>
    %323 = math.exp %322 : vector<2x128xf32>
    %cst_81 = arith.constant 1.000000e+00 : f32
    %324 = vector.broadcast %cst_81 : f32 to vector<2x128xf32>
    %325 = arith.addf %324, %323 : vector<2x128xf32>
    %326 = arith.divf %324, %325 : vector<2x128xf32>
    %327 = vector.extract_strided_slice %308 {offsets = [0, 256], sizes = [2, 128], strides = [1, 1]} : vector<2x384xf32> to vector<2x128xf32>
    %328 = vector.extract_strided_slice %309 {offsets = [0, 256], sizes = [2, 128], strides = [1, 1]} : vector<2x384xf32> to vector<2x128xf32>
    %329 = arith.mulf %318, %328 : vector<2x128xf32>
    %330 = arith.addf %327, %329 : vector<2x128xf32>
    %331 = math.tanh %330 : vector<2x128xf32>
    %cst_82 = arith.constant 1.000000e+00 : f32
    %332 = vector.broadcast %cst_82 : f32 to vector<2x128xf32>
    %333 = arith.subf %332, %326 : vector<2x128xf32>
    %334 = arith.mulf %333, %331 : vector<2x128xf32>
    %335 = arith.mulf %326, %310 : vector<2x128xf32>
    %336 = arith.addf %334, %335 : vector<2x128xf32>
    %c7_i32_83 = arith.constant 7 : i32
    %337 = arith.subi %c7_i32_83, %c4_i32 : i32
    %338 = arith.index_cast %337 : i32 to index
    %c0_84 = arith.constant 0 : index
    %c0_85 = arith.constant 0 : index
    %339 = vector.load %arg2[%338, %c0_84, %c0_85] : memref<8x2x384xf32, #tpu.memory_space<vmem>>, vector<1x2x384xf32>
    %340 = vector.shape_cast %339 : vector<1x2x384xf32> to vector<2x384xf32>
    %341 = vector.extract_strided_slice %305 {offsets = [0, 384], sizes = [2, 384], strides = [1, 1]} : vector<2x768xf32> to vector<2x384xf32>
    %342 = vector.extract_strided_slice %295 {offsets = [0, 128], sizes = [2, 128], strides = [1, 1]} : vector<2x256xf32> to vector<2x128xf32>
    %343 = vector.extract_strided_slice %340 {offsets = [0, 0], sizes = [2, 128], strides = [1, 1]} : vector<2x384xf32> to vector<2x128xf32>
    %344 = vector.extract_strided_slice %341 {offsets = [0, 0], sizes = [2, 128], strides = [1, 1]} : vector<2x384xf32> to vector<2x128xf32>
    %345 = arith.addf %343, %344 : vector<2x128xf32>
    %346 = arith.negf %345 : vector<2x128xf32>
    %347 = math.exp %346 : vector<2x128xf32>
    %cst_86 = arith.constant 1.000000e+00 : f32
    %348 = vector.broadcast %cst_86 : f32 to vector<2x128xf32>
    %349 = arith.addf %348, %347 : vector<2x128xf32>
    %350 = arith.divf %348, %349 : vector<2x128xf32>
    %351 = vector.extract_strided_slice %340 {offsets = [0, 128], sizes = [2, 128], strides = [1, 1]} : vector<2x384xf32> to vector<2x128xf32>
    %352 = vector.extract_strided_slice %341 {offsets = [0, 128], sizes = [2, 128], strides = [1, 1]} : vector<2x384xf32> to vector<2x128xf32>
    %353 = arith.addf %351, %352 : vector<2x128xf32>
    %354 = arith.negf %353 : vector<2x128xf32>
    %355 = math.exp %354 : vector<2x128xf32>
    %cst_87 = arith.constant 1.000000e+00 : f32
    %356 = vector.broadcast %cst_87 : f32 to vector<2x128xf32>
    %357 = arith.addf %356, %355 : vector<2x128xf32>
    %358 = arith.divf %356, %357 : vector<2x128xf32>
    %359 = vector.extract_strided_slice %340 {offsets = [0, 256], sizes = [2, 128], strides = [1, 1]} : vector<2x384xf32> to vector<2x128xf32>
    %360 = vector.extract_strided_slice %341 {offsets = [0, 256], sizes = [2, 128], strides = [1, 1]} : vector<2x384xf32> to vector<2x128xf32>
    %361 = arith.mulf %350, %360 : vector<2x128xf32>
    %362 = arith.addf %359, %361 : vector<2x128xf32>
    %363 = math.tanh %362 : vector<2x128xf32>
    %cst_88 = arith.constant 1.000000e+00 : f32
    %364 = vector.broadcast %cst_88 : f32 to vector<2x128xf32>
    %365 = arith.subf %364, %358 : vector<2x128xf32>
    %366 = arith.mulf %365, %363 : vector<2x128xf32>
    %367 = arith.mulf %358, %342 : vector<2x128xf32>
    %368 = arith.addf %366, %367 : vector<2x128xf32>
    %369 = tpu.concatenate %336, %368 in 1 : vector<2x128xf32>, vector<2x128xf32> -> vector<2x256xf32>
    %370 = arith.index_cast %c4_i32 : i32 to index
    %c0_89 = arith.constant 0 : index
    %c0_90 = arith.constant 0 : index
    %371 = vector.load %arg5[%370, %c0_89, %c0_90] : memref<8x2x256xf32, #tpu.memory_space<vmem>>, vector<1x2x256xf32>
    %372 = vector.shape_cast %371 : vector<1x2x256xf32> to vector<2x256xf32>
    %373 = vector.shape_cast %369 : vector<2x256xf32> to vector<1x2x256xf32>
    tpu.vector_store %arg5[%370, %c0_89, %c0_90], %373 {strides = array<i32>} : memref<8x2x256xf32, #tpu.memory_space<vmem>>, vector<1x2x256xf32>,
    %c5_i32 = arith.constant 5 : i32
    %374 = arith.truncf %369 : vector<2x256xf32> to vector<2x256xbf16>
    %c0_91 = arith.constant 0 : index
    %c0_92 = arith.constant 0 : index
    %375 = vector.load %arg3[%c0_91, %c0_92] : memref<256x768xbf16, #tpu.memory_space<vmem>>, vector<256x768xbf16>
    %cst_93 = arith.constant dense<0.000000e+00> : vector<2x768xf32>
    %376 = tpu.matmul %374, %375, %cst_93 {dimension_numbers = #tpu.dot_dimension_numbers<[1], [0], [0], [1], [0, 0, 1, 1], [], []>} : vector<2x256xbf16>, vector<256x768xbf16>, vector<2x768xf32> -> vector<2x768xf32>
    %c0_94 = arith.constant 0 : index
    %c0_95 = arith.constant 0 : index
    %377 = vector.load %arg4[%c0_94, %c0_95] : memref<1x768xf32, #tpu.memory_space<vmem>>, vector<1x768xf32>
    %378 = vector.broadcast %377 : vector<1x768xf32> to vector<2x768xf32>
    %379 = arith.addf %376, %378 : vector<2x768xf32>
    %380 = arith.index_cast %c5_i32 : i32 to index
    %c0_96 = arith.constant 0 : index
    %c0_97 = arith.constant 0 : index
    %381 = vector.load %arg1[%380, %c0_96, %c0_97] : memref<8x2x384xf32, #tpu.memory_space<vmem>>, vector<1x2x384xf32>
    %382 = vector.shape_cast %381 : vector<1x2x384xf32> to vector<2x384xf32>
    %383 = vector.extract_strided_slice %379 {offsets = [0, 0], sizes = [2, 384], strides = [1, 1]} : vector<2x768xf32> to vector<2x384xf32>
    %384 = vector.extract_strided_slice %369 {offsets = [0, 0], sizes = [2, 128], strides = [1, 1]} : vector<2x256xf32> to vector<2x128xf32>
    %385 = vector.extract_strided_slice %382 {offsets = [0, 0], sizes = [2, 128], strides = [1, 1]} : vector<2x384xf32> to vector<2x128xf32>
    %386 = vector.extract_strided_slice %383 {offsets = [0, 0], sizes = [2, 128], strides = [1, 1]} : vector<2x384xf32> to vector<2x128xf32>
    %387 = arith.addf %385, %386 : vector<2x128xf32>
    %388 = arith.negf %387 : vector<2x128xf32>
    %389 = math.exp %388 : vector<2x128xf32>
    %cst_98 = arith.constant 1.000000e+00 : f32
    %390 = vector.broadcast %cst_98 : f32 to vector<2x128xf32>
    %391 = arith.addf %390, %389 : vector<2x128xf32>
    %392 = arith.divf %390, %391 : vector<2x128xf32>
    %393 = vector.extract_strided_slice %382 {offsets = [0, 128], sizes = [2, 128], strides = [1, 1]} : vector<2x384xf32> to vector<2x128xf32>
    %394 = vector.extract_strided_slice %383 {offsets = [0, 128], sizes = [2, 128], strides = [1, 1]} : vector<2x384xf32> to vector<2x128xf32>
    %395 = arith.addf %393, %394 : vector<2x128xf32>
    %396 = arith.negf %395 : vector<2x128xf32>
    %397 = math.exp %396 : vector<2x128xf32>
    %cst_99 = arith.constant 1.000000e+00 : f32
    %398 = vector.broadcast %cst_99 : f32 to vector<2x128xf32>
    %399 = arith.addf %398, %397 : vector<2x128xf32>
    %400 = arith.divf %398, %399 : vector<2x128xf32>
    %401 = vector.extract_strided_slice %382 {offsets = [0, 256], sizes = [2, 128], strides = [1, 1]} : vector<2x384xf32> to vector<2x128xf32>
    %402 = vector.extract_strided_slice %383 {offsets = [0, 256], sizes = [2, 128], strides = [1, 1]} : vector<2x384xf32> to vector<2x128xf32>
    %403 = arith.mulf %392, %402 : vector<2x128xf32>
    %404 = arith.addf %401, %403 : vector<2x128xf32>
    %405 = math.tanh %404 : vector<2x128xf32>
    %cst_100 = arith.constant 1.000000e+00 : f32
    %406 = vector.broadcast %cst_100 : f32 to vector<2x128xf32>
    %407 = arith.subf %406, %400 : vector<2x128xf32>
    %408 = arith.mulf %407, %405 : vector<2x128xf32>
    %409 = arith.mulf %400, %384 : vector<2x128xf32>
    %410 = arith.addf %408, %409 : vector<2x128xf32>
    %c7_i32_101 = arith.constant 7 : i32
    %411 = arith.subi %c7_i32_101, %c5_i32 : i32
    %412 = arith.index_cast %411 : i32 to index
    %c0_102 = arith.constant 0 : index
    %c0_103 = arith.constant 0 : index
    %413 = vector.load %arg2[%412, %c0_102, %c0_103] : memref<8x2x384xf32, #tpu.memory_space<vmem>>, vector<1x2x384xf32>
    %414 = vector.shape_cast %413 : vector<1x2x384xf32> to vector<2x384xf32>
    %415 = vector.extract_strided_slice %379 {offsets = [0, 384], sizes = [2, 384], strides = [1, 1]} : vector<2x768xf32> to vector<2x384xf32>
    %416 = vector.extract_strided_slice %369 {offsets = [0, 128], sizes = [2, 128], strides = [1, 1]} : vector<2x256xf32> to vector<2x128xf32>
    %417 = vector.extract_strided_slice %414 {offsets = [0, 0], sizes = [2, 128], strides = [1, 1]} : vector<2x384xf32> to vector<2x128xf32>
    %418 = vector.extract_strided_slice %415 {offsets = [0, 0], sizes = [2, 128], strides = [1, 1]} : vector<2x384xf32> to vector<2x128xf32>
    %419 = arith.addf %417, %418 : vector<2x128xf32>
    %420 = arith.negf %419 : vector<2x128xf32>
    %421 = math.exp %420 : vector<2x128xf32>
    %cst_104 = arith.constant 1.000000e+00 : f32
    %422 = vector.broadcast %cst_104 : f32 to vector<2x128xf32>
    %423 = arith.addf %422, %421 : vector<2x128xf32>
    %424 = arith.divf %422, %423 : vector<2x128xf32>
    %425 = vector.extract_strided_slice %414 {offsets = [0, 128], sizes = [2, 128], strides = [1, 1]} : vector<2x384xf32> to vector<2x128xf32>
    %426 = vector.extract_strided_slice %415 {offsets = [0, 128], sizes = [2, 128], strides = [1, 1]} : vector<2x384xf32> to vector<2x128xf32>
    %427 = arith.addf %425, %426 : vector<2x128xf32>
    %428 = arith.negf %427 : vector<2x128xf32>
    %429 = math.exp %428 : vector<2x128xf32>
    %cst_105 = arith.constant 1.000000e+00 : f32
    %430 = vector.broadcast %cst_105 : f32 to vector<2x128xf32>
    %431 = arith.addf %430, %429 : vector<2x128xf32>
    %432 = arith.divf %430, %431 : vector<2x128xf32>
    %433 = vector.extract_strided_slice %414 {offsets = [0, 256], sizes = [2, 128], strides = [1, 1]} : vector<2x384xf32> to vector<2x128xf32>
    %434 = vector.extract_strided_slice %415 {offsets = [0, 256], sizes = [2, 128], strides = [1, 1]} : vector<2x384xf32> to vector<2x128xf32>
    %435 = arith.mulf %424, %434 : vector<2x128xf32>
    %436 = arith.addf %433, %435 : vector<2x128xf32>
    %437 = math.tanh %436 : vector<2x128xf32>
    %cst_106 = arith.constant 1.000000e+00 : f32
    %438 = vector.broadcast %cst_106 : f32 to vector<2x128xf32>
    %439 = arith.subf %438, %432 : vector<2x128xf32>
    %440 = arith.mulf %439, %437 : vector<2x128xf32>
    %441 = arith.mulf %432, %416 : vector<2x128xf32>
    %442 = arith.addf %440, %441 : vector<2x128xf32>
    %443 = tpu.concatenate %410, %442 in 1 : vector<2x128xf32>, vector<2x128xf32> -> vector<2x256xf32>
    %444 = arith.index_cast %c5_i32 : i32 to index
    %c0_107 = arith.constant 0 : index
    %c0_108 = arith.constant 0 : index
    %445 = vector.load %arg5[%444, %c0_107, %c0_108] : memref<8x2x256xf32, #tpu.memory_space<vmem>>, vector<1x2x256xf32>
    %446 = vector.shape_cast %445 : vector<1x2x256xf32> to vector<2x256xf32>
    %447 = vector.shape_cast %443 : vector<2x256xf32> to vector<1x2x256xf32>
    tpu.vector_store %arg5[%444, %c0_107, %c0_108], %447 {strides = array<i32>} : memref<8x2x256xf32, #tpu.memory_space<vmem>>, vector<1x2x256xf32>,
    %c6_i32 = arith.constant 6 : i32
    %448 = arith.truncf %443 : vector<2x256xf32> to vector<2x256xbf16>
    %c0_109 = arith.constant 0 : index
    %c0_110 = arith.constant 0 : index
    %449 = vector.load %arg3[%c0_109, %c0_110] : memref<256x768xbf16, #tpu.memory_space<vmem>>, vector<256x768xbf16>
    %cst_111 = arith.constant dense<0.000000e+00> : vector<2x768xf32>
    %450 = tpu.matmul %448, %449, %cst_111 {dimension_numbers = #tpu.dot_dimension_numbers<[1], [0], [0], [1], [0, 0, 1, 1], [], []>} : vector<2x256xbf16>, vector<256x768xbf16>, vector<2x768xf32> -> vector<2x768xf32>
    %c0_112 = arith.constant 0 : index
    %c0_113 = arith.constant 0 : index
    %451 = vector.load %arg4[%c0_112, %c0_113] : memref<1x768xf32, #tpu.memory_space<vmem>>, vector<1x768xf32>
    %452 = vector.broadcast %451 : vector<1x768xf32> to vector<2x768xf32>
    %453 = arith.addf %450, %452 : vector<2x768xf32>
    %454 = arith.index_cast %c6_i32 : i32 to index
    %c0_114 = arith.constant 0 : index
    %c0_115 = arith.constant 0 : index
    %455 = vector.load %arg1[%454, %c0_114, %c0_115] : memref<8x2x384xf32, #tpu.memory_space<vmem>>, vector<1x2x384xf32>
    %456 = vector.shape_cast %455 : vector<1x2x384xf32> to vector<2x384xf32>
    %457 = vector.extract_strided_slice %453 {offsets = [0, 0], sizes = [2, 384], strides = [1, 1]} : vector<2x768xf32> to vector<2x384xf32>
    %458 = vector.extract_strided_slice %443 {offsets = [0, 0], sizes = [2, 128], strides = [1, 1]} : vector<2x256xf32> to vector<2x128xf32>
    %459 = vector.extract_strided_slice %456 {offsets = [0, 0], sizes = [2, 128], strides = [1, 1]} : vector<2x384xf32> to vector<2x128xf32>
    %460 = vector.extract_strided_slice %457 {offsets = [0, 0], sizes = [2, 128], strides = [1, 1]} : vector<2x384xf32> to vector<2x128xf32>
    %461 = arith.addf %459, %460 : vector<2x128xf32>
    %462 = arith.negf %461 : vector<2x128xf32>
    %463 = math.exp %462 : vector<2x128xf32>
    %cst_116 = arith.constant 1.000000e+00 : f32
    %464 = vector.broadcast %cst_116 : f32 to vector<2x128xf32>
    %465 = arith.addf %464, %463 : vector<2x128xf32>
    %466 = arith.divf %464, %465 : vector<2x128xf32>
    %467 = vector.extract_strided_slice %456 {offsets = [0, 128], sizes = [2, 128], strides = [1, 1]} : vector<2x384xf32> to vector<2x128xf32>
    %468 = vector.extract_strided_slice %457 {offsets = [0, 128], sizes = [2, 128], strides = [1, 1]} : vector<2x384xf32> to vector<2x128xf32>
    %469 = arith.addf %467, %468 : vector<2x128xf32>
    %470 = arith.negf %469 : vector<2x128xf32>
    %471 = math.exp %470 : vector<2x128xf32>
    %cst_117 = arith.constant 1.000000e+00 : f32
    %472 = vector.broadcast %cst_117 : f32 to vector<2x128xf32>
    %473 = arith.addf %472, %471 : vector<2x128xf32>
    %474 = arith.divf %472, %473 : vector<2x128xf32>
    %475 = vector.extract_strided_slice %456 {offsets = [0, 256], sizes = [2, 128], strides = [1, 1]} : vector<2x384xf32> to vector<2x128xf32>
    %476 = vector.extract_strided_slice %457 {offsets = [0, 256], sizes = [2, 128], strides = [1, 1]} : vector<2x384xf32> to vector<2x128xf32>
    %477 = arith.mulf %466, %476 : vector<2x128xf32>
    %478 = arith.addf %475, %477 : vector<2x128xf32>
    %479 = math.tanh %478 : vector<2x128xf32>
    %cst_118 = arith.constant 1.000000e+00 : f32
    %480 = vector.broadcast %cst_118 : f32 to vector<2x128xf32>
    %481 = arith.subf %480, %474 : vector<2x128xf32>
    %482 = arith.mulf %481, %479 : vector<2x128xf32>
    %483 = arith.mulf %474, %458 : vector<2x128xf32>
    %484 = arith.addf %482, %483 : vector<2x128xf32>
    %c7_i32_119 = arith.constant 7 : i32
    %485 = arith.subi %c7_i32_119, %c6_i32 : i32
    %486 = arith.index_cast %485 : i32 to index
    %c0_120 = arith.constant 0 : index
    %c0_121 = arith.constant 0 : index
    %487 = vector.load %arg2[%486, %c0_120, %c0_121] : memref<8x2x384xf32, #tpu.memory_space<vmem>>, vector<1x2x384xf32>
    %488 = vector.shape_cast %487 : vector<1x2x384xf32> to vector<2x384xf32>
    %489 = vector.extract_strided_slice %453 {offsets = [0, 384], sizes = [2, 384], strides = [1, 1]} : vector<2x768xf32> to vector<2x384xf32>
    %490 = vector.extract_strided_slice %443 {offsets = [0, 128], sizes = [2, 128], strides = [1, 1]} : vector<2x256xf32> to vector<2x128xf32>
    %491 = vector.extract_strided_slice %488 {offsets = [0, 0], sizes = [2, 128], strides = [1, 1]} : vector<2x384xf32> to vector<2x128xf32>
    %492 = vector.extract_strided_slice %489 {offsets = [0, 0], sizes = [2, 128], strides = [1, 1]} : vector<2x384xf32> to vector<2x128xf32>
    %493 = arith.addf %491, %492 : vector<2x128xf32>
    %494 = arith.negf %493 : vector<2x128xf32>
    %495 = math.exp %494 : vector<2x128xf32>
    %cst_122 = arith.constant 1.000000e+00 : f32
    %496 = vector.broadcast %cst_122 : f32 to vector<2x128xf32>
    %497 = arith.addf %496, %495 : vector<2x128xf32>
    %498 = arith.divf %496, %497 : vector<2x128xf32>
    %499 = vector.extract_strided_slice %488 {offsets = [0, 128], sizes = [2, 128], strides = [1, 1]} : vector<2x384xf32> to vector<2x128xf32>
    %500 = vector.extract_strided_slice %489 {offsets = [0, 128], sizes = [2, 128], strides = [1, 1]} : vector<2x384xf32> to vector<2x128xf32>
    %501 = arith.addf %499, %500 : vector<2x128xf32>
    %502 = arith.negf %501 : vector<2x128xf32>
    %503 = math.exp %502 : vector<2x128xf32>
    %cst_123 = arith.constant 1.000000e+00 : f32
    %504 = vector.broadcast %cst_123 : f32 to vector<2x128xf32>
    %505 = arith.addf %504, %503 : vector<2x128xf32>
    %506 = arith.divf %504, %505 : vector<2x128xf32>
    %507 = vector.extract_strided_slice %488 {offsets = [0, 256], sizes = [2, 128], strides = [1, 1]} : vector<2x384xf32> to vector<2x128xf32>
    %508 = vector.extract_strided_slice %489 {offsets = [0, 256], sizes = [2, 128], strides = [1, 1]} : vector<2x384xf32> to vector<2x128xf32>
    %509 = arith.mulf %498, %508 : vector<2x128xf32>
    %510 = arith.addf %507, %509 : vector<2x128xf32>
    %511 = math.tanh %510 : vector<2x128xf32>
    %cst_124 = arith.constant 1.000000e+00 : f32
    %512 = vector.broadcast %cst_124 : f32 to vector<2x128xf32>
    %513 = arith.subf %512, %506 : vector<2x128xf32>
    %514 = arith.mulf %513, %511 : vector<2x128xf32>
    %515 = arith.mulf %506, %490 : vector<2x128xf32>
    %516 = arith.addf %514, %515 : vector<2x128xf32>
    %517 = tpu.concatenate %484, %516 in 1 : vector<2x128xf32>, vector<2x128xf32> -> vector<2x256xf32>
    %518 = arith.index_cast %c6_i32 : i32 to index
    %c0_125 = arith.constant 0 : index
    %c0_126 = arith.constant 0 : index
    %519 = vector.load %arg5[%518, %c0_125, %c0_126] : memref<8x2x256xf32, #tpu.memory_space<vmem>>, vector<1x2x256xf32>
    %520 = vector.shape_cast %519 : vector<1x2x256xf32> to vector<2x256xf32>
    %521 = vector.shape_cast %517 : vector<2x256xf32> to vector<1x2x256xf32>
    tpu.vector_store %arg5[%518, %c0_125, %c0_126], %521 {strides = array<i32>} : memref<8x2x256xf32, #tpu.memory_space<vmem>>, vector<1x2x256xf32>,
    %c7_i32_127 = arith.constant 7 : i32
    %522 = arith.truncf %517 : vector<2x256xf32> to vector<2x256xbf16>
    %c0_128 = arith.constant 0 : index
    %c0_129 = arith.constant 0 : index
    %523 = vector.load %arg3[%c0_128, %c0_129] : memref<256x768xbf16, #tpu.memory_space<vmem>>, vector<256x768xbf16>
    %cst_130 = arith.constant dense<0.000000e+00> : vector<2x768xf32>
    %524 = tpu.matmul %522, %523, %cst_130 {dimension_numbers = #tpu.dot_dimension_numbers<[1], [0], [0], [1], [0, 0, 1, 1], [], []>} : vector<2x256xbf16>, vector<256x768xbf16>, vector<2x768xf32> -> vector<2x768xf32>
    %c0_131 = arith.constant 0 : index
    %c0_132 = arith.constant 0 : index
    %525 = vector.load %arg4[%c0_131, %c0_132] : memref<1x768xf32, #tpu.memory_space<vmem>>, vector<1x768xf32>
    %526 = vector.broadcast %525 : vector<1x768xf32> to vector<2x768xf32>
    %527 = arith.addf %524, %526 : vector<2x768xf32>
    %528 = arith.index_cast %c7_i32_127 : i32 to index
    %c0_133 = arith.constant 0 : index
    %c0_134 = arith.constant 0 : index
    %529 = vector.load %arg1[%528, %c0_133, %c0_134] : memref<8x2x384xf32, #tpu.memory_space<vmem>>, vector<1x2x384xf32>
    %530 = vector.shape_cast %529 : vector<1x2x384xf32> to vector<2x384xf32>
    %531 = vector.extract_strided_slice %527 {offsets = [0, 0], sizes = [2, 384], strides = [1, 1]} : vector<2x768xf32> to vector<2x384xf32>
    %532 = vector.extract_strided_slice %517 {offsets = [0, 0], sizes = [2, 128], strides = [1, 1]} : vector<2x256xf32> to vector<2x128xf32>
    %533 = vector.extract_strided_slice %530 {offsets = [0, 0], sizes = [2, 128], strides = [1, 1]} : vector<2x384xf32> to vector<2x128xf32>
    %534 = vector.extract_strided_slice %531 {offsets = [0, 0], sizes = [2, 128], strides = [1, 1]} : vector<2x384xf32> to vector<2x128xf32>
    %535 = arith.addf %533, %534 : vector<2x128xf32>
    %536 = arith.negf %535 : vector<2x128xf32>
    %537 = math.exp %536 : vector<2x128xf32>
    %cst_135 = arith.constant 1.000000e+00 : f32
    %538 = vector.broadcast %cst_135 : f32 to vector<2x128xf32>
    %539 = arith.addf %538, %537 : vector<2x128xf32>
    %540 = arith.divf %538, %539 : vector<2x128xf32>
    %541 = vector.extract_strided_slice %530 {offsets = [0, 128], sizes = [2, 128], strides = [1, 1]} : vector<2x384xf32> to vector<2x128xf32>
    %542 = vector.extract_strided_slice %531 {offsets = [0, 128], sizes = [2, 128], strides = [1, 1]} : vector<2x384xf32> to vector<2x128xf32>
    %543 = arith.addf %541, %542 : vector<2x128xf32>
    %544 = arith.negf %543 : vector<2x128xf32>
    %545 = math.exp %544 : vector<2x128xf32>
    %cst_136 = arith.constant 1.000000e+00 : f32
    %546 = vector.broadcast %cst_136 : f32 to vector<2x128xf32>
    %547 = arith.addf %546, %545 : vector<2x128xf32>
    %548 = arith.divf %546, %547 : vector<2x128xf32>
    %549 = vector.extract_strided_slice %530 {offsets = [0, 256], sizes = [2, 128], strides = [1, 1]} : vector<2x384xf32> to vector<2x128xf32>
    %550 = vector.extract_strided_slice %531 {offsets = [0, 256], sizes = [2, 128], strides = [1, 1]} : vector<2x384xf32> to vector<2x128xf32>
    %551 = arith.mulf %540, %550 : vector<2x128xf32>
    %552 = arith.addf %549, %551 : vector<2x128xf32>
    %553 = math.tanh %552 : vector<2x128xf32>
    %cst_137 = arith.constant 1.000000e+00 : f32
    %554 = vector.broadcast %cst_137 : f32 to vector<2x128xf32>
    %555 = arith.subf %554, %548 : vector<2x128xf32>
    %556 = arith.mulf %555, %553 : vector<2x128xf32>
    %557 = arith.mulf %548, %532 : vector<2x128xf32>
    %558 = arith.addf %556, %557 : vector<2x128xf32>
    %c7_i32_138 = arith.constant 7 : i32
    %559 = arith.subi %c7_i32_138, %c7_i32_127 : i32
    %560 = arith.index_cast %559 : i32 to index
    %c0_139 = arith.constant 0 : index
    %c0_140 = arith.constant 0 : index
    %561 = vector.load %arg2[%560, %c0_139, %c0_140] : memref<8x2x384xf32, #tpu.memory_space<vmem>>, vector<1x2x384xf32>
    %562 = vector.shape_cast %561 : vector<1x2x384xf32> to vector<2x384xf32>
    %563 = vector.extract_strided_slice %527 {offsets = [0, 384], sizes = [2, 384], strides = [1, 1]} : vector<2x768xf32> to vector<2x384xf32>
    %564 = vector.extract_strided_slice %517 {offsets = [0, 128], sizes = [2, 128], strides = [1, 1]} : vector<2x256xf32> to vector<2x128xf32>
    %565 = vector.extract_strided_slice %562 {offsets = [0, 0], sizes = [2, 128], strides = [1, 1]} : vector<2x384xf32> to vector<2x128xf32>
    %566 = vector.extract_strided_slice %563 {offsets = [0, 0], sizes = [2, 128], strides = [1, 1]} : vector<2x384xf32> to vector<2x128xf32>
    %567 = arith.addf %565, %566 : vector<2x128xf32>
    %568 = arith.negf %567 : vector<2x128xf32>
    %569 = math.exp %568 : vector<2x128xf32>
    %cst_141 = arith.constant 1.000000e+00 : f32
    %570 = vector.broadcast %cst_141 : f32 to vector<2x128xf32>
    %571 = arith.addf %570, %569 : vector<2x128xf32>
    %572 = arith.divf %570, %571 : vector<2x128xf32>
    %573 = vector.extract_strided_slice %562 {offsets = [0, 128], sizes = [2, 128], strides = [1, 1]} : vector<2x384xf32> to vector<2x128xf32>
    %574 = vector.extract_strided_slice %563 {offsets = [0, 128], sizes = [2, 128], strides = [1, 1]} : vector<2x384xf32> to vector<2x128xf32>
    %575 = arith.addf %573, %574 : vector<2x128xf32>
    %576 = arith.negf %575 : vector<2x128xf32>
    %577 = math.exp %576 : vector<2x128xf32>
    %cst_142 = arith.constant 1.000000e+00 : f32
    %578 = vector.broadcast %cst_142 : f32 to vector<2x128xf32>
    %579 = arith.addf %578, %577 : vector<2x128xf32>
    %580 = arith.divf %578, %579 : vector<2x128xf32>
    %581 = vector.extract_strided_slice %562 {offsets = [0, 256], sizes = [2, 128], strides = [1, 1]} : vector<2x384xf32> to vector<2x128xf32>
    %582 = vector.extract_strided_slice %563 {offsets = [0, 256], sizes = [2, 128], strides = [1, 1]} : vector<2x384xf32> to vector<2x128xf32>
    %583 = arith.mulf %572, %582 : vector<2x128xf32>
    %584 = arith.addf %581, %583 : vector<2x128xf32>
    %585 = math.tanh %584 : vector<2x128xf32>
    %cst_143 = arith.constant 1.000000e+00 : f32
    %586 = vector.broadcast %cst_143 : f32 to vector<2x128xf32>
    %587 = arith.subf %586, %580 : vector<2x128xf32>
    %588 = arith.mulf %587, %585 : vector<2x128xf32>
    %589 = arith.mulf %580, %564 : vector<2x128xf32>
    %590 = arith.addf %588, %589 : vector<2x128xf32>
    %591 = tpu.concatenate %558, %590 in 1 : vector<2x128xf32>, vector<2x128xf32> -> vector<2x256xf32>
    %592 = arith.index_cast %c7_i32_127 : i32 to index
    %c0_144 = arith.constant 0 : index
    %c0_145 = arith.constant 0 : index
    %593 = vector.load %arg5[%592, %c0_144, %c0_145] : memref<8x2x256xf32, #tpu.memory_space<vmem>>, vector<1x2x256xf32>
    %594 = vector.shape_cast %593 : vector<1x2x256xf32> to vector<2x256xf32>
    %595 = vector.shape_cast %591 : vector<2x256xf32> to vector<1x2x256xf32>
    tpu.vector_store %arg5[%592, %c0_144, %c0_145], %595 {strides = array<i32>} : memref<8x2x256xf32, #tpu.memory_space<vmem>>, vector<1x2x256xf32>,
    %c8_i32 = arith.constant 8 : i32
    %c0_146 = arith.constant 0 : index
    %c0_147 = arith.constant 0 : index
    %596 = vector.load %arg6[%c0_146, %c0_147] : memref<2x256xf32, #tpu.memory_space<vmem>>, vector<2x256xf32>
    tpu.vector_store %arg6[%c0_146, %c0_147], %591 {strides = array<i32>} : memref<2x256xf32, #tpu.memory_space<vmem>>, vector<2x256xf32>,
    return
  }
  func.func @transform_0(%arg0: i32) -> (i32, i32, i32) {
    %c0_i32 = arith.constant 0 : i32
    %c0_i32_0 = arith.constant 0 : i32
    %c0_i32_1 = arith.constant 0 : i32
    return %arg0, %c0_i32, %c0_i32_0 : i32, i32, i32
  }
  func.func @transform_1(%arg0: i32) -> (i32, i32, i32) {
    %c0_i32 = arith.constant 0 : i32
    %0 = arith.subi %c0_i32, %arg0 : i32
    %c0_i32_0 = arith.constant 0 : i32
    %c0_i32_1 = arith.constant 0 : i32
    %c0_i32_2 = arith.constant 0 : i32
    return %0, %c0_i32_0, %c0_i32_1 : i32, i32, i32
  }
  func.func @transform_2(%arg0: i32) -> (i32, i32) {
    %c0_i32 = arith.constant 0 : i32
    %c0_i32_0 = arith.constant 0 : i32
    %c0_i32_1 = arith.constant 0 : i32
    return %c0_i32, %c0_i32_0 : i32, i32
  }
  func.func @transform_3(%arg0: i32) -> (i32, i32) {
    %c0_i32 = arith.constant 0 : i32
    %c0_i32_0 = arith.constant 0 : i32
    %c0_i32_1 = arith.constant 0 : i32
    return %c0_i32, %c0_i32_0 : i32, i32
  }
  func.func @transform_4(%arg0: i32) -> (i32, i32, i32) {
    %c0_i32 = arith.constant 0 : i32
    %c0_i32_0 = arith.constant 0 : i32
    %c0_i32_1 = arith.constant 0 : i32
    return %arg0, %c0_i32, %c0_i32_0 : i32, i32, i32
  }
}

</mosaic_0001>

<bundles_post_ra>
// kernel: _encode.3
= control target key start
LH: loop header
LB: loop body
LE: loop exit
PB: predicated region body
PF: predicated region fallthrough
CT: control target
= control target key end

     0   :  { %v311_v1 = vmov 0   ;;  %vm124_vm0 = vcmask 261120   ;;  %v34_v16 = vlaneseq  ;;  %s418_s1 = inlined_call_operand.vmem [shape: bf16[32,768], index: 1, kind: input, shape index: {}]   ;;  %s419_s0 = inlined_call_operand.vmem [shape: f32[16,32], index: 0, kind: input, shape index: {}]   ;;  %s420_s2 = inlined_call_operand.vmem [shape: f32[1,768], index: 2, kind: input, shape index: {}]   ;;  %s421_s3 = inlined_call_operand.vmem [shape: f32[16,384], index: 3, kind: output, shape index: {0}]   ;;  %s422_s4 = inlined_call_operand.vmem [shape: f32[16,384], index: 4, kind: output, shape index: {1}]  }
   0x1   :  { %v293_v0 = vld [vmem:[%s418_s1 + $0x4] ss:$24 sps:$4 sm:$0xff]   ;;  %160 = vmatprep.mubr.bf16.mxu0 %v311_v1  ;;  %203 = vmatprep.mubr.bf16.mxu1 %v311_v1  ;;  %v295_v2 = vld [vmem:[%s418_s1] ss:$24 sps:$4 sm:$0xff]   ;;  %v296_v3 = vld [vmem:[%s418_s1 + $0x34] ss:$24 sps:$4 sm:$0xff]  }
   0x2   :  { %128 = vmatprep.subr.bf16.mxu0 %v293_v0  ;;  %v298_v4 = vld [vmem:[%s418_s1 + $0x30] ss:$24 sps:$4 sm:$0xff]   ;;  %v299_v5 = vld [vmem:[%s418_s1 + $0xc] ss:$24 sps:$4 sm:$0xff]   ;;  %v305_v12 = vld [vmem:[%s418_s1 + $0x3c] ss:$24 sps:$4 sm:$0xff]  }
   0x3   :  { %129 = vmatpush1.bf16.msra.mxu0 %v295_v2  ;;  %v301_v6 = vld [vmem:[%s418_s1 + $0x8] ss:$24 sps:$4 sm:$0xff]   ;;  %171 = vmatprep.subr.bf16.mxu1 %v299_v5  ;;  %v304_v10 = vld [vmem:[%s418_s1 + $0x14] ss:$24 sps:$4 sm:$0xff]   ;;  %v307_v13 = vld [vmem:[%s418_s1 + $0x38] ss:$24 sps:$4 sm:$0xff]  }
   0x4   :  { %130 = vmatprep.subr.bf16.mxu0 %v296_v3  ;;  %v17_v7 = vld [vmem:[%s419_s0] sm:$0xff]  ;;  %v18_v8 = vld [vmem:[%s419_s0 + $0x8] sm:$0xff]  ;;  %172 = vmatpush1.bf16.msra.mxu1 %v301_v6  ;;  %v35_v17 = vshrl.u32 %v34_v16, 7 }
   0x5   :  { %v302_v9 = vld [vmem:[%s418_s1 + $0x10] ss:$24 sps:$4 sm:$0xff]   ;;  %v19_v11 = vpack.c.bf16 %v18_v8, %v17_v7  ;;  %173 = vmatprep.subr.bf16.mxu1 %v305_v12  ;;  %v310_v14 = vld [vmem:[%s418_s1 + $0x44] ss:$24 sps:$4 sm:$0xff]   ;;  %v308_v15 = vld [vmem:[%s418_s1 + $0x40] ss:$24 sps:$4 sm:$0xff]  }
   0x6   :  { %v36_v18 = vsub.s32 0, %v35_v17  ;;  %v32_v19 = vld [vmem:[%s420_s2] sm:$0x3f]  ;;  %v40_v20 = vsub.s32 1, %v35_v17  ;;  %v44_v21 = vsub.s32 2, %v35_v17  ;;  %v48_v23 = vsub.s32 3, %v35_v17 }
   0x7   :  { %131 = vmatpush1.bf16.msra.mxu0 %v298_v4  ;;  %v52_v30 = vsub.s32 4, %v35_v17  ;;  %v56_v33 = vsub.s32 5, %v35_v17 }
   0x8   :  { %214 = vmatprep.subr.bf16.mxu0 %v304_v10  ;;  %174 = vmatpush1.bf16.msra.mxu1 %v307_v13  ;;  %v37_v22 = vrot.slane %v32_v19, %v36_v18  ;;  %v41_v24 = vrot.slane %v32_v19, %v40_v20  ;;  %v45_v26 = vrot.slane %v32_v19, %v44_v21 }
   0x9   :  { %v49_v29 = vrot.slane %v32_v19, %v48_v23  ;;  %v53_v42 = vrot.slane %v32_v19, %v52_v30  ;;  %v57_v45 = vrot.slane %v32_v19, %v56_v33 }
   0xa   :  { %289 = vmatmul.mubr.msk.bf16.vlgmr.msra.gmra.mrb[0].mxu0 %vm124_vm0, %v19_v11 }
   0xb   :  { %215 = vmatpush1.bf16.msra.mxu0 %v302_v9  ;;  %246 = vmatprep.mubr.bf16.mxu0 %v311_v1 }
   0xc   :  { %216 = vmatprep.subr.bf16.mxu0 %v310_v14  ;;  %290 = vmatmul.mubr.msk.bf16.vlgmr.msra.gmra.mrb[0].mxu1 %vm124_vm0, %v19_v11 }
   0xf   :  { %217 = vmatpush1.bf16.msra.mxu0 %v308_v15 }
  0x12   :  { %291 = vmatmul.mubr.msk.bf16.vlgmr.msra.gmra.mrb[4].mxu0 %vm124_vm0, %v19_v11 }
  0xdd   :  { %v162_v25 = vpop.f32.mrb[0].mxu0 }
  0xde   :  { %v163_v27 = vadd.f32 %v162_v25, %v37_v22  ;;  %v164_v28 = vpop.f32.mrb[1].mxu0 }
  0xdf   :  { %v165_v31 = vadd.f32 %v164_v28, %v41_v24  ;;  %v166_v32 = vpop.f32.mrb[2].mxu0  ;;  %v205_v36 = vpop.f32.mrb[0].mxu1 }
  0xe0   :  { %257 = vst [vmem:[%s421_s3] sm:$0xff] %v163_v27  ;;  %v167_v34 = vadd.f32 %v166_v32, %v37_v22  ;;  %v168_v35 = vpop.f32.mrb[3].mxu0  ;;  %v206_v38 = vadd.f32 %v205_v36, %v45_v26  ;;  %v207_v39 = vpop.f32.mrb[1].mxu1 }
  0xe1   :  { %258 = vst [vmem:[%s421_s3 + $0x8] sm:$0xff] %v165_v31  ;;  %v169_v37 = vadd.f32 %v168_v35, %v41_v24  ;;  %v208_v40 = vadd.f32 %v207_v39, %v49_v29  ;;  %v209_v41 = vpop.f32.mrb[2].mxu1 }
  0xe2   :  { %260 = vst [vmem:[%s421_s3 + $0x18] sm:$0xff] %v167_v34  ;;  %259 = vst [vmem:[%s421_s3 + $0x10] sm:$0xff] %v206_v38  ;;  %v210_v43 = vadd.f32 %v209_v41, %v45_v26  ;;  %v211_v44 = vpop.f32.mrb[3].mxu1 }
  0xe3   :  { %261 = vst [vmem:[%s421_s3 + $0x20] sm:$0xff] %v169_v37  ;;  %263 = vst [vmem:[%s422_s4] sm:$0xff] %v208_v40  ;;  %v212_v46 = vadd.f32 %v211_v44, %v49_v29 }
  0xe4   :  { %262 = vst [vmem:[%s421_s3 + $0x28] sm:$0xff] %v210_v43 }
  0xe5   :  { %v248_v47 = vpop.f32.mrb[4].mxu0  ;;  %266 = vst [vmem:[%s422_s4 + $0x18] sm:$0xff] %v212_v46 }
  0xe6   :  { %v249_v48 = vadd.f32 %v248_v47, %v53_v42  ;;  %v250_v49 = vpop.f32.mrb[5].mxu0 }
  0xe7   :  { %v251_v50 = vadd.f32 %v250_v49, %v57_v45  ;;  %v252_v51 = vpop.f32.mrb[6].mxu0 }
  0xe8   :  { %264 = vst [vmem:[%s422_s4 + $0x8] sm:$0xff] %v249_v48  ;;  %v253_v52 = vadd.f32 %v252_v51, %v53_v42  ;;  %v254_v53 = vpop.f32.mrb[7].mxu0 }
  0xe9   :  { %265 = vst [vmem:[%s422_s4 + $0x10] sm:$0xff] %v251_v50  ;;  %v255_v54 = vadd.f32 %v254_v53, %v57_v45 }
  0xea   :  { %267 = vst [vmem:[%s422_s4 + $0x20] sm:$0xff] %v253_v52 }
  0xeb   :  { %268 = vst [vmem:[%s422_s4 + $0x28] sm:$0xff] %v255_v54 }

// kernel: _encode.5
= control target key start
LH: loop header
LB: loop body
LE: loop exit
PB: predicated region body
PF: predicated region fallthrough
CT: control target
= control target key end

     0   :  { %vm45_vm0 = vcmask 1041408   ;;  %s448_s0 = inlined_call_operand.vmem [shape: f32[8,2,256], index: 0, kind: input, shape index: {}, may-alias: {0,1}]   ;;  %s449_s1 = inlined_call_operand.vmem [shape: f32[8,2,256], index: 1, kind: input, shape index: {}, may-alias: {0,1}]   ;;  %s450_s2 = inlined_call_operand.vmem [shape: f32[8,2,128], index: 2, kind: output, shape index: {}]  }
   0x1   :  { %v248_v0 = vld [vmem:[%s448_s0 + $0x8] sm:$0xf]  ;;  %v249_v1 = vld [vmem:[%s449_s1 + $0x14] sm:$0xf]  ;;  %v36_v3 = vld [vmem:[%s448_s0] sm:$0xf] }
   0x2   :  { %v90_v2 = vrot.slane %v249_v1, 2  ;;  %v244_v4 = vld [vmem:[%s449_s1 + $0x1c] sm:$0xf]  ;;  %v251_v6 = vld [vmem:[%s448_s0 + $0xc] sm:$0xf] }
   0x3   :  { %v40_v5 = vrot.slane %v244_v4, 2  ;;  %v252_v7 = vld [vmem:[%s449_s1 + $0x10] sm:$0xf]  ;;  %v245_v10 = vld [vmem:[%s448_s0 + $0x4] sm:$0xf] }
   0x4   :  { %v92_v8 = vadd.f32 %v248_v0, %v90_v2  ;;  %v115_v9 = vrot.slane %v252_v7, 2  ;;  %v246_v11 = vld [vmem:[%s449_s1 + $0x18] sm:$0xf]  ;;  %v257_v14 = vld [vmem:[%s448_s0 + $0x14] sm:$0xf] }
   0x5   :  { %v42_v12 = vadd.f32 %v40_v5, %v36_v3  ;;  %v65_v13 = vrot.slane %v246_v11, 2  ;;  %v258_v15 = vld [vmem:[%s449_s1 + $0x8] sm:$0xf]  ;;  %v254_v19 = vld [vmem:[%s448_s0 + $0x10] sm:$0xf] }
   0x6   :  { %v342_v16 = vmul.f32 0.5, %v92_v8  ;;  %v117_v17 = vadd.f32 %v251_v6, %v115_v9  ;;  %v165_v18 = vrot.slane %v258_v15, 2  ;;  %v255_v20 = vld [vmem:[%s449_s1 + $0xc] sm:$0xf]  ;;  %v263_v24 = vld [vmem:[%s448_s0 + $0x1c] sm:$0xf] }
   0x7   :  { %v350_v21 = vmul.f32 0.5, %v42_v12  ;;  %v67_v22 = vadd.f32 %v245_v10, %v65_v13  ;;  %v140_v23 = vrot.slane %v255_v20, 2  ;;  %v212_v25 = vld [vmem:[%s449_s1] sm:$0xf]  ;;  %v260_v30 = vld [vmem:[%s448_s0 + $0x18] sm:$0xf] }
   0x8   :  { %v94_v26 = vmul.f32 %v342_v16, %v342_v16  ;;  %v360_v27 = vmul.f32 0.5, %v117_v17  ;;  %v167_v28 = vadd.f32 %v257_v14, %v165_v18  ;;  %v214_v29 = vrot.slane %v212_v25, 2  ;;  %v261_v31 = vld [vmem:[%s449_s1 + $0x4] sm:$0xf] }
   0x9   :  { %v44_v32 = vmul.f32 %v350_v21, %v350_v21  ;;  %v370_v33 = vmul.f32 0.5, %v67_v22  ;;  %v142_v34 = vadd.f32 %v254_v19, %v140_v23  ;;  %v190_v35 = vrot.slane %v261_v31, 2 }
   0xa   :  { %v95_v36 = vsel %vm45_vm0, %v94_v26, 0.0  ;;  %v119_v37 = vmul.f32 %v360_v27, %v360_v27  ;;  %v375_v38 = vmul.f32 0.5, %v167_v28  ;;  %v216_v39 = vadd.f32 %v263_v24, %v214_v29 }
   0xb   :  { %96 = vadd.xlane.f32.xlu1 %v95_v36  ;;  %v46_v40 = vsel %vm45_vm0, %v44_v32, 0.0  ;;  %v69_v41 = vmul.f32 %v370_v33, %v370_v33  ;;  %v380_v42 = vmul.f32 0.5, %v142_v34  ;;  %v192_v43 = vadd.f32 %v260_v30, %v190_v35 }
   0xc   :  { %47 = vadd.xlane.f32.xlu0 %v46_v40  ;;  %v120_v44 = vsel %vm45_vm0, %v119_v37, 0.0  ;;  %v169_v45 = vmul.f32 %v375_v38, %v375_v38  ;;  %v385_v46 = vmul.f32 0.5, %v216_v39 }
   0xd   :  { %v70_v47 = vsel %vm45_vm0, %v69_v41, 0.0  ;;  %v144_v48 = vmul.f32 %v380_v42, %v380_v42  ;;  %v390_v49 = vmul.f32 0.5, %v192_v43 }
   0xe   :  { %v170_v50 = vsel %vm45_vm0, %v169_v45, 0.0  ;;  %v218_v51 = vmul.f32 %v385_v46, %v385_v46 }
   0xf   :  { %121 = vadd.xlane.f32.xlu1 %v120_v44  ;;  %v145_v52 = vsel %vm45_vm0, %v144_v48, 0.0  ;;  %v194_v53 = vmul.f32 %v390_v49, %v390_v49 }
  0x10   :  { %71 = vadd.xlane.f32.xlu0 %v70_v47  ;;  %v219_v54 = vsel %vm45_vm0, %v218_v51, 0.0 }
  0x11   :  { %v195_v55 = vsel %vm45_vm0, %v194_v53, 0.0 }
  0x13   :  { %171 = vadd.xlane.f32.xlu1 %v170_v50 }
  0x14   :  { %146 = vadd.xlane.f32.xlu0 %v145_v52 }
  0x17   :  { %220 = vadd.xlane.f32.xlu1 %v219_v54 }
  0x18   :  { %196 = vadd.xlane.f32.xlu0 %v195_v55 }
  0x98   :  { %v97_v56 = vpop.xlane.xlu1 %96 }
  0x99   :  { %265 = vrsqrt.f32 %v97_v56  ;;  %v48_v57 = vpop.xlane.xlu0 %47  ;;  %vm100_vm1 = vcmp.eq.f32.partialorder %v97_v56, inf  ;;  %vm102_vm2 = vcmp.eq.f32.partialorder %v97_v56, 0.0  ;;  %v103_v2 = vand.u32 2147483648, %v97_v56 }
  0x9a   :  { %267 = vrsqrt.f32 %v48_v57  ;;  %vm51_vm3 = vcmp.eq.f32.partialorder %v48_v57, inf  ;;  %v54_v6 = vand.u32 2147483648, %v48_v57  ;;  %vm53_vm4 = vcmp.eq.f32.partialorder %v48_v57, 0.0 }
  0x9c   :  { %v122_v58 = vpop.xlane.xlu1 %121 }
  0x9d   :  { %269 = vrsqrt.f32 %v122_v58  ;;  %v72_v59 = vpop.xlane.xlu0 %71  ;;  %vm125_vm5 = vcmp.eq.f32.partialorder %v122_v58, inf  ;;  %vm127_vm6 = vcmp.eq.f32.partialorder %v122_v58, 0.0  ;;  %v128_v15 = vand.u32 2147483648, %v122_v58 }
  0x9e   :  { %271 = vrsqrt.f32 %v72_v59  ;;  %vm75_vm7 = vcmp.eq.f32.partialorder %v72_v59, inf  ;;  %v78_v19 = vand.u32 2147483648, %v72_v59  ;;  %vm77_vm8 = vcmp.eq.f32.partialorder %v72_v59, 0.0 }
  0xa0   :  { %v172_v60 = vpop.xlane.xlu1 %171 }
  0xa1   :  { %273 = vrsqrt.f32 %v172_v60  ;;  %v147_v61 = vpop.xlane.xlu0 %146  ;;  %vm175_vm9 = vcmp.eq.f32.partialorder %v172_v60, inf  ;;  %vm177_vm10 = vcmp.eq.f32.partialorder %v172_v60, 0.0  ;;  %v178_v30 = vand.u32 2147483648, %v172_v60 }
  0xa2   :  { %275 = vrsqrt.f32 %v147_v61  ;;  %vm150_vm11 = vcmp.eq.f32.partialorder %v147_v61, inf  ;;  %v153_v34 = vand.u32 2147483648, %v147_v61  ;;  %vm152_vm12 = vcmp.eq.f32.partialorder %v147_v61, 0.0 }
  0xa3   :  { %v266_v62 = vpop.eup %265 }
  0xa4   :  { %v268_v63 = vpop.eup %267  ;;  %v99_v0 = vmul.f32 %v266_v62, %v97_v56  ;;  %v400_v1 = vpop.xlane.xlu1 %220 }
  0xa5   :  { %v50_v3 = vmul.f32 %v268_v63, %v48_v57  ;;  %277 = vrsqrt.f32 %v400_v1  ;;  %v403_v4 = vpop.xlane.xlu0 %196  ;;  %vm224_vm13 = vcmp.eq.f32.partialorder %v400_v1, inf  ;;  %vm226_vm14 = vcmp.eq.f32.partialorder %v400_v1, 0.0 }
  0xa6   :  { %v101_v5 = vsel %vm100_vm1, %v97_v56, %v99_v0  ;;  %279 = vrsqrt.f32 %v403_v4  ;;  %v227_v45 = vand.u32 2147483648, %v400_v1  ;;  %vm200_vm15 = vcmp.eq.f32.partialorder %v403_v4, inf }
  0xa7   :  { %v270_v7 = vpop.eup %269  ;;  %v104_v8 = vsel %vm102_vm2, %v103_v2, %v101_v5  ;;  %v52_v9 = vsel %vm51_vm3, %v48_v57, %v50_v3  ;;  %v203_v50 = vand.u32 2147483648, %v403_v4  ;;  %vm202_vm0 = vcmp.eq.f32.partialorder %v403_v4, 0.0 }
  0xa8   :  { %v272_v10 = vpop.eup %271  ;;  %v105_v11 = vadd.f32 1e-08, %v104_v8  ;;  %v55_v12 = vsel %vm53_vm4, %v54_v6, %v52_v9  ;;  %v124_v13 = vmul.f32 %v270_v7, %v122_v58 }
  0xa9   :  { %v56_v14 = vadd.f32 1e-08, %v55_v12  ;;  %v74_v17 = vmul.f32 %v272_v10, %v72_v59 }
  0xaa   :  { %281 = vrcp.f32 %v105_v11  ;;  %v126_v18 = vsel %vm125_vm5, %v122_v58, %v124_v13 }
  0xab   :  { %v274_v20 = vpop.eup %273  ;;  %283 = vrcp.f32 %v56_v14  ;;  %v129_v22 = vsel %vm127_vm6, %v128_v15, %v126_v18  ;;  %v76_v23 = vsel %vm75_vm7, %v72_v59, %v74_v17 }
  0xac   :  { %v276_v24 = vpop.eup %275  ;;  %v130_v25 = vadd.f32 1e-08, %v129_v22  ;;  %v79_v26 = vsel %vm77_vm8, %v78_v19, %v76_v23  ;;  %v174_v28 = vmul.f32 %v274_v20, %v172_v60 }
  0xad   :  { %v80_v29 = vadd.f32 1e-08, %v79_v26  ;;  %v149_v31 = vmul.f32 %v276_v24, %v147_v61 }
  0xae   :  { %285 = vrcp.f32 %v130_v25  ;;  %v176_v32 = vsel %vm175_vm9, %v172_v60, %v174_v28 }
  0xaf   :  { %v278_v35 = vpop.eup %277  ;;  %287 = vrcp.f32 %v80_v29  ;;  %v179_v36 = vsel %vm177_vm10, %v178_v30, %v176_v32  ;;  %v151_v37 = vsel %vm150_vm11, %v147_v61, %v149_v31 }
  0xb0   :  { %v280_v39 = vpop.eup %279  ;;  %v180_v40 = vadd.f32 1e-08, %v179_v36  ;;  %v154_v41 = vsel %vm152_vm12, %v153_v34, %v151_v37  ;;  %v223_v43 = vmul.f32 %v278_v35, %v400_v1 }
  0xb1   :  { %v155_v44 = vadd.f32 1e-08, %v154_v41  ;;  %v199_v47 = vmul.f32 %v280_v39, %v403_v4 }
  0xb2   :  { %289 = vrcp.f32 %v180_v40  ;;  %v225_v48 = vsel %vm224_vm13, %v400_v1, %v223_v43 }
  0xb3   :  { %291 = vrcp.f32 %v155_v44  ;;  %v228_v51 = vsel %vm226_vm14, %v227_v45, %v225_v48  ;;  %v201_v52 = vsel %vm200_vm15, %v403_v4, %v199_v47 }
  0xb4   :  { %v282_v53 = vpop.eup %281  ;;  %v229_v54 = vadd.f32 1e-08, %v228_v51  ;;  %v204_v55 = vsel %vm202_vm0, %v203_v50, %v201_v52 }
  0xb5   :  { %v284_v56 = vpop.eup %283  ;;  %v107_v57 = vmul.f32 %v282_v53, %v342_v16  ;;  %v205_v58 = vadd.f32 1e-08, %v204_v55 }
  0xb6   :  { %v58_v59 = vmul.f32 %v284_v56, %v350_v21  ;;  %293 = vrcp.f32 %v229_v54 }
  0xb7   :  { %250 = vst [vmem:[%s450_s2 + $0x4] sm:$0x3] %v107_v57  ;;  %295 = vrcp.f32 %v205_v58 }
  0xb8   :  { %v286_v60 = vpop.eup %285  ;;  %59 = vst [vmem:[%s450_s2] sm:$0x3] %v58_v59 }
  0xb9   :  { %v288_v61 = vpop.eup %287  ;;  %v132_v62 = vmul.f32 %v286_v60, %v360_v27 }
  0xba   :  { %v82_v63 = vmul.f32 %v288_v61, %v370_v33 }
  0xbb   :  { %253 = vst [vmem:[%s450_s2 + $0x6] sm:$0x3] %v132_v62 }
  0xbc   :  { %v290_v16 = vpop.eup %289  ;;  %247 = vst [vmem:[%s450_s2 + $0x2] sm:$0x3] %v82_v63 }
  0xbd   :  { %v292_v21 = vpop.eup %291  ;;  %v182_v0 = vmul.f32 %v290_v16, %v375_v38 }
  0xbe   :  { %v157_v1 = vmul.f32 %v292_v21, %v380_v42 }
  0xbf   :  { %259 = vst [vmem:[%s450_s2 + $0xa] sm:$0x3] %v182_v0 }
  0xc0   :  { %v294_v27 = vpop.eup %293  ;;  %256 = vst [vmem:[%s450_s2 + $0x8] sm:$0x3] %v157_v1 }
  0xc1   :  { %v296_v33 = vpop.eup %295  ;;  %v231_v2 = vmul.f32 %v294_v27, %v385_v46 }
  0xc2   :  { %v207_v3 = vmul.f32 %v296_v33, %v390_v49 }
  0xc3   :  { %264 = vst [vmem:[%s450_s2 + $0xe] sm:$0x3] %v231_v2 }
  0xc4   :  { %262 = vst [vmem:[%s450_s2 + $0xc] sm:$0x3] %v207_v3 }

// kernel: _encode.4
= control target key start
LH: loop header
LB: loop body
LE: loop exit
PB: predicated region body
PF: predicated region fallthrough
CT: control target
= control target key end

     0   :  { %9 = vsyncpa [#allocation4], 0  ;;  %s8100_s15 = smov [#allocation3]   ;;  %s9946_s0 = inlined_call_operand.vmem [shape: f32[8,2,384], index: 0, kind: input, shape index: {}]   ;;  %s9947_s1 = inlined_call_operand.vmem [shape: f32[8,2,384], index: 1, kind: input, shape index: {}]   ;;  %s9948_s2 = inlined_call_operand.hbm [shape: bf16[256,768], index: 2, kind: input, shape index: {}]   ;;  %s9949_s3 = inlined_call_operand.vmem [shape: f32[1,768], index: 3, kind: input, shape index: {}]   ;;  %s9950_s4 = inlined_call_operand.vmem [shape: f32[8,2,256], index: 4, kind: output, shape index: {}]  }
   0x1   :  { %s28_s16 = sshll.u32 %s8100_s15, 4  ;;  %s8076_s19 = scalar_lea.hbm %s9948_s2, 12288  ;;  %s29_s16 = int_to_ptr.vmem [resolvable:$true] %s28_s16 }
   0x2   :  { %p8077_p0 = scmp.ne.s32.totalorder %s9948_s2, %s8076_s19  ;;  %p8080_p1 = scmp.lt.u32.totalorder %s8076_s19, %s9948_s2 }
   0x4   :  { %p8082_p2 = pnand %p8080_p1, %p8077_p0 }
   0x6   :  { %8085 = shalt.err (!%p8082_p2)
}
   0x7   :  { %s8086_s24 = scalar_lea.vmem %s29_s16, 12288  ;;  %p8091_p4 = scmp.lt.s32.totalorder %s29_s16, %s29_s16 }
   0x8   :  { %p8087_p3 = scmp.ne.s32.totalorder %s29_s16, %s8086_s24  ;;  %p8092_p5 = scmp.lt.s32.totalorder %s8086_s24, %s8086_s24 }
   0xa   :  { %p8093_p6 = por %p8092_p5, %p8091_p4 }
   0xc   :  { %p8094_p7 = pnand %p8093_p6, %p8087_p3 }
   0xe   :  { %8097 = shalt.err (!%p8094_p7)
}
   0xf   :  { %s8101_s25 = smov 384   ;;  %s8102_s26 = smov 24  }
  0x10   :  { %34 = dma.hbm_to_vmem [thread:$0]  %s9948_s2, 12288, %s29_s16, [#allocation4], %s8101_s25, %s8101_s25, %s8102_s26  }
  0x11   :  { %8098 = dma.done.wait [#allocation4], 12288  }
  0x12   :  { %8099 = vsyncadd [#allocation4], 4294955008  ;;  %v8103_v0 = vmov 0.0   ;;  %v8141_v1 = vld [vmem:[#allocation3 + $0x4] ss:$24 sps:$4 sm:$0xff]   ;;  %v66_v23 = vlaneseq }
  0x13   :  { %60 = vst [vmem:[#allocation2] sm:$0xf] %v8103_v0  ;;  %v8143_v2 = vld [vmem:[#allocation3] ss:$24 sps:$4 sm:$0xff]   ;;  %683 = vmatprep.subr.bf16.mxu0 %v8141_v1  ;;  %v8146_v3 = vld [vmem:[#allocation3 + $0x34] ss:$24 sps:$4 sm:$0xff]  }
  0x14   :  { %684 = vmatpush1.bf16.msra.mxu0 %v8143_v2  ;;  %v8149_v4 = vld [vmem:[#allocation3 + $0x30] ss:$24 sps:$4 sm:$0xff]   ;;  %v8152_v5 = vld [vmem:[#allocation3 + $0x64] ss:$24 sps:$4 sm:$0xff]   ;;  %v8155_v6 = vld [vmem:[#allocation3 + $0x60] ss:$24 sps:$4 sm:$0xff]  }
  0x15   :  { %685 = vmatprep.subr.bf16.mxu0 %v8146_v3  ;;  %v8158_v7 = vld [vmem:[#allocation3 + $0x94] ss:$24 sps:$4 sm:$0xff]   ;;  %v8161_v8 = vld [vmem:[#allocation3 + $0x90] ss:$24 sps:$4 sm:$0xff]   ;;  %v8168_v11 = vld [vmem:[#allocation3 + $0xc4] ss:$24 sps:$4 sm:$0xff]  }
  0x16   :  { %v8163_v9 = vld [vmem:[#allocation3 + $0xc] ss:$24 sps:$4 sm:$0xff]   ;;  %v8165_v10 = vld [vmem:[#allocation3 + $0x8] ss:$24 sps:$4 sm:$0xff]   ;;  %v8171_v12 = vld [vmem:[#allocation3 + $0x3c] ss:$24 sps:$4 sm:$0xff]  }
  0x17   :  { %724 = vmatprep.subr.bf16.mxu1 %v8163_v9  ;;  %v8174_v13 = vld [vmem:[#allocation3 + $0x38] ss:$24 sps:$4 sm:$0xff]   ;;  %v8181_v15 = vld [vmem:[#allocation3 + $0xf4] ss:$24 sps:$4 sm:$0xff]   ;;  %v8186_v17 = vld [vmem:[#allocation3 + $0x68] ss:$24 sps:$4 sm:$0xff]  }
  0x18   :  { %686 = vmatpush1.bf16.msra.mxu0 %v8149_v4  ;;  %725 = vmatpush1.bf16.msra.mxu1 %v8165_v10  ;;  %v8177_v14 = vld [vmem:[#allocation3 + $0xc0] ss:$24 sps:$4 sm:$0xff]   ;;  %v8183_v16 = vld [vmem:[#allocation3 + $0x6c] ss:$24 sps:$4 sm:$0xff]   ;;  %v8189_v18 = vld [vmem:[#allocation3 + $0xf0] ss:$24 sps:$4 sm:$0xff]  }
  0x19   :  { %687 = vmatprep.subr.bf16.mxu0 %v8152_v5  ;;  %726 = vmatprep.subr.bf16.mxu1 %v8171_v12  ;;  %v8192_v19 = vld [vmem:[#allocation3 + $0x9c] ss:$24 sps:$4 sm:$0xff]   ;;  %v8197_v21 = vld [vmem:[#allocation3 + $0x120] ss:$24 sps:$4 sm:$0xff]   ;;  %v8204_v24 = vld [vmem:[#allocation3 + $0xcc] ss:$24 sps:$4 sm:$0xff]  }
  0x1a   :  { %v8195_v20 = vld [vmem:[#allocation3 + $0x124] ss:$24 sps:$4 sm:$0xff]   ;;  %v8200_v22 = vld [vmem:[#allocation3 + $0x98] ss:$24 sps:$4 sm:$0xff]   ;;  %v8207_v25 = vld [vmem:[#allocation3 + $0x154] ss:$24 sps:$4 sm:$0xff]  }
  0x1b   :  { %v8210_v26 = vld [vmem:[#allocation3 + $0xc8] ss:$24 sps:$4 sm:$0xff]   ;;  %v8212_v27 = vshrl.u32 %v66_v23, 7  ;;  %v8218_v29 = vld [vmem:[#allocation3 + $0xfc] ss:$24 sps:$4 sm:$0xff]  }
  0x1c   :  { %688 = vmatpush1.bf16.msra.mxu0 %v8155_v6  ;;  %727 = vmatpush1.bf16.msra.mxu1 %v8174_v13  ;;  %v8215_v28 = vld [vmem:[#allocation3 + $0x150] ss:$24 sps:$4 sm:$0xff]   ;;  %v8221_v30 = vld [vmem:[#allocation3 + $0x184] ss:$24 sps:$4 sm:$0xff]   ;;  %v8223_v31 = vld [vmem:[#allocation3 + $0x180] ss:$24 sps:$4 sm:$0xff]  }
  0x1d   :  { %689 = vmatprep.subr.bf16.mxu0 %v8158_v7  ;;  %728 = vmatprep.subr.bf16.mxu1 %v8183_v16  ;;  %10055 = vst [vmem:[#allocation6_spill] sm:$0xff] %v8212_v27  ;;  %v8226_v32 = vld [vmem:[#allocation3 + $0xf8] ss:$24 sps:$4 sm:$0xff]   ;;  %v8230_v33 = vld [vmem:[#allocation3 + $0x12c] ss:$24 sps:$4 sm:$0xff]  }
  0x1e   :  { %v8233_v34 = vld [vmem:[#allocation3 + $0x1b4] ss:$24 sps:$4 sm:$0xff]   ;;  %v8075_v35 = vld.sshfl [vmem:[#allocation2] sm:$0x33 pattern:$0x76325410] }
  0x1f   :  { %v8236_v36 = vld [vmem:[#allocation3 + $0x128] ss:$24 sps:$4 sm:$0xff]   ;;  %v8242_v38 = vld [vmem:[#allocation3 + $0x15c] ss:$24 sps:$4 sm:$0xff]   ;;  %v70_v40 = vcombine.high %v8075_v35, %v8075_v35  ;;  %v8250_v42 = vld [vmem:[#allocation3 + $0x158] ss:$24 sps:$4 sm:$0xff]  }
  0x20   :  { %690 = vmatpush1.bf16.msra.mxu0 %v8161_v8  ;;  %729 = vmatpush1.bf16.msra.mxu1 %v8186_v17  ;;  %v8239_v37 = vld [vmem:[#allocation3 + $0x1b0] ss:$24 sps:$4 sm:$0xff]   ;;  %v8245_v39 = vld [vmem:[#allocation3 + $0x1e4] ss:$24 sps:$4 sm:$0xff]   ;;  %v8247_v41 = vld [vmem:[#allocation3 + $0x1e0] ss:$24 sps:$4 sm:$0xff]  }
  0x21   :  { %691 = vmatprep.subr.bf16.mxu0 %v8168_v11  ;;  %730 = vmatprep.subr.bf16.mxu1 %v8192_v19  ;;  %v8252_v43 = vpack.c.bf16 %v70_v40, %v70_v40  ;;  %v8256_v44 = vld [vmem:[#allocation3 + $0x18c] ss:$24 sps:$4 sm:$0xff]   ;;  %v8264_v46 = vld [vmem:[#allocation3 + $0x188] ss:$24 sps:$4 sm:$0xff]   ;;  %v8270_v48 = vld [vmem:[#allocation3 + $0x1bc] ss:$24 sps:$4 sm:$0xff]   ;;  %v8323_v40 = vpack.c.bf16 %v8075_v35, %v8075_v35 }
  0x22   :  { %v8259_v45 = vld [vmem:[#allocation3 + $0x214] ss:$24 sps:$4 sm:$0xff]   ;;  %v8267_v47 = vld [vmem:[#allocation3 + $0x210] ss:$24 sps:$4 sm:$0xff]   ;;  %10056 = vst [vmem:[#allocation7_spill] sm:$0xff] %v8270_v48 }
  0x23   :  { %715 = vmatprep.mubr.bf16.mxu0 %v8252_v43  ;;  %756 = vmatprep.mubr.bf16.mxu1 %v8252_v43  ;;  %v8273_v49 = vld [vmem:[#allocation3 + $0x244] ss:$24 sps:$4 sm:$0xff]   ;;  %v8275_v50 = vld [vmem:[#allocation3 + $0x240] ss:$24 sps:$4 sm:$0xff]   ;;  %v8285_v53 = vld [vmem:[#allocation3 + $0x274] ss:$24 sps:$4 sm:$0xff]  }
  0x24   :  { %692 = vmatpush1.bf16.msra.mxu0 %v8177_v14  ;;  %731 = vmatpush1.bf16.msra.mxu1 %v8200_v22  ;;  %v8278_v51 = vld [vmem:[#allocation3 + $0x1b8] ss:$24 sps:$4 sm:$0xff]   ;;  %v8282_v52 = vld [vmem:[#allocation3 + $0x1ec] ss:$24 sps:$4 sm:$0xff]   ;;  %v8288_v54 = vld [vmem:[#allocation3 + $0x1e8] ss:$24 sps:$4 sm:$0xff]  }
  0x25   :  { %693 = vmatprep.subr.bf16.mxu0 %v8181_v15  ;;  %732 = vmatprep.subr.bf16.mxu1 %v8204_v24  ;;  %10057 = vst [vmem:[#allocation8_spill] sm:$0xff] %v8278_v51  ;;  %10058 = vst [vmem:[#allocation9_spill] sm:$0xff] %v8282_v52  ;;  %v8291_v55 = vld [vmem:[#allocation3 + $0x270] ss:$24 sps:$4 sm:$0xff]   ;;  %v8294_v56 = vld [vmem:[#allocation3 + $0x21c] ss:$24 sps:$4 sm:$0xff]  }
  0x26   :  { %10059 = vst [vmem:[#allocation10_spill] sm:$0xff] %v8288_v54  ;;  %10060 = vst [vmem:[#allocation11_spill] sm:$0xff] %v8294_v56  ;;  %v8297_v57 = vld [vmem:[#allocation3 + $0x2a4] ss:$24 sps:$4 sm:$0xff]   ;;  %v8299_v58 = vld [vmem:[#allocation3 + $0x2a0] ss:$24 sps:$4 sm:$0xff]  }
  0x27   :  { %v8302_v59 = vld [vmem:[#allocation3 + $0x218] ss:$24 sps:$4 sm:$0xff]   ;;  %v8306_v60 = vld [vmem:[#allocation3 + $0x24c] ss:$24 sps:$4 sm:$0xff]   ;;  %v8314_v63 = vld [vmem:[#allocation3 + $0x248] ss:$24 sps:$4 sm:$0xff]  }
  0x28   :  { %694 = vmatpush1.bf16.msra.mxu0 %v8189_v18  ;;  %733 = vmatpush1.bf16.msra.mxu1 %v8210_v26  ;;  %10061 = vst [vmem:[#allocation12_spill] sm:$0xff] %v8302_v59  ;;  %10062 = vst [vmem:[#allocation13_spill] sm:$0xff] %v8306_v60  ;;  %v8309_v61 = vld [vmem:[#allocation3 + $0x2d4] ss:$24 sps:$4 sm:$0xff]   ;;  %v8311_v62 = vld [vmem:[#allocation3 + $0x2d0] ss:$24 sps:$4 sm:$0xff]  }
  0x29   :  { %695 = vmatprep.subr.bf16.mxu0 %v8195_v20  ;;  %734 = vmatprep.subr.bf16.mxu1 %v8218_v29  ;;  %10063 = vst [vmem:[#allocation14_spill] sm:$0xff] %v8314_v63  ;;  %v8318_v0 = vld [vmem:[#allocation3 + $0x27c] ss:$24 sps:$4 sm:$0xff]   ;;  %v7412_v27 = vld [vmem:[#allocation3 + $0x10] ss:$24 sps:$4 sm:$0xff]  }
  0x2a   :  { %10064 = vst [vmem:[#allocation15_spill] sm:$0xff] %v8318_v0  ;;  %v8321_v23 = vld [vmem:[#allocation3 + $0x14] ss:$24 sps:$4 sm:$0xff]  }
  0x2b   :  { %v8338_v35 = vld [vmem:[#allocation3 + $0x74] ss:$24 sps:$4 sm:$0xff]  }
  0x2c   :  { %696 = vmatpush1.bf16.msra.mxu0 %v8197_v21  ;;  %735 = vmatpush1.bf16.msra.mxu1 %v8226_v32 }
  0x2d   :  { %697 = vmatprep.subr.bf16.mxu0 %v8207_v25  ;;  %736 = vmatprep.subr.bf16.mxu1 %v8230_v33 }
  0x30   :  { %698 = vmatpush1.bf16.msra.mxu0 %v8215_v28  ;;  %737 = vmatpush1.bf16.msra.mxu1 %v8236_v36 }
  0x31   :  { %699 = vmatprep.subr.bf16.mxu0 %v8221_v30  ;;  %738 = vmatprep.subr.bf16.mxu1 %v8242_v38 }
  0x34   :  { %700 = vmatpush1.bf16.msra.mxu0 %v8223_v31  ;;  %739 = vmatpush1.bf16.msra.mxu1 %v8250_v42 }
  0x35   :  { %701 = vmatprep.subr.bf16.mxu0 %v8233_v34  ;;  %740 = vmatprep.subr.bf16.mxu1 %v8256_v44 }
  0x38   :  { %702 = vmatpush1.bf16.msra.mxu0 %v8239_v37  ;;  %741 = vmatpush1.bf16.msra.mxu1 %v8264_v46 }
  0x39   :  { %703 = vmatprep.subr.bf16.mxu0 %v8245_v39  ;;  %742 = vmatprep.subr.bf16.mxu1 %v8270_v48  ;;  %v8347_v48 = vld [vmem:[#allocation3 + $0xa4] ss:$24 sps:$4 sm:$0xff]  }
  0x3c   :  { %704 = vmatpush1.bf16.msra.mxu0 %v8247_v41  ;;  %743 = vmatpush1.bf16.msra.mxu1 %v8278_v51  ;;  %v8335_v51 = vld [vmem:[#allocation3 + $0x2dc] ss:$24 sps:$4 sm:$0xff]  }
  0x3d   :  { %705 = vmatprep.subr.bf16.mxu0 %v8259_v45  ;;  %744 = vmatprep.subr.bf16.mxu1 %v8282_v52  ;;  %v7418_v52 = vld [vmem:[#allocation3 + $0x40] ss:$24 sps:$4 sm:$0xff]  }
  0x40   :  { %706 = vmatpush1.bf16.msra.mxu0 %v8267_v47  ;;  %745 = vmatpush1.bf16.msra.mxu1 %v8288_v54  ;;  %v8333_v54 = vld [vmem:[#allocation3 + $0x2a8] ss:$24 sps:$4 sm:$0xff]  }
  0x41   :  { %707 = vmatprep.subr.bf16.mxu0 %v8273_v49  ;;  %746 = vmatprep.subr.bf16.mxu1 %v8294_v56  ;;  %v8326_v56 = vld [vmem:[#allocation3 + $0x278] ss:$24 sps:$4 sm:$0xff]  }
  0x42   :  { %10065 = vst [vmem:[#allocation16_spill] sm:$0xff] %v8326_v56 }
  0x44   :  { %708 = vmatpush1.bf16.msra.mxu0 %v8275_v50  ;;  %747 = vmatpush1.bf16.msra.mxu1 %v8302_v59  ;;  %v8330_v59 = vld [vmem:[#allocation3 + $0x2ac] ss:$24 sps:$4 sm:$0xff]  }
  0x45   :  { %709 = vmatprep.subr.bf16.mxu0 %v8285_v53  ;;  %748 = vmatprep.subr.bf16.mxu1 %v8306_v60  ;;  %v7420_v60 = vld [vmem:[#allocation3 + $0x44] ss:$24 sps:$4 sm:$0xff]  }
  0x48   :  { %710 = vmatpush1.bf16.msra.mxu0 %v8291_v55  ;;  %749 = vmatpush1.bf16.msra.mxu1 %v8314_v63  ;;  %v8345_v63 = vld [vmem:[#allocation3 + $0x70] ss:$24 sps:$4 sm:$0xff]  }
  0x49   :  { %711 = vmatprep.subr.bf16.mxu0 %v8297_v57  ;;  %750 = vmatprep.subr.bf16.mxu1 %v8318_v0  ;;  %v8342_v0 = vld [vmem:[#allocation3 + $0x2d8] ss:$24 sps:$4 sm:$0xff]   ;;  %10066 = vst [vmem:[#allocation17_spill] sm:$0xff] %v8345_v63 }
  0x4c   :  { %712 = vmatpush1.bf16.msra.mxu0 %v8299_v58  ;;  %751 = vmatpush1.bf16.msra.mxu1 %v8326_v56  ;;  %v8352_v56 = vld [vmem:[#allocation3 + $0xa0] ss:$24 sps:$4 sm:$0xff]  }
  0x4d   :  { %713 = vmatprep.subr.bf16.mxu0 %v8309_v61  ;;  %752 = vmatprep.subr.bf16.mxu1 %v8330_v59 }
  0x50   :  { %714 = vmatpush1.bf16.msra.mxu0 %v8311_v62  ;;  %753 = vmatpush1.bf16.msra.mxu1 %v8333_v54 }
  0x51   :  { %765 = vmatprep.subr.bf16.mxu0 %v8321_v23  ;;  %754 = vmatprep.subr.bf16.mxu1 %v8335_v51 }
  0x53   :  { %716 = vmatmul.mubr.bf16.vlgmr.msra.gmra.mrb[0].mxu0 %v8323_v40 }
  0x54   :  { %766 = vmatpush1.bf16.msra.mxu0 %v7412_v27  ;;  %797 = vmatprep.mubr.bf16.mxu0 %v8252_v43  ;;  %v8354_v27 = vld [vmem:[#allocation3 + $0xd4] ss:$24 sps:$4 sm:$0xff]   ;;  %v8360_v43 = vld [vmem:[#allocation3 + $0xd0] ss:$24 sps:$4 sm:$0xff]  }
  0x55   :  { %767 = vmatprep.subr.bf16.mxu0 %v7420_v60  ;;  %755 = vmatpush1.bf16.msra.mxu1 %v8342_v0  ;;  %v8369_v60 = vld [vmem:[#allocation3 + $0x100] ss:$24 sps:$4 sm:$0xff]  }
  0x56   :  { %1485 = vmatprep.subr.bf16.mxu1 %v8141_v1  ;;  %v8377_v1 = vld [vmem:[#allocation3 + $0x130] ss:$24 sps:$4 sm:$0xff]  }
  0x58   :  { %768 = vmatpush1.bf16.msra.mxu0 %v7418_v52  ;;  %757 = vmatmul.mubr.bf16.vlgmr.msra.gmra.mrb[0].mxu1 %v8323_v40  ;;  %v8363_v52 = vld [vmem:[#allocation3 + $0x104] ss:$24 sps:$4 sm:$0xff]  }
  0x59   :  { %769 = vmatprep.subr.bf16.mxu0 %v8338_v35  ;;  %1486 = vmatpush1.bf16.msra.mxu1 %v8143_v2  ;;  %v8379_v2 = vld [vmem:[#allocation3 + $0x164] ss:$24 sps:$4 sm:$0xff]  }
  0x5a   :  { %1487 = vmatprep.subr.bf16.mxu1 %v8146_v3  ;;  %v8385_v3 = vld [vmem:[#allocation3 + $0x160] ss:$24 sps:$4 sm:$0xff]  }
  0x5c   :  { %770 = vmatpush1.bf16.msra.mxu0 %v8345_v63  ;;  %v8371_v63 = vld [vmem:[#allocation3 + $0x134] ss:$24 sps:$4 sm:$0xff]  }
  0x5d   :  { %771 = vmatprep.subr.bf16.mxu0 %v8347_v48  ;;  %1488 = vmatpush1.bf16.msra.mxu1 %v8149_v4  ;;  %v8387_v4 = vld [vmem:[#allocation3 + $0x194] ss:$24 sps:$4 sm:$0xff]  }
  0x5e   :  { %1489 = vmatprep.subr.bf16.mxu1 %v8152_v5  ;;  %v8393_v5 = vld [vmem:[#allocation3 + $0x190] ss:$24 sps:$4 sm:$0xff]  }
  0x60   :  { %772 = vmatpush1.bf16.msra.mxu0 %v8352_v56 }
  0x61   :  { %773 = vmatprep.subr.bf16.mxu0 %v8354_v27  ;;  %1490 = vmatpush1.bf16.msra.mxu1 %v8155_v6  ;;  %v8395_v6 = vld [vmem:[#allocation3 + $0x1c4] ss:$24 sps:$4 sm:$0xff]  }
  0x62   :  { %1491 = vmatprep.subr.bf16.mxu1 %v8158_v7  ;;  %v8401_v7 = vld [vmem:[#allocation3 + $0x1c0] ss:$24 sps:$4 sm:$0xff]  }
  0x64   :  { %774 = vmatpush1.bf16.msra.mxu0 %v8360_v43 }
  0x65   :  { %775 = vmatprep.subr.bf16.mxu0 %v8363_v52  ;;  %1492 = vmatpush1.bf16.msra.mxu1 %v8161_v8  ;;  %v8403_v8 = vld [vmem:[#allocation3 + $0x1f4] ss:$24 sps:$4 sm:$0xff]  }
  0x66   :  { %1493 = vmatprep.subr.bf16.mxu1 %v8168_v11  ;;  %v8409_v11 = vld [vmem:[#allocation3 + $0x1f0] ss:$24 sps:$4 sm:$0xff]  }
  0x68   :  { %776 = vmatpush1.bf16.msra.mxu0 %v8369_v60 }
  0x69   :  { %777 = vmatprep.subr.bf16.mxu0 %v8371_v63  ;;  %1494 = vmatpush1.bf16.msra.mxu1 %v8177_v14  ;;  %v8411_v14 = vld [vmem:[#allocation3 + $0x224] ss:$24 sps:$4 sm:$0xff]  }
  0x6a   :  { %1495 = vmatprep.subr.bf16.mxu1 %v8181_v15  ;;  %v8417_v15 = vld [vmem:[#allocation3 + $0x220] ss:$24 sps:$4 sm:$0xff]  }
  0x6c   :  { %778 = vmatpush1.bf16.msra.mxu0 %v8377_v1 }
  0x6d   :  { %779 = vmatprep.subr.bf16.mxu0 %v8379_v2  ;;  %1496 = vmatpush1.bf16.msra.mxu1 %v8189_v18  ;;  %v8419_v18 = vld [vmem:[#allocation3 + $0x254] ss:$24 sps:$4 sm:$0xff]  }
  0x6e   :  { %1497 = vmatprep.subr.bf16.mxu1 %v8195_v20  ;;  %v8425_v20 = vld [vmem:[#allocation3 + $0x250] ss:$24 sps:$4 sm:$0xff]  }
  0x70   :  { %780 = vmatpush1.bf16.msra.mxu0 %v8385_v3 }
  0x71   :  { %781 = vmatprep.subr.bf16.mxu0 %v8387_v4  ;;  %1498 = vmatpush1.bf16.msra.mxu1 %v8197_v21  ;;  %v8427_v21 = vld [vmem:[#allocation3 + $0x284] ss:$24 sps:$4 sm:$0xff]  }
  0x72   :  { %1499 = vmatprep.subr.bf16.mxu1 %v8207_v25  ;;  %v8433_v25 = vld [vmem:[#allocation3 + $0x280] ss:$24 sps:$4 sm:$0xff]  }
  0x74   :  { %782 = vmatpush1.bf16.msra.mxu0 %v8393_v5 }
  0x75   :  { %783 = vmatprep.subr.bf16.mxu0 %v8395_v6  ;;  %1500 = vmatpush1.bf16.msra.mxu1 %v8215_v28  ;;  %v8435_v28 = vld [vmem:[#allocation3 + $0x2b4] ss:$24 sps:$4 sm:$0xff]  }
  0x76   :  { %1501 = vmatprep.subr.bf16.mxu1 %v8221_v30  ;;  %v8441_v30 = vld [vmem:[#allocation3 + $0x2b0] ss:$24 sps:$4 sm:$0xff]  }
  0x78   :  { %784 = vmatpush1.bf16.msra.mxu0 %v8401_v7 }
  0x79   :  { %785 = vmatprep.subr.bf16.mxu0 %v8403_v8  ;;  %1502 = vmatpush1.bf16.msra.mxu1 %v8223_v31  ;;  %v8443_v31 = vld [vmem:[#allocation3 + $0x2e4] ss:$24 sps:$4 sm:$0xff]  }
  0x7a   :  { %1503 = vmatprep.subr.bf16.mxu1 %v8233_v34  ;;  %v8449_v34 = vld [vmem:[#allocation3 + $0x2e0] ss:$24 sps:$4 sm:$0xff]  }
  0x7c   :  { %786 = vmatpush1.bf16.msra.mxu0 %v8409_v11 }
  0x7d   :  { %787 = vmatprep.subr.bf16.mxu0 %v8411_v14  ;;  %1504 = vmatpush1.bf16.msra.mxu1 %v8239_v37 }
  0x7e   :  { %1505 = vmatprep.subr.bf16.mxu1 %v8245_v39  ;;  %v806_v39 = vld [vmem:[%s9946_s0] sm:$0x3f] }
  0x80   :  { %788 = vmatpush1.bf16.msra.mxu0 %v8417_v15 }
  0x81   :  { %789 = vmatprep.subr.bf16.mxu0 %v8419_v18  ;;  %1506 = vmatpush1.bf16.msra.mxu1 %v8247_v41 }
  0x82   :  { %1507 = vmatprep.subr.bf16.mxu1 %v8259_v45 }
  0x84   :  { %790 = vmatpush1.bf16.msra.mxu0 %v8425_v20 }
  0x85   :  { %791 = vmatprep.subr.bf16.mxu0 %v8427_v21  ;;  %1508 = vmatpush1.bf16.msra.mxu1 %v8267_v47 }
  0x86   :  { %1509 = vmatprep.subr.bf16.mxu1 %v8273_v49 }
  0x88   :  { %792 = vmatpush1.bf16.msra.mxu0 %v8433_v25 }
  0x89   :  { %793 = vmatprep.subr.bf16.mxu0 %v8435_v28  ;;  %1510 = vmatpush1.bf16.msra.mxu1 %v8275_v50 }
  0x8a   :  { %1511 = vmatprep.subr.bf16.mxu1 %v8285_v53 }
  0x8c   :  { %794 = vmatpush1.bf16.msra.mxu0 %v8441_v30 }
  0x8d   :  { %795 = vmatprep.subr.bf16.mxu0 %v8443_v31  ;;  %1512 = vmatpush1.bf16.msra.mxu1 %v8291_v55 }
  0x8e   :  { %1513 = vmatprep.subr.bf16.mxu1 %v8297_v57 }
  0x90   :  { %796 = vmatpush1.bf16.msra.mxu0 %v8449_v34 }
  0x91   :  { %1526 = vmatprep.subr.bf16.mxu0 %v8163_v9  ;;  %1514 = vmatpush1.bf16.msra.mxu1 %v8299_v58  ;;  %v10067_v9 = vld [vmem:[#allocation7_spill] sm:$0xff] }
  0x92   :  { %1515 = vmatprep.subr.bf16.mxu1 %v8309_v61 }
  0x93   :  { %798 = vmatmul.mubr.bf16.vlgmr.msra.gmra.mrb[4].mxu0 %v8323_v40 }
  0x94   :  { %1527 = vmatpush1.bf16.msra.mxu0 %v8165_v10  ;;  %v10068_v10 = vld [vmem:[#allocation8_spill] sm:$0xff] }
  0x95   :  { %1528 = vmatprep.subr.bf16.mxu0 %v8171_v12  ;;  %1516 = vmatpush1.bf16.msra.mxu1 %v8311_v62  ;;  %v10069_v12 = vld [vmem:[#allocation9_spill] sm:$0xff] }
  0x96   :  { %1567 = vmatprep.subr.bf16.mxu1 %v8321_v23 }
  0x98   :  { %1529 = vmatpush1.bf16.msra.mxu0 %v8174_v13  ;;  %v10070_v13 = vld [vmem:[#allocation10_spill] sm:$0xff] }
  0x99   :  { %1530 = vmatprep.subr.bf16.mxu0 %v8183_v16  ;;  %v10071_v16 = vld [vmem:[#allocation11_spill] sm:$0xff] }
  0x9c   :  { %1531 = vmatpush1.bf16.msra.mxu0 %v8186_v17  ;;  %v10072_v17 = vld [vmem:[#allocation12_spill] sm:$0xff] }
  0x9d   :  { %1532 = vmatprep.subr.bf16.mxu0 %v8192_v19  ;;  %v10073_v19 = vld [vmem:[#allocation13_spill] sm:$0xff] }
  0xa0   :  { %1533 = vmatpush1.bf16.msra.mxu0 %v8200_v22  ;;  %v10074_v22 = vld [vmem:[#allocation14_spill] sm:$0xff] }
  0xa1   :  { %1534 = vmatprep.subr.bf16.mxu0 %v8204_v24  ;;  %v10075_v24 = vld [vmem:[#allocation15_spill] sm:$0xff] }
  0xa4   :  { %1535 = vmatpush1.bf16.msra.mxu0 %v8210_v26  ;;  %v10076_v26 = vld [vmem:[#allocation16_spill] sm:$0xff] }
  0xa5   :  { %1536 = vmatprep.subr.bf16.mxu0 %v8218_v29  ;;  %v10077_v29 = vld [vmem:[#allocation6_spill] sm:$0xff] }
  0xa6   :  { %v8519_v23 = vsub.s32 2, %v10077_v29 }
  0xa8   :  { %1537 = vmatpush1.bf16.msra.mxu0 %v8226_v32  ;;  %v8498_v32 = vsub.s32 0, %v10077_v29 }
  0xa9   :  { %1538 = vmatprep.subr.bf16.mxu0 %v8230_v33  ;;  %v8503_v33 = vld [vmem:[%s9949_s3] sm:$0x3f] }
  0xaa   :  { %10078 = vst [vmem:[#allocation7_spill] sm:$0xff] %v8498_v32  ;;  %v176_v37 = vrot.slane %v8503_v33, %v8498_v32 }
  0xac   :  { %1539 = vmatpush1.bf16.msra.mxu0 %v8236_v36  ;;  %v8506_v36 = vsub.s32 1, %v10077_v29 }
  0xad   :  { %1540 = vmatprep.subr.bf16.mxu0 %v8242_v38 }
  0xae   :  { %10079 = vst [vmem:[#allocation8_spill] sm:$0xff] %v8506_v36  ;;  %v180_v38 = vrot.slane %v8503_v33, %v8506_v36 }
  0xb0   :  { %1541 = vmatpush1.bf16.msra.mxu0 %v8250_v42 }
  0xb1   :  { %1542 = vmatprep.subr.bf16.mxu0 %v8256_v44 }
  0xb4   :  { %1543 = vmatpush1.bf16.msra.mxu0 %v8264_v46  ;;  %v815_v46 = vrot.slane %v806_v39, 2 }
  0xb5   :  { %1544 = vmatprep.subr.bf16.mxu0 %v10067_v9  ;;  %v184_v9 = vrot.slane %v8503_v33, %v8519_v23 }
  0xb8   :  { %1545 = vmatpush1.bf16.msra.mxu0 %v10068_v10 }
  0xb9   :  { %1546 = vmatprep.subr.bf16.mxu0 %v10069_v12 }
  0xbc   :  { %1547 = vmatpush1.bf16.msra.mxu0 %v10070_v13 }
  0xbd   :  { %1548 = vmatprep.subr.bf16.mxu0 %v10071_v16 }
  0xc0   :  { %1549 = vmatpush1.bf16.msra.mxu0 %v10072_v17  ;;  %v6598_v17 = vld [vmem:[%s9947_s1 + $0x2a] sm:$0x3f] }
  0xc1   :  { %1550 = vmatprep.subr.bf16.mxu0 %v10073_v19  ;;  %v825_v19 = vrot.slane %v806_v39, 4 }
  0xc4   :  { %1551 = vmatpush1.bf16.msra.mxu0 %v10074_v22 }
  0xc5   :  { %1552 = vmatprep.subr.bf16.mxu0 %v10075_v24 }
  0xc8   :  { %1553 = vmatpush1.bf16.msra.mxu0 %v10076_v26 }
  0xc9   :  { %1554 = vmatprep.subr.bf16.mxu0 %v8330_v59 }
  0xcc   :  { %1555 = vmatpush1.bf16.msra.mxu0 %v8333_v54 }
  0xcd   :  { %1556 = vmatprep.subr.bf16.mxu0 %v8335_v51 }
  0xd0   :  { %1557 = vmatpush1.bf16.msra.mxu0 %v8342_v0  ;;  %v8516_v0 = vsub.s32 3, %v10077_v29 }
  0xd2   :  { %v188_v40 = vrot.slane %v8503_v33, %v8516_v0 }
 0x126   :  { %v717_v41 = vpop.f32.mrb[0].mxu0 }
 0x127   :  { %v718_v42 = vadd.f32 %v717_v41, %v176_v37  ;;  %v719_v44 = vpop.f32.mrb[1].mxu0 }
 0x128   :  { %v720_v45 = vadd.f32 %v719_v44, %v180_v38  ;;  %v721_v47 = vpop.f32.mrb[2].mxu0 }
 0x129   :  { %v807_v49 = vadd.f32 %v806_v39, %v718_v42  ;;  %v722_v50 = vpop.f32.mrb[3].mxu0  ;;  %v8531_v39 = vsub.s32 4, %v10077_v29 }
 0x12a   :  { %v817_v53 = vadd.f32 %v815_v46, %v720_v45  ;;  %v8071_v46 = vld [vmem:[#allocation2] sm:$0xf] }
 0x12b   :  { %v6596_v51 = vmul.f32 -1.442695, %v807_v49  ;;  %v758_v55 = vpop.f32.mrb[0].mxu1 }
 0x12c   :  { %v6597_v54 = vmul.f32 -1.442695, %v817_v53  ;;  %v760_v57 = vpop.f32.mrb[1].mxu1  ;;  %v759_v16 = vadd.f32 %v758_v55, %v184_v9  ;;  %v8534_v53 = vsub.s32 5, %v10077_v29  ;;  %v853_v29 = vrot.slane %v6598_v17, 4 }
 0x12d   :  { %7911 = vpow2.f32 %v6596_v51  ;;  %v762_v58 = vpop.f32.mrb[2].mxu1  ;;  %v761_v12 = vadd.f32 %v760_v57, %v188_v40  ;;  %v843_v57 = vrot.slane %v6598_v17, 2 }
 0x12e   :  { %7913 = vpow2.f32 %v6597_v54  ;;  %v763_v59 = vpop.f32.mrb[3].mxu1  ;;  %v192_v54 = vrot.slane %v8503_v33, %v8531_v39  ;;  %v196_v55 = vrot.slane %v8503_v33, %v8534_v53 }
 0x12f   :  { %v835_v24 = vadd.f32 %v6598_v17, %v761_v12 }
 0x131   :  { %v6599_v38 = vmul.f32 -1.442695, %v835_v24 }
 0x137   :  { %v7912_v61 = vpop.eup %7911 }
 0x138   :  { %v811_v62 = vadd.f32 1.0, %v7912_v61  ;;  %v7914_v10 = vpop.eup %7913 }
 0x139   :  { %v821_v13 = vadd.f32 1.0, %v7914_v10 }
 0x13a   :  { %7915 = vrcp.f32 %v811_v62 }
 0x13b   :  { %7917 = vrcp.f32 %v821_v13 }
 0x144   :  { %v7916_v22 = vpop.eup %7915 }
 0x145   :  { %v824_v26 = vmul.f32 %v7916_v22, %v759_v16  ;;  %v7918_v41 = vpop.eup %7917 }
 0x146   :  { %v829_v42 = vsub.f32 1.0, %v7918_v41  ;;  %v831_v47 = vmul.f32 %v8071_v46, %v7918_v41 }
 0x147   :  { %v827_v37 = vadd.f32 %v825_v19, %v824_v26  ;;  %v859_v26 = vrot.slane %v8071_v46, 2  ;;  %v8072_v46 = vld [vmem:[#allocation3 + $0x10] ss:$24 sps:$4 sm:$0xff]  }
 0x149   :  { %7919 = vtanh.f32 %v827_v37 }
 0x14a   :  { %7921 = vpow2.f32 %v6599_v38 }
 0x153   :  { %v7920_v44 = vpop.eup %7919 }
 0x154   :  { %v830_v45 = vmul.f32 %v7920_v44, %v829_v42  ;;  %v7922_v49 = vpop.eup %7921 }
 0x155   :  { %v839_v51 = vadd.f32 1.0, %v7922_v49  ;;  %v8073_v49 = vld [vmem:[#allocation3 + $0x44] ss:$24 sps:$4 sm:$0xff]  }
 0x156   :  { %v8528_v50 = vadd.f32 %v831_v47, %v830_v45 }
 0x157   :  { %7923 = vrcp.f32 %v839_v51  ;;  %v8074_v51 = vld [vmem:[#allocation3 + $0x40] ss:$24 sps:$4 sm:$0xff]  }
 0x158   :  { %v875_v17 = vpack.c.bf16 %v8528_v50, %v8528_v50 }
 0x161   :  { %v7924_v59 = vpop.eup %7923 }
 0x166   :  { %v799_v58 = vpop.f32.mrb[4].mxu0 }
 0x167   :  { %v800_v61 = vadd.f32 %v799_v58, %v192_v54  ;;  %v801_v62 = vpop.f32.mrb[5].mxu0  ;;  %v10080_v54 = vld [vmem:[#allocation17_spill] sm:$0xff]  ;;  %v8665_v58 = vld [vmem:[#allocation3 + $0x150] ss:$24 sps:$4 sm:$0xff]  }
 0x168   :  { %v802_v40 = vadd.f32 %v801_v62, %v196_v55  ;;  %v803_v9 = vpop.f32.mrb[6].mxu0  ;;  %v8659_v55 = vld [vmem:[#allocation3 + $0x128] ss:$24 sps:$4 sm:$0xff]   ;;  %v8675_v62 = vld [vmem:[#allocation3 + $0x184] ss:$24 sps:$4 sm:$0xff]  }
 0x169   :  { %v845_v10 = vadd.f32 %v843_v57, %v800_v61  ;;  %v804_v12 = vpop.f32.mrb[7].mxu0  ;;  %10090 = vst [vmem:[#allocation17_spill] sm:$0xff] %v8659_v55  ;;  %v8663_v57 = vld [vmem:[#allocation3 + $0x154] ss:$24 sps:$4 sm:$0xff]   ;;  %v8670_v61 = vld [vmem:[#allocation3 + $0x158] ss:$24 sps:$4 sm:$0xff]  }
 0x16a   :  { %v852_v13 = vmul.f32 %v7924_v59, %v802_v40  ;;  %v8667_v59 = vld [vmem:[#allocation3 + $0x15c] ss:$24 sps:$4 sm:$0xff]   ;;  %10092 = vst [vmem:[#allocation19_spill] sm:$0xff] %v8670_v61  ;;  %v8677_v40 = vld [vmem:[#allocation3 + $0x180] ss:$24 sps:$4 sm:$0xff]  }
 0x16b   :  { %v6600_v16 = vmul.f32 -1.442695, %v845_v10  ;;  %10091 = vst [vmem:[#allocation18_spill] sm:$0xff] %v8667_v59  ;;  %v8679_v9 = vld [vmem:[#allocation3 + $0x18c] ss:$24 sps:$4 sm:$0xff]  }
 0x16c   :  { %v855_v24 = vadd.f32 %v853_v29, %v852_v13  ;;  %10093 = vst [vmem:[#allocation20_spill] sm:$0xff] %v8679_v9  ;;  %v8682_v10 = vld [vmem:[#allocation3 + $0x188] ss:$24 sps:$4 sm:$0xff]   ;;  %v8687_v12 = vld [vmem:[#allocation3 + $0x1b4] ss:$24 sps:$4 sm:$0xff]  }
 0x16d   :  { %7925 = vpow2.f32 %v6600_v16  ;;  %10094 = vst [vmem:[#allocation21_spill] sm:$0xff] %v8682_v10  ;;  %v8689_v13 = vld [vmem:[#allocation3 + $0x1b0] ss:$24 sps:$4 sm:$0xff]   ;;  %v8691_v16 = vld [vmem:[#allocation3 + $0x1bc] ss:$24 sps:$4 sm:$0xff]  }
 0x16e   :  { %10095 = vst [vmem:[#allocation22_spill] sm:$0xff] %v8691_v16  ;;  %v8694_v29 = vld [vmem:[#allocation3 + $0x1b8] ss:$24 sps:$4 sm:$0xff]  }
 0x16f   :  { %10096 = vst [vmem:[#allocation23_spill] sm:$0xff] %v8694_v29 }
 0x177   :  { %v7926_v19 = vpop.eup %7925 }
 0x178   :  { %v849_v22 = vadd.f32 1.0, %v7926_v19  ;;  %v8699_v19 = vld [vmem:[#allocation3 + $0x1e4] ss:$24 sps:$4 sm:$0xff]  }
 0x17a   :  { %7927 = vrcp.f32 %v849_v22  ;;  %v8701_v22 = vld [vmem:[#allocation3 + $0x1e0] ss:$24 sps:$4 sm:$0xff]  }
 0x17b   :  { %7929 = vtanh.f32 %v855_v24  ;;  %v8703_v24 = vld [vmem:[#allocation3 + $0x1ec] ss:$24 sps:$4 sm:$0xff]  }
 0x17c   :  { %10097 = vst [vmem:[#allocation24_spill] sm:$0xff] %v8703_v24 }
 0x184   :  { %v7928_v33 = vpop.eup %7927 }
 0x185   :  { %v857_v37 = vsub.f32 1.0, %v7928_v33  ;;  %v7930_v38 = vpop.eup %7929  ;;  %v861_v42 = vmul.f32 %v7928_v33, %v859_v26  ;;  %v8706_v26 = vld [vmem:[#allocation3 + $0x1e8] ss:$24 sps:$4 sm:$0xff]   ;;  %v8711_v33 = vld [vmem:[#allocation3 + $0x214] ss:$24 sps:$4 sm:$0xff]  }
 0x186   :  { %10098 = vst [vmem:[#allocation25_spill] sm:$0xff] %v8706_v26 }
 0x187   :  { %v858_v41 = vmul.f32 %v7930_v38, %v857_v37  ;;  %v8713_v37 = vld [vmem:[#allocation3 + $0x210] ss:$24 sps:$4 sm:$0xff]   ;;  %v8715_v38 = vld [vmem:[#allocation3 + $0x21c] ss:$24 sps:$4 sm:$0xff]  }
 0x188   :  { %10099 = vst [vmem:[#allocation26_spill] sm:$0xff] %v8715_v38 }
 0x189   :  { %v8540_v44 = vadd.f32 %v861_v42, %v858_v41  ;;  %v8718_v41 = vld [vmem:[#allocation3 + $0x218] ss:$24 sps:$4 sm:$0xff]  }
 0x18a   :  { %10100 = vst [vmem:[#allocation27_spill] sm:$0xff] %v8718_v41  ;;  %v8722_v42 = vld [vmem:[#allocation3 + $0x240] ss:$24 sps:$4 sm:$0xff]  }
 0x18b   :  { %v876_v45 = vpack.c.bf16 %v8540_v44, %v8540_v44  ;;  %v865_v47 = vcombine.low %v8528_v50, %v8540_v44 }
 0x18d   :  { %1517 = vmatprep.mubr.bf16.mxu1 %v876_v45  ;;  %1558 = vmatprep.mubr.bf16.mxu0 %v876_v45  ;;  %6601 = vst.sshfl [vmem:[%s9950_s4] sm:$0x33 pattern:$0x76325410] %v865_v47  ;;  %v8727_v47 = vld [vmem:[#allocation3 + $0x248] ss:$24 sps:$4 sm:$0xff]  }
 0x18e   :  { %1518 = vmatmul.mubr.bf16.vlgmr.msra.gmra.mrb[4].mxu1 %v875_v17  ;;  %1559 = vmatmul.mubr.bf16.vlgmr.msra.gmra.mrb[8].mxu0 %v875_v17  ;;  %10101 = vst [vmem:[#allocation28_spill] sm:$0xff] %v8727_v47 }
 0x18f   :  { %1568 = vmatpush1.bf16.msra.mxu1 %v8072_v46  ;;  %1599 = vmatprep.mubr.bf16.mxu1 %v876_v45  ;;  %v8724_v45 = vld [vmem:[#allocation3 + $0x244] ss:$24 sps:$4 sm:$0xff]   ;;  %v8731_v46 = vld [vmem:[#allocation3 + $0x274] ss:$24 sps:$4 sm:$0xff]  }
 0x190   :  { %1569 = vmatprep.subr.bf16.mxu1 %v8073_v49  ;;  %v8734_v49 = vld [vmem:[#allocation3 + $0x27c] ss:$24 sps:$4 sm:$0xff]  }
 0x191   :  { %10103 = vst [vmem:[#allocation30_spill] sm:$0xff] %v8734_v49 }
 0x193   :  { %1570 = vmatpush1.bf16.msra.mxu1 %v8074_v51  ;;  %v8738_v51 = vld [vmem:[#allocation3 + $0x270] ss:$24 sps:$4 sm:$0xff]  }
 0x194   :  { %1571 = vmatprep.subr.bf16.mxu1 %v8338_v35  ;;  %v8585_v35 = vld [vmem:[#allocation3 + $0xc] ss:$24 sps:$4 sm:$0xff]  }
 0x197   :  { %1572 = vmatpush1.bf16.msra.mxu1 %v10080_v54  ;;  %v8742_v54 = vld [vmem:[#allocation3 + $0x278] ss:$24 sps:$4 sm:$0xff]  }
 0x198   :  { %1573 = vmatprep.subr.bf16.mxu1 %v8347_v48  ;;  %v8579_v48 = vld [vmem:[#allocation3] ss:$24 sps:$4 sm:$0xff]   ;;  %10104 = vst [vmem:[#allocation31_spill] sm:$0xff] %v8742_v54 }
 0x19b   :  { %1574 = vmatpush1.bf16.msra.mxu1 %v8352_v56  ;;  %v8581_v56 = vld [vmem:[#allocation3 + $0x4] ss:$24 sps:$4 sm:$0xff]  }
 0x19c   :  { %1575 = vmatprep.subr.bf16.mxu1 %v8354_v27  ;;  %v8587_v27 = vld [vmem:[#allocation3 + $0x34] ss:$24 sps:$4 sm:$0xff]   ;;  %2287 = vmatprep.subr.bf16.mxu0 %v8581_v56 }
 0x19d   :  { %2288 = vmatpush1.bf16.msra.mxu0 %v8579_v48 }
 0x19e   :  { %2289 = vmatprep.subr.bf16.mxu0 %v8587_v27 }
 0x19f   :  { %1576 = vmatpush1.bf16.msra.mxu1 %v8360_v43  ;;  %v8590_v43 = vld [vmem:[#allocation3 + $0x3c] ss:$24 sps:$4 sm:$0xff]  }
 0x1a0   :  { %1577 = vmatprep.subr.bf16.mxu1 %v8363_v52  ;;  %v8594_v52 = vld [vmem:[#allocation3 + $0x30] ss:$24 sps:$4 sm:$0xff]  }
 0x1a1   :  { %2290 = vmatpush1.bf16.msra.mxu0 %v8594_v52 }
 0x1a3   :  { %1578 = vmatpush1.bf16.msra.mxu1 %v8369_v60  ;;  %v8598_v60 = vld [vmem:[#allocation3 + $0x38] ss:$24 sps:$4 sm:$0xff]  }
 0x1a4   :  { %1579 = vmatprep.subr.bf16.mxu1 %v8371_v63  ;;  %v8583_v63 = vld [vmem:[#allocation3 + $0x8] ss:$24 sps:$4 sm:$0xff]  }
 0x1a7   :  { %1580 = vmatpush1.bf16.msra.mxu1 %v8377_v1  ;;  %v8600_v1 = vld [vmem:[#allocation3 + $0x64] ss:$24 sps:$4 sm:$0xff]  }
 0x1a8   :  { %1581 = vmatprep.subr.bf16.mxu1 %v8379_v2  ;;  %v8603_v2 = vld [vmem:[#allocation3 + $0x6c] ss:$24 sps:$4 sm:$0xff]   ;;  %2291 = vmatprep.subr.bf16.mxu0 %v8600_v1 }
 0x1a9   :  { %10081 = vst [vmem:[#allocation9_spill] sm:$0xff] %v8603_v2 }
 0x1ab   :  { %1582 = vmatpush1.bf16.msra.mxu1 %v8385_v3  ;;  %v8606_v3 = vld [vmem:[#allocation3 + $0x60] ss:$24 sps:$4 sm:$0xff]  }
 0x1ac   :  { %1583 = vmatprep.subr.bf16.mxu1 %v8387_v4  ;;  %v8610_v4 = vld [vmem:[#allocation3 + $0x68] ss:$24 sps:$4 sm:$0xff]   ;;  %2292 = vmatpush1.bf16.msra.mxu0 %v8606_v3 }
 0x1ad   :  { %10082 = vst [vmem:[#allocation10_spill] sm:$0xff] %v8610_v4 }
 0x1af   :  { %1584 = vmatpush1.bf16.msra.mxu1 %v8393_v5  ;;  %v8612_v5 = vld [vmem:[#allocation3 + $0x94] ss:$24 sps:$4 sm:$0xff]  }
 0x1b0   :  { %1585 = vmatprep.subr.bf16.mxu1 %v8395_v6  ;;  %v8615_v6 = vld [vmem:[#allocation3 + $0x9c] ss:$24 sps:$4 sm:$0xff]   ;;  %2293 = vmatprep.subr.bf16.mxu0 %v8612_v5 }
 0x1b1   :  { %10083 = vst [vmem:[#allocation11_spill] sm:$0xff] %v8615_v6 }
 0x1b3   :  { %1586 = vmatpush1.bf16.msra.mxu1 %v8401_v7  ;;  %v8618_v7 = vld [vmem:[#allocation3 + $0x90] ss:$24 sps:$4 sm:$0xff]  }
 0x1b4   :  { %1587 = vmatprep.subr.bf16.mxu1 %v8403_v8  ;;  %v8622_v8 = vld [vmem:[#allocation3 + $0x98] ss:$24 sps:$4 sm:$0xff]   ;;  %2294 = vmatpush1.bf16.msra.mxu0 %v8618_v7 }
 0x1b5   :  { %10084 = vst [vmem:[#allocation12_spill] sm:$0xff] %v8622_v8 }
 0x1b7   :  { %1588 = vmatpush1.bf16.msra.mxu1 %v8409_v11  ;;  %v8624_v11 = vld [vmem:[#allocation3 + $0xc4] ss:$24 sps:$4 sm:$0xff]  }
 0x1b8   :  { %1589 = vmatprep.subr.bf16.mxu1 %v8411_v14  ;;  %v8627_v14 = vld [vmem:[#allocation3 + $0xcc] ss:$24 sps:$4 sm:$0xff]   ;;  %2295 = vmatprep.subr.bf16.mxu0 %v8624_v11 }
 0x1b9   :  { %10085 = vst [vmem:[#allocation13_spill] sm:$0xff] %v8627_v14 }
 0x1bb   :  { %1590 = vmatpush1.bf16.msra.mxu1 %v8417_v15  ;;  %v8630_v15 = vld [vmem:[#allocation3 + $0xc0] ss:$24 sps:$4 sm:$0xff]  }
 0x1bc   :  { %1591 = vmatprep.subr.bf16.mxu1 %v8419_v18  ;;  %v8634_v18 = vld [vmem:[#allocation3 + $0xc8] ss:$24 sps:$4 sm:$0xff]   ;;  %2296 = vmatpush1.bf16.msra.mxu0 %v8630_v15 }
 0x1bd   :  { %10086 = vst [vmem:[#allocation14_spill] sm:$0xff] %v8634_v18 }
 0x1bf   :  { %1592 = vmatpush1.bf16.msra.mxu1 %v8425_v20  ;;  %v8636_v20 = vld [vmem:[#allocation3 + $0xf4] ss:$24 sps:$4 sm:$0xff]  }
 0x1c0   :  { %1593 = vmatprep.subr.bf16.mxu1 %v8427_v21  ;;  %v8639_v21 = vld [vmem:[#allocation3 + $0xfc] ss:$24 sps:$4 sm:$0xff]   ;;  %2297 = vmatprep.subr.bf16.mxu0 %v8636_v20 }
 0x1c1   :  { %10087 = vst [vmem:[#allocation15_spill] sm:$0xff] %v8639_v21 }
 0x1c3   :  { %1594 = vmatpush1.bf16.msra.mxu1 %v8433_v25  ;;  %v8642_v25 = vld [vmem:[#allocation3 + $0xf0] ss:$24 sps:$4 sm:$0xff]  }
 0x1c4   :  { %1595 = vmatprep.subr.bf16.mxu1 %v8435_v28  ;;  %v8646_v28 = vld [vmem:[#allocation3 + $0xf8] ss:$24 sps:$4 sm:$0xff]   ;;  %2298 = vmatpush1.bf16.msra.mxu0 %v8642_v25 }
 0x1c5   :  { %10088 = vst [vmem:[#allocation16_spill] sm:$0xff] %v8646_v28 }
 0x1c7   :  { %1596 = vmatpush1.bf16.msra.mxu1 %v8441_v30  ;;  %v8648_v30 = vld [vmem:[#allocation3 + $0x124] ss:$24 sps:$4 sm:$0xff]  }
 0x1c8   :  { %1597 = vmatprep.subr.bf16.mxu1 %v8443_v31  ;;  %v8652_v31 = vld [vmem:[#allocation3 + $0x120] ss:$24 sps:$4 sm:$0xff]   ;;  %2299 = vmatprep.subr.bf16.mxu0 %v8648_v30 }
 0x1c9   :  { %2300 = vmatpush1.bf16.msra.mxu0 %v8652_v31 }
 0x1ca   :  { %2301 = vmatprep.subr.bf16.mxu0 %v8663_v57 }
 0x1cb   :  { %1598 = vmatpush1.bf16.msra.mxu1 %v8449_v34  ;;  %v8657_v34 = vld [vmem:[#allocation3 + $0x12c] ss:$24 sps:$4 sm:$0xff]  }
 0x1cc   :  { %2328 = vmatprep.subr.bf16.mxu1 %v8585_v35  ;;  %10089 = vst [vmem:[#allocation6_spill] sm:$0xff] %v8657_v34 }
 0x1cd   :  { %2302 = vmatpush1.bf16.msra.mxu0 %v8665_v58 }
 0x1ce   :  { %1600 = vmatmul.mubr.bf16.vlgmr.msra.gmra.mrb[8].mxu1 %v875_v17  ;;  %2303 = vmatprep.subr.bf16.mxu0 %v8675_v62  ;;  %v8729_v17 = vld [vmem:[#allocation3 + $0x24c] ss:$24 sps:$4 sm:$0xff]  }
 0x1cf   :  { %2329 = vmatpush1.bf16.msra.mxu1 %v8583_v63  ;;  %10102 = vst [vmem:[#allocation29_spill] sm:$0xff] %v8729_v17 }
 0x1d0   :  { %2330 = vmatprep.subr.bf16.mxu1 %v8590_v43 }
 0x1d1   :  { %2304 = vmatpush1.bf16.msra.mxu0 %v8677_v40 }
 0x1d2   :  { %2305 = vmatprep.subr.bf16.mxu0 %v8687_v12 }
 0x1d3   :  { %2331 = vmatpush1.bf16.msra.mxu1 %v8598_v60 }
 0x1d4   :  { %2332 = vmatprep.subr.bf16.mxu1 %v8603_v2 }
 0x1d5   :  { %2306 = vmatpush1.bf16.msra.mxu0 %v8689_v13 }
 0x1d6   :  { %2307 = vmatprep.subr.bf16.mxu0 %v8699_v19 }
 0x1d7   :  { %2333 = vmatpush1.bf16.msra.mxu1 %v8610_v4 }
 0x1d8   :  { %2334 = vmatprep.subr.bf16.mxu1 %v8615_v6 }
 0x1d9   :  { %2308 = vmatpush1.bf16.msra.mxu0 %v8701_v22 }
 0x1da   :  { %2309 = vmatprep.subr.bf16.mxu0 %v8711_v33 }
 0x1db   :  { %2335 = vmatpush1.bf16.msra.mxu1 %v8622_v8 }
 0x1dc   :  { %2336 = vmatprep.subr.bf16.mxu1 %v8627_v14 }
 0x1dd   :  { %2310 = vmatpush1.bf16.msra.mxu0 %v8713_v37 }
 0x1de   :  { %2311 = vmatprep.subr.bf16.mxu0 %v8724_v45 }
 0x1df   :  { %2337 = vmatpush1.bf16.msra.mxu1 %v8634_v18 }
 0x1e0   :  { %2338 = vmatprep.subr.bf16.mxu1 %v8639_v21 }
 0x1e1   :  { %2312 = vmatpush1.bf16.msra.mxu0 %v8722_v42 }
 0x1e2   :  { %2313 = vmatprep.subr.bf16.mxu0 %v8731_v46 }
 0x1e3   :  { %2339 = vmatpush1.bf16.msra.mxu1 %v8646_v28 }
 0x1e4   :  { %2340 = vmatprep.subr.bf16.mxu1 %v8657_v34 }
 0x1e5   :  { %2314 = vmatpush1.bf16.msra.mxu0 %v8738_v51 }
 0x1e7   :  { %2341 = vmatpush1.bf16.msra.mxu1 %v8659_v55 }
 0x1e8   :  { %2342 = vmatprep.subr.bf16.mxu1 %v8667_v59 }
 0x1eb   :  { %2343 = vmatpush1.bf16.msra.mxu1 %v8670_v61 }
 0x1ec   :  { %2344 = vmatprep.subr.bf16.mxu1 %v8679_v9 }
 0x1ef   :  { %2345 = vmatpush1.bf16.msra.mxu1 %v8682_v10 }
 0x1f0   :  { %2346 = vmatprep.subr.bf16.mxu1 %v8691_v16 }
 0x1f3   :  { %2347 = vmatpush1.bf16.msra.mxu1 %v8694_v29  ;;  %v8766_v29 = vld [vmem:[#allocation3 + $0x2d8] ss:$24 sps:$4 sm:$0xff]  }
 0x1f4   :  { %2348 = vmatprep.subr.bf16.mxu1 %v8703_v24  ;;  %v8759_v24 = vld [vmem:[#allocation3 + $0x2dc] ss:$24 sps:$4 sm:$0xff]   ;;  %10108 = vst [vmem:[#allocation35_spill] sm:$0xff] %v8766_v29 }
 0x1f5   :  { %10107 = vst [vmem:[#allocation34_spill] sm:$0xff] %v8759_v24 }
 0x1f7   :  { %2349 = vmatpush1.bf16.msra.mxu1 %v8706_v26  ;;  %v8750_v26 = vld [vmem:[#allocation3 + $0x2a0] ss:$24 sps:$4 sm:$0xff]  }
 0x1f8   :  { %2350 = vmatprep.subr.bf16.mxu1 %v8715_v38  ;;  %v8747_v38 = vld [vmem:[#allocation3 + $0x2ac] ss:$24 sps:$4 sm:$0xff]  }
 0x1f9   :  { %10105 = vst [vmem:[#allocation32_spill] sm:$0xff] %v8747_v38 }
 0x1fb   :  { %2351 = vmatpush1.bf16.msra.mxu1 %v8718_v41  ;;  %v8744_v41 = vld [vmem:[#allocation3 + $0x2a4] ss:$24 sps:$4 sm:$0xff]  }
 0x1fc   :  { %2352 = vmatprep.subr.bf16.mxu1 %v8729_v17  ;;  %2315 = vmatprep.subr.bf16.mxu0 %v8744_v41  ;;  %v8754_v17 = vld [vmem:[#allocation3 + $0x2a8] ss:$24 sps:$4 sm:$0xff]  }
 0x1fd   :  { %10106 = vst [vmem:[#allocation33_spill] sm:$0xff] %v8754_v17  ;;  %2316 = vmatpush1.bf16.msra.mxu0 %v8750_v26 }
 0x1ff   :  { %2353 = vmatpush1.bf16.msra.mxu1 %v8727_v47  ;;  %v8756_v47 = vld [vmem:[#allocation3 + $0x2d4] ss:$24 sps:$4 sm:$0xff]  }
 0x200   :  { %2354 = vmatprep.subr.bf16.mxu1 %v8734_v49  ;;  %v8762_v49 = vld [vmem:[#allocation3 + $0x2d0] ss:$24 sps:$4 sm:$0xff]   ;;  %2317 = vmatprep.subr.bf16.mxu0 %v8756_v47 }
 0x201   :  { %2318 = vmatpush1.bf16.msra.mxu0 %v8762_v49 }
 0x203   :  { %2355 = vmatpush1.bf16.msra.mxu1 %v8742_v54  ;;  %v8771_v54 = vld [vmem:[#allocation3 + $0x14] ss:$24 sps:$4 sm:$0xff]  }
 0x204   :  { %2356 = vmatprep.subr.bf16.mxu1 %v8747_v38  ;;  %2369 = vmatprep.subr.bf16.mxu0 %v8771_v54 }
 0x207   :  { %2357 = vmatpush1.bf16.msra.mxu1 %v8754_v17  ;;  %v973_v17 = vld [vmem:[%s9949_s3] sm:$0x3f] }
 0x208   :  { %2358 = vmatprep.subr.bf16.mxu1 %v8759_v24  ;;  %v978_v38 = vrot.slane %v973_v17, %v8498_v32  ;;  %v982_v16 = vrot.slane %v973_v17, %v8506_v36  ;;  %v6698_v24 = vld [vmem:[%s9946_s0 + $0x6] sm:$0x3f] }
 0x209   :  { %v1618_v55 = vrot.slane %v6698_v24, 2 }
 0x20b   :  { %2359 = vmatpush1.bf16.msra.mxu1 %v8766_v29 }
 0x20c   :  { %3089 = vmatprep.subr.bf16.mxu1 %v8581_v56 }
 0x261   :  { %v1519_v10 = vpop.f32.mrb[4].mxu1  ;;  %v1560_v29 = vpop.f32.mrb[8].mxu0 }
 0x262   :  { %v1520_v9 = vadd.f32 %v1519_v10, %v978_v38  ;;  %v1521_v61 = vpop.f32.mrb[5].mxu1  ;;  %v1562_v59 = vpop.f32.mrb[9].mxu0  ;;  %v990_v10 = vrot.slane %v973_v17, %v8516_v0  ;;  %v986_v38 = vrot.slane %v973_v17, %v8519_v23 }
 0x263   :  { %v1522_v56 = vadd.f32 %v1521_v61, %v982_v16  ;;  %v1523_v34 = vpop.f32.mrb[6].mxu1  ;;  %v1564_v28 = vpop.f32.mrb[10].mxu0 }
 0x264   :  { %v1610_v21 = vadd.f32 %v6698_v24, %v1520_v9  ;;  %v1524_v18 = vpop.f32.mrb[7].mxu1  ;;  %v1565_v14 = vpop.f32.mrb[11].mxu0  ;;  %v1563_v16 = vadd.f32 %v1562_v59, %v990_v10  ;;  %v1561_v34 = vadd.f32 %v1560_v29, %v986_v38  ;;  %v1628_v28 = vrot.slane %v6698_v24, 4 }
 0x265   :  { %v1620_v32 = vadd.f32 %v1618_v55, %v1522_v56  ;;  %v6701_v14 = vld [vmem:[%s9947_s1 + $0x24] sm:$0x3f]  ;;  %v994_v56 = vrot.slane %v973_v17, %v8531_v39  ;;  %v998_v10 = vrot.slane %v973_v17, %v8534_v53 }
 0x266   :  { %v6699_v8 = vmul.f32 -1.442695, %v1610_v21  ;;  %v1646_v38 = vrot.slane %v6701_v14, 2 }
 0x267   :  { %v6700_v36 = vmul.f32 -1.442695, %v1620_v32  ;;  %v1638_v32 = vadd.f32 %v6701_v14, %v1563_v16 }
 0x268   :  { %7931 = vpow2.f32 %v6699_v8 }
 0x269   :  { %7933 = vpow2.f32 %v6700_v36 }
 0x272   :  { %v7932_v6 = vpop.eup %7931 }
 0x273   :  { %v1614_v4 = vadd.f32 1.0, %v7932_v6  ;;  %v7934_v2 = vpop.eup %7933 }
 0x274   :  { %v1624_v61 = vadd.f32 1.0, %v7934_v2 }
 0x275   :  { %7935 = vrcp.f32 %v1614_v4  ;;  %v6702_v4 = vmul.f32 -1.442695, %v1638_v32 }
 0x276   :  { %7937 = vrcp.f32 %v1624_v61 }
 0x27f   :  { %v7936_v18 = vpop.eup %7935 }
 0x280   :  { %v1627_v8 = vmul.f32 %v7936_v18, %v1561_v34  ;;  %v7938_v6 = vpop.eup %7937 }
 0x281   :  { %v1632_v21 = vsub.f32 1.0, %v7938_v6  ;;  %v1634_v2 = vmul.f32 %v7938_v6, %v8528_v50  ;;  %v1656_v6 = vrot.slane %v6701_v14, 4 }
 0x282   :  { %v1630_v36 = vadd.f32 %v1628_v28, %v1627_v8 }
 0x284   :  { %7939 = vtanh.f32 %v1630_v36 }
 0x285   :  { %7941 = vpow2.f32 %v6702_v4 }
 0x28e   :  { %v7940_v55 = vpop.eup %7939 }
 0x28f   :  { %v1633_v9 = vmul.f32 %v7940_v55, %v1632_v21  ;;  %v7942_v29 = vpop.eup %7941 }
 0x290   :  { %v1642_v24 = vadd.f32 1.0, %v7942_v29 }
 0x291   :  { %v8789_v59 = vadd.f32 %v1634_v2, %v1633_v9 }
 0x292   :  { %7943 = vrcp.f32 %v1642_v24 }
 0x29c   :  { %v7944_v8 = vpop.eup %7943 }
 0x2a1   :  { %v1601_v61 = vpop.f32.mrb[8].mxu1 }
 0x2a2   :  { %v1602_v16 = vadd.f32 %v1601_v61, %v994_v56  ;;  %v1603_v34 = vpop.f32.mrb[9].mxu1  ;;  %v8798_v61 = vld [vmem:[#allocation3 + $0x10] ss:$24 sps:$4 sm:$0xff]  }
 0x2a3   :  { %v1604_v28 = vadd.f32 %v1603_v34, %v998_v10  ;;  %v1605_v18 = vpop.f32.mrb[10].mxu1  ;;  %v8806_v34 = vld [vmem:[#allocation3 + $0x44] ss:$24 sps:$4 sm:$0xff]  }
 0x2a4   :  { %v1648_v32 = vadd.f32 %v1646_v38, %v1602_v16  ;;  %v1606_v36 = vpop.f32.mrb[11].mxu1  ;;  %v8804_v16 = vpack.c.bf16 %v8789_v59, %v8789_v59  ;;  %v8822_v18 = vld [vmem:[#allocation3 + $0x70] ss:$24 sps:$4 sm:$0xff]  }
 0x2a5   :  { %v1655_v4 = vmul.f32 %v7944_v8, %v1604_v28  ;;  %v8817_v28 = vld [vmem:[#allocation3 + $0x74] ss:$24 sps:$4 sm:$0xff]   ;;  %v8825_v8 = vld [vmem:[#allocation3 + $0xa4] ss:$24 sps:$4 sm:$0xff]  }
 0x2a6   :  { %v6703_v50 = vmul.f32 -1.442695, %v1648_v32  ;;  %v8830_v32 = vld [vmem:[#allocation3 + $0xa0] ss:$24 sps:$4 sm:$0xff]   ;;  %v10121_v36 = vld [vmem:[#allocation20_spill] sm:$0xff] }
 0x2a7   :  { %v1658_v9 = vadd.f32 %v1656_v6, %v1655_v4  ;;  %v10122_v4 = vld [vmem:[#allocation21_spill] sm:$0xff]  ;;  %v10124_v6 = vld [vmem:[#allocation23_spill] sm:$0xff] }
 0x2a8   :  { %7945 = vpow2.f32 %v6703_v50  ;;  %v10123_v50 = vld [vmem:[#allocation22_spill] sm:$0xff] }
 0x2b2   :  { %v7946_v21 = vpop.eup %7945 }
 0x2b3   :  { %v1652_v55 = vadd.f32 1.0, %v7946_v21  ;;  %v10125_v21 = vld [vmem:[#allocation24_spill] sm:$0xff] }
 0x2b5   :  { %7947 = vrcp.f32 %v1652_v55  ;;  %v10126_v55 = vld [vmem:[#allocation25_spill] sm:$0xff] }
 0x2b6   :  { %7949 = vtanh.f32 %v1658_v9  ;;  %v10127_v9 = vld [vmem:[#allocation26_spill] sm:$0xff] }
 0x2bf   :  { %v7948_v2 = vpop.eup %7947 }
 0x2c0   :  { %v1660_v17 = vsub.f32 1.0, %v7948_v2  ;;  %v7950_v29 = vpop.eup %7949  ;;  %v1662_v56 = vmul.f32 %v7948_v2, %v8540_v44  ;;  %v8814_v44 = vld [vmem:[#allocation3 + $0x40] ss:$24 sps:$4 sm:$0xff]   ;;  %v10128_v2 = vld [vmem:[#allocation27_spill] sm:$0xff] }
 0x2c2   :  { %v1661_v24 = vmul.f32 %v7950_v29, %v1660_v17  ;;  %v10129_v17 = vld [vmem:[#allocation29_spill] sm:$0xff]  ;;  %v10130_v29 = vld [vmem:[#allocation28_spill] sm:$0xff] }
 0x2c4   :  { %v8794_v10 = vadd.f32 %v1662_v56, %v1661_v24  ;;  %v10131_v24 = vld [vmem:[#allocation30_spill] sm:$0xff]  ;;  %v10132_v56 = vld [vmem:[#allocation31_spill] sm:$0xff] }
 0x2c6   :  { %v1678_v38 = vpack.c.bf16 %v8794_v10, %v8794_v10  ;;  %v1666_v14 = vcombine.low %v8789_v59, %v8794_v10 }
 0x2c8   :  { %2319 = vmatprep.mubr.bf16.mxu0 %v1678_v38  ;;  %2360 = vmatprep.mubr.bf16.mxu1 %v1678_v38  ;;  %7323 = vst.sshfl [vmem:[%s9950_s4 + $0x4] sm:$0x33 pattern:$0x76325410] %v1666_v14  ;;  %v10134_v14 = vld [vmem:[#allocation33_spill] sm:$0xff] }
 0x2c9   :  { %2320 = vmatmul.mubr.bf16.vlgmr.msra.gmra.mrb[12].mxu0 %v8804_v16  ;;  %2361 = vmatmul.mubr.bf16.vlgmr.msra.gmra.mrb[12].mxu1 %v8804_v16 }
 0x2ca   :  { %2370 = vmatpush1.bf16.msra.mxu0 %v8798_v61  ;;  %2401 = vmatprep.mubr.bf16.mxu0 %v1678_v38  ;;  %v10133_v38 = vld [vmem:[#allocation32_spill] sm:$0xff] }
 0x2cb   :  { %2371 = vmatprep.subr.bf16.mxu0 %v8806_v34  ;;  %3090 = vmatpush1.bf16.msra.mxu1 %v8579_v48  ;;  %v8833_v48 = vld [vmem:[#allocation3 + $0xd4] ss:$24 sps:$4 sm:$0xff]  }
 0x2cc   :  { %3091 = vmatprep.subr.bf16.mxu1 %v8587_v27  ;;  %v8838_v27 = vld [vmem:[#allocation3 + $0xd0] ss:$24 sps:$4 sm:$0xff]  }
 0x2ce   :  { %2372 = vmatpush1.bf16.msra.mxu0 %v8814_v44 }
 0x2cf   :  { %2373 = vmatprep.subr.bf16.mxu0 %v8817_v28  ;;  %3092 = vmatpush1.bf16.msra.mxu1 %v8594_v52  ;;  %v8841_v52 = vld [vmem:[#allocation3 + $0x104] ss:$24 sps:$4 sm:$0xff]  }
 0x2d0   :  { %3093 = vmatprep.subr.bf16.mxu1 %v8600_v1  ;;  %v8846_v1 = vld [vmem:[#allocation3 + $0x100] ss:$24 sps:$4 sm:$0xff]  }
 0x2d2   :  { %2374 = vmatpush1.bf16.msra.mxu0 %v8822_v18 }
 0x2d3   :  { %2375 = vmatprep.subr.bf16.mxu0 %v8825_v8  ;;  %3094 = vmatpush1.bf16.msra.mxu1 %v8606_v3  ;;  %v8849_v3 = vld [vmem:[#allocation3 + $0x134] ss:$24 sps:$4 sm:$0xff]  }
 0x2d4   :  { %3095 = vmatprep.subr.bf16.mxu1 %v8612_v5  ;;  %v8854_v5 = vld [vmem:[#allocation3 + $0x130] ss:$24 sps:$4 sm:$0xff]  }
 0x2d6   :  { %2376 = vmatpush1.bf16.msra.mxu0 %v8830_v32 }
 0x2d7   :  { %2377 = vmatprep.subr.bf16.mxu0 %v8833_v48  ;;  %3096 = vmatpush1.bf16.msra.mxu1 %v8618_v7  ;;  %v8857_v7 = vld [vmem:[#allocation3 + $0x164] ss:$24 sps:$4 sm:$0xff]  }
 0x2d8   :  { %3097 = vmatprep.subr.bf16.mxu1 %v8624_v11  ;;  %v8862_v11 = vld [vmem:[#allocation3 + $0x160] ss:$24 sps:$4 sm:$0xff]  }
 0x2da   :  { %2378 = vmatpush1.bf16.msra.mxu0 %v8838_v27 }
 0x2db   :  { %2379 = vmatprep.subr.bf16.mxu0 %v8841_v52  ;;  %3098 = vmatpush1.bf16.msra.mxu1 %v8630_v15  ;;  %v8865_v15 = vld [vmem:[#allocation3 + $0x194] ss:$24 sps:$4 sm:$0xff]  }
 0x2dc   :  { %3099 = vmatprep.subr.bf16.mxu1 %v8636_v20  ;;  %v8870_v20 = vld [vmem:[#allocation3 + $0x190] ss:$24 sps:$4 sm:$0xff]  }
 0x2de   :  { %2380 = vmatpush1.bf16.msra.mxu0 %v8846_v1 }
 0x2df   :  { %2381 = vmatprep.subr.bf16.mxu0 %v8849_v3  ;;  %3100 = vmatpush1.bf16.msra.mxu1 %v8642_v25  ;;  %v8873_v25 = vld [vmem:[#allocation3 + $0x1c4] ss:$24 sps:$4 sm:$0xff]  }
 0x2e0   :  { %3101 = vmatprep.subr.bf16.mxu1 %v8648_v30  ;;  %v8878_v30 = vld [vmem:[#allocation3 + $0x1c0] ss:$24 sps:$4 sm:$0xff]  }
 0x2e2   :  { %2382 = vmatpush1.bf16.msra.mxu0 %v8854_v5 }
 0x2e3   :  { %2383 = vmatprep.subr.bf16.mxu0 %v8857_v7  ;;  %3102 = vmatpush1.bf16.msra.mxu1 %v8652_v31  ;;  %v8881_v31 = vld [vmem:[#allocation3 + $0x1f4] ss:$24 sps:$4 sm:$0xff]  }
 0x2e4   :  { %3103 = vmatprep.subr.bf16.mxu1 %v8663_v57  ;;  %v8886_v57 = vld [vmem:[#allocation3 + $0x1f0] ss:$24 sps:$4 sm:$0xff]  }
 0x2e6   :  { %2384 = vmatpush1.bf16.msra.mxu0 %v8862_v11 }
 0x2e7   :  { %2385 = vmatprep.subr.bf16.mxu0 %v8865_v15  ;;  %3104 = vmatpush1.bf16.msra.mxu1 %v8665_v58  ;;  %v8889_v58 = vld [vmem:[#allocation3 + $0x224] ss:$24 sps:$4 sm:$0xff]  }
 0x2e8   :  { %3105 = vmatprep.subr.bf16.mxu1 %v8675_v62  ;;  %v8894_v62 = vld [vmem:[#allocation3 + $0x220] ss:$24 sps:$4 sm:$0xff]  }
 0x2ea   :  { %2386 = vmatpush1.bf16.msra.mxu0 %v8870_v20 }
 0x2eb   :  { %2387 = vmatprep.subr.bf16.mxu0 %v8873_v25  ;;  %3106 = vmatpush1.bf16.msra.mxu1 %v8677_v40  ;;  %v8897_v40 = vld [vmem:[#allocation3 + $0x254] ss:$24 sps:$4 sm:$0xff]  }
 0x2ec   :  { %3107 = vmatprep.subr.bf16.mxu1 %v8687_v12  ;;  %v8902_v12 = vld [vmem:[#allocation3 + $0x250] ss:$24 sps:$4 sm:$0xff]  }
 0x2ee   :  { %2388 = vmatpush1.bf16.msra.mxu0 %v8878_v30 }
 0x2ef   :  { %2389 = vmatprep.subr.bf16.mxu0 %v8881_v31  ;;  %3108 = vmatpush1.bf16.msra.mxu1 %v8689_v13  ;;  %v8905_v13 = vld [vmem:[#allocation3 + $0x284] ss:$24 sps:$4 sm:$0xff]  }
 0x2f0   :  { %3109 = vmatprep.subr.bf16.mxu1 %v8699_v19  ;;  %v8910_v19 = vld [vmem:[#allocation3 + $0x280] ss:$24 sps:$4 sm:$0xff]  }
 0x2f2   :  { %2390 = vmatpush1.bf16.msra.mxu0 %v8886_v57 }
 0x2f3   :  { %2391 = vmatprep.subr.bf16.mxu0 %v8889_v58  ;;  %3110 = vmatpush1.bf16.msra.mxu1 %v8701_v22  ;;  %v8913_v22 = vld [vmem:[#allocation3 + $0x2b4] ss:$24 sps:$4 sm:$0xff]  }
 0x2f4   :  { %3111 = vmatprep.subr.bf16.mxu1 %v8711_v33  ;;  %v8918_v33 = vld [vmem:[#allocation3 + $0x2b0] ss:$24 sps:$4 sm:$0xff]  }
 0x2f6   :  { %2392 = vmatpush1.bf16.msra.mxu0 %v8894_v62 }
 0x2f7   :  { %2393 = vmatprep.subr.bf16.mxu0 %v8897_v40  ;;  %3112 = vmatpush1.bf16.msra.mxu1 %v8713_v37  ;;  %v8921_v37 = vld [vmem:[#allocation3 + $0x2e4] ss:$24 sps:$4 sm:$0xff]  }
 0x2f8   :  { %3113 = vmatprep.subr.bf16.mxu1 %v8724_v45  ;;  %v8926_v45 = vld [vmem:[#allocation3 + $0x2e0] ss:$24 sps:$4 sm:$0xff]  }
 0x2fa   :  { %2394 = vmatpush1.bf16.msra.mxu0 %v8902_v12 }
 0x2fb   :  { %2395 = vmatprep.subr.bf16.mxu0 %v8905_v13  ;;  %3114 = vmatpush1.bf16.msra.mxu1 %v8722_v42  ;;  %v10111_v42 = vld [vmem:[#allocation11_spill] sm:$0xff] }
 0x2fc   :  { %3115 = vmatprep.subr.bf16.mxu1 %v8731_v46  ;;  %v10114_v46 = vld [vmem:[#allocation14_spill] sm:$0xff] }
 0x2fe   :  { %2396 = vmatpush1.bf16.msra.mxu0 %v8910_v19 }
 0x2ff   :  { %2397 = vmatprep.subr.bf16.mxu0 %v8913_v22  ;;  %3116 = vmatpush1.bf16.msra.mxu1 %v8738_v51  ;;  %v10116_v51 = vld [vmem:[#allocation16_spill] sm:$0xff] }
 0x300   :  { %3117 = vmatprep.subr.bf16.mxu1 %v8744_v41  ;;  %v10109_v41 = vld [vmem:[#allocation9_spill] sm:$0xff] }
 0x302   :  { %2398 = vmatpush1.bf16.msra.mxu0 %v8918_v33 }
 0x303   :  { %2399 = vmatprep.subr.bf16.mxu0 %v8921_v37  ;;  %3118 = vmatpush1.bf16.msra.mxu1 %v8750_v26  ;;  %v10110_v26 = vld [vmem:[#allocation10_spill] sm:$0xff] }
 0x304   :  { %3119 = vmatprep.subr.bf16.mxu1 %v8756_v47  ;;  %v10112_v47 = vld [vmem:[#allocation12_spill] sm:$0xff] }
 0x306   :  { %2400 = vmatpush1.bf16.msra.mxu0 %v8926_v45 }
 0x307   :  { %3130 = vmatprep.subr.bf16.mxu0 %v8585_v35  ;;  %3120 = vmatpush1.bf16.msra.mxu1 %v8762_v49  ;;  %v10113_v35 = vld [vmem:[#allocation13_spill] sm:$0xff]  ;;  %v10115_v49 = vld [vmem:[#allocation15_spill] sm:$0xff] }
 0x308   :  { %3171 = vmatprep.subr.bf16.mxu1 %v8771_v54  ;;  %v10120_v54 = vld [vmem:[#allocation19_spill] sm:$0xff] }
 0x309   :  { %2402 = vmatmul.mubr.bf16.vlgmr.msra.gmra.mrb[16].mxu0 %v8804_v16  ;;  %v10135_v16 = vld [vmem:[#allocation34_spill] sm:$0xff] }
 0x30a   :  { %3131 = vmatpush1.bf16.msra.mxu0 %v8583_v63  ;;  %v10117_v63 = vld [vmem:[#allocation6_spill] sm:$0xff] }
 0x30b   :  { %3132 = vmatprep.subr.bf16.mxu0 %v8590_v43  ;;  %v10118_v43 = vld [vmem:[#allocation17_spill] sm:$0xff] }
 0x30e   :  { %3133 = vmatpush1.bf16.msra.mxu0 %v8598_v60  ;;  %v10119_v60 = vld [vmem:[#allocation18_spill] sm:$0xff] }
 0x30f   :  { %3134 = vmatprep.subr.bf16.mxu0 %v10109_v41  ;;  %v10136_v41 = vld [vmem:[#allocation35_spill] sm:$0xff] }
 0x312   :  { %3135 = vmatpush1.bf16.msra.mxu0 %v10110_v26  ;;  %v1775_v26 = vld [vmem:[%s9949_s3] sm:$0x3f] }
 0x313   :  { %3136 = vmatprep.subr.bf16.mxu0 %v10111_v42  ;;  %v10137_v42 = vld [vmem:[#allocation7_spill] sm:$0xff] }
 0x316   :  { %3137 = vmatpush1.bf16.msra.mxu0 %v10112_v47  ;;  %v1780_v47 = vrot.slane %v1775_v26, %v10137_v42 }
 0x317   :  { %3138 = vmatprep.subr.bf16.mxu0 %v10113_v35  ;;  %v10138_v35 = vld [vmem:[#allocation8_spill] sm:$0xff] }
 0x31a   :  { %3139 = vmatpush1.bf16.msra.mxu0 %v10114_v46  ;;  %v1784_v46 = vrot.slane %v1775_v26, %v10138_v35 }
 0x31b   :  { %3140 = vmatprep.subr.bf16.mxu0 %v10115_v49  ;;  %v6801_v49 = vld [vmem:[%s9946_s0 + $0xc] sm:$0x3f] }
 0x31e   :  { %3141 = vmatpush1.bf16.msra.mxu0 %v10116_v51 }
 0x31f   :  { %3142 = vmatprep.subr.bf16.mxu0 %v10117_v63 }
 0x322   :  { %3143 = vmatpush1.bf16.msra.mxu0 %v10118_v43 }
 0x323   :  { %3144 = vmatprep.subr.bf16.mxu0 %v10119_v60 }
 0x326   :  { %3145 = vmatpush1.bf16.msra.mxu0 %v10120_v54 }
 0x327   :  { %3146 = vmatprep.subr.bf16.mxu0 %v10121_v36 }
 0x32a   :  { %3147 = vmatpush1.bf16.msra.mxu0 %v10122_v4  ;;  %v2420_v4 = vrot.slane %v6801_v49, 2 }
 0x32b   :  { %3148 = vmatprep.subr.bf16.mxu0 %v10123_v50 }
 0x32e   :  { %3149 = vmatpush1.bf16.msra.mxu0 %v10124_v6 }
 0x32f   :  { %3150 = vmatprep.subr.bf16.mxu0 %v10125_v21 }
 0x332   :  { %3151 = vmatpush1.bf16.msra.mxu0 %v10126_v55 }
 0x333   :  { %3152 = vmatprep.subr.bf16.mxu0 %v10127_v9 }
 0x336   :  { %3153 = vmatpush1.bf16.msra.mxu0 %v10128_v2 }
 0x337   :  { %3154 = vmatprep.subr.bf16.mxu0 %v10129_v17 }
 0x33a   :  { %3155 = vmatpush1.bf16.msra.mxu0 %v10130_v29 }
 0x33b   :  { %3156 = vmatprep.subr.bf16.mxu0 %v10131_v24 }
 0x33e   :  { %3157 = vmatpush1.bf16.msra.mxu0 %v10132_v56 }
 0x33f   :  { %3158 = vmatprep.subr.bf16.mxu0 %v10133_v38 }
 0x342   :  { %3159 = vmatpush1.bf16.msra.mxu0 %v10134_v14  ;;  %v1792_v14 = vrot.slane %v1775_v26, %v8516_v0 }
 0x343   :  { %3160 = vmatprep.subr.bf16.mxu0 %v10135_v16  ;;  %v1788_v16 = vrot.slane %v1775_v26, %v8519_v23 }
 0x346   :  { %3161 = vmatpush1.bf16.msra.mxu0 %v10136_v41 }
 0x39c   :  { %v2321_v51 = vpop.f32.mrb[12].mxu0  ;;  %v2362_v63 = vpop.f32.mrb[12].mxu1 }
 0x39d   :  { %v2322_v43 = vadd.f32 %v2321_v51, %v1780_v47  ;;  %v2323_v60 = vpop.f32.mrb[13].mxu0  ;;  %v2364_v54 = vpop.f32.mrb[13].mxu1  ;;  %v2430_v51 = vrot.slane %v6801_v49, 4 }
 0x39e   :  { %v2324_v36 = vadd.f32 %v2323_v60, %v1784_v46  ;;  %v2325_v50 = vpop.f32.mrb[14].mxu0  ;;  %v2366_v6 = vpop.f32.mrb[14].mxu1  ;;  %v2365_v47 = vadd.f32 %v2364_v54, %v1792_v14  ;;  %v2363_v46 = vadd.f32 %v2362_v63, %v1788_v16 }
 0x39f   :  { %v2412_v21 = vadd.f32 %v6801_v49, %v2322_v43  ;;  %v2326_v55 = vpop.f32.mrb[15].mxu0  ;;  %v2367_v9 = vpop.f32.mrb[15].mxu1  ;;  %v6804_v43 = vld [vmem:[%s9947_s1 + $0x1e] sm:$0x3f] }
 0x3a0   :  { %v2422_v17 = vadd.f32 %v2420_v4, %v2324_v36  ;;  %v2440_v4 = vadd.f32 %v6804_v43, %v2365_v47 }
 0x3a1   :  { %v6802_v2 = vmul.f32 -1.442695, %v2412_v21 }
 0x3a2   :  { %v6803_v29 = vmul.f32 -1.442695, %v2422_v17  ;;  %v6805_v6 = vmul.f32 -1.442695, %v2440_v4  ;;  %v2458_v4 = vrot.slane %v6804_v43, 4 }
 0x3a3   :  { %7951 = vpow2.f32 %v6802_v2 }
 0x3a4   :  { %7953 = vpow2.f32 %v6803_v29  ;;  %v1796_v29 = vrot.slane %v1775_v26, %v8531_v39 }
 0x3ad   :  { %v7952_v24 = vpop.eup %7951 }
 0x3ae   :  { %v2416_v56 = vadd.f32 1.0, %v7952_v24  ;;  %v7954_v38 = vpop.eup %7953  ;;  %v1800_v24 = vrot.slane %v1775_v26, %v8534_v53 }
 0x3af   :  { %v2426_v41 = vadd.f32 1.0, %v7954_v38 }
 0x3b0   :  { %7955 = vrcp.f32 %v2416_v56  ;;  %v2448_v56 = vrot.slane %v6804_v43, 2 }
 0x3b1   :  { %7957 = vrcp.f32 %v2426_v41 }
 0x3ba   :  { %v7956_v60 = vpop.eup %7955 }
 0x3bb   :  { %v2429_v36 = vmul.f32 %v7956_v60, %v2363_v46  ;;  %v7958_v21 = vpop.eup %7957 }
 0x3bc   :  { %v2434_v55 = vsub.f32 1.0, %v7958_v21  ;;  %v2436_v54 = vmul.f32 %v7958_v21, %v8789_v59 }
 0x3bd   :  { %v2432_v50 = vadd.f32 %v2430_v51, %v2429_v36 }
 0x3bf   :  { %7959 = vtanh.f32 %v2432_v50 }
 0x3c0   :  { %7961 = vpow2.f32 %v6805_v6 }
 0x3c9   :  { %v7960_v9 = vpop.eup %7959 }
 0x3ca   :  { %v2435_v2 = vmul.f32 %v7960_v9, %v2434_v55  ;;  %v7962_v49 = vpop.eup %7961 }
 0x3cb   :  { %v2444_v17 = vadd.f32 1.0, %v7962_v49 }
 0x3cc   :  { %v8981_v63 = vadd.f32 %v2436_v54, %v2435_v2 }
 0x3cd   :  { %7963 = vrcp.f32 %v2444_v17 }
 0x3ce   :  { %v2479_v43 = vpack.c.bf16 %v8981_v63, %v8981_v63 }
 0x3d7   :  { %v7964_v46 = vpop.eup %7963 }
 0x3dc   :  { %v2403_v38 = vpop.f32.mrb[16].mxu0 }
 0x3dd   :  { %v2404_v14 = vadd.f32 %v2403_v38, %v1796_v29  ;;  %v2405_v16 = vpop.f32.mrb[17].mxu0  ;;  %v9128_v38 = vld [vmem:[#allocation3 + $0x18c] ss:$24 sps:$4 sm:$0xff]  }
 0x3de   :  { %v2406_v41 = vadd.f32 %v2405_v16, %v1800_v24  ;;  %v2407_v47 = vpop.f32.mrb[18].mxu0  ;;  %v9124_v24 = vld [vmem:[#allocation3 + $0x184] ss:$24 sps:$4 sm:$0xff]   ;;  %10151 = vst [vmem:[#allocation20_spill] sm:$0xff] %v9128_v38  ;;  %v9136_v16 = vld [vmem:[#allocation3 + $0x1b4] ss:$24 sps:$4 sm:$0xff]  }
 0x3df   :  { %v2450_v51 = vadd.f32 %v2448_v56, %v2404_v14  ;;  %v2408_v60 = vpop.f32.mrb[19].mxu0  ;;  %v9126_v56 = vld [vmem:[#allocation3 + $0x180] ss:$24 sps:$4 sm:$0xff]   ;;  %v9140_v47 = vld [vmem:[#allocation3 + $0x1bc] ss:$24 sps:$4 sm:$0xff]  }
 0x3e0   :  { %v2457_v36 = vmul.f32 %v7964_v46, %v2406_v41  ;;  %v9131_v14 = vld [vmem:[#allocation3 + $0x188] ss:$24 sps:$4 sm:$0xff]   ;;  %10153 = vst [vmem:[#allocation22_spill] sm:$0xff] %v9140_v47  ;;  %v9143_v46 = vld [vmem:[#allocation3 + $0x1b8] ss:$24 sps:$4 sm:$0xff]  }
 0x3e1   :  { %v6806_v59 = vmul.f32 -1.442695, %v2450_v51  ;;  %10152 = vst [vmem:[#allocation21_spill] sm:$0xff] %v9131_v14  ;;  %v9138_v41 = vld [vmem:[#allocation3 + $0x1b0] ss:$24 sps:$4 sm:$0xff]   ;;  %10154 = vst [vmem:[#allocation23_spill] sm:$0xff] %v9143_v46 }
 0x3e2   :  { %v2460_v21 = vadd.f32 %v2458_v4, %v2457_v36  ;;  %v9148_v51 = vld [vmem:[#allocation3 + $0x1e4] ss:$24 sps:$4 sm:$0xff]   ;;  %v9150_v60 = vld [vmem:[#allocation3 + $0x1e0] ss:$24 sps:$4 sm:$0xff]   ;;  %v9160_v4 = vld [vmem:[#allocation3 + $0x214] ss:$24 sps:$4 sm:$0xff]  }
 0x3e3   :  { %7965 = vpow2.f32 %v6806_v59  ;;  %v9152_v36 = vld [vmem:[#allocation3 + $0x1ec] ss:$24 sps:$4 sm:$0xff]   ;;  %v9155_v59 = vld [vmem:[#allocation3 + $0x1e8] ss:$24 sps:$4 sm:$0xff]  }
 0x3e4   :  { %10155 = vst [vmem:[#allocation24_spill] sm:$0xff] %v9152_v36  ;;  %10156 = vst [vmem:[#allocation25_spill] sm:$0xff] %v9155_v59 }
 0x3ed   :  { %v7966_v50 = vpop.eup %7965 }
 0x3ee   :  { %v2454_v6 = vadd.f32 1.0, %v7966_v50  ;;  %v9162_v50 = vld [vmem:[#allocation3 + $0x210] ss:$24 sps:$4 sm:$0xff]  }
 0x3f0   :  { %7967 = vrcp.f32 %v2454_v6  ;;  %v9164_v6 = vld [vmem:[#allocation3 + $0x21c] ss:$24 sps:$4 sm:$0xff]  }
 0x3f1   :  { %7969 = vtanh.f32 %v2460_v21  ;;  %10157 = vst [vmem:[#allocation26_spill] sm:$0xff] %v9164_v6  ;;  %v9167_v21 = vld [vmem:[#allocation3 + $0x218] ss:$24 sps:$4 sm:$0xff]  }
 0x3f2   :  { %10158 = vst [vmem:[#allocation27_spill] sm:$0xff] %v9167_v21 }
 0x3fa   :  { %v7968_v55 = vpop.eup %7967 }
 0x3fb   :  { %v2462_v26 = vsub.f32 1.0, %v7968_v55  ;;  %v7970_v9 = vpop.eup %7969  ;;  %v2464_v54 = vmul.f32 %v7968_v55, %v8794_v10  ;;  %v9028_v10 = vld [vmem:[#allocation3] ss:$24 sps:$4 sm:$0xff]  }
 0x3fc   :  { %v9171_v55 = vld [vmem:[#allocation3 + $0x240] ss:$24 sps:$4 sm:$0xff]  }
 0x3fd   :  { %v2463_v2 = vmul.f32 %v7970_v9, %v2462_v26  ;;  %v9173_v26 = vld [vmem:[#allocation3 + $0x244] ss:$24 sps:$4 sm:$0xff]   ;;  %v9176_v9 = vld [vmem:[#allocation3 + $0x248] ss:$24 sps:$4 sm:$0xff]  }
 0x3fe   :  { %10159 = vst [vmem:[#allocation29_spill] sm:$0xff] %v9176_v9 }
 0x3ff   :  { %v8986_v49 = vadd.f32 %v2464_v54, %v2463_v2  ;;  %v9178_v2 = vld [vmem:[#allocation3 + $0x24c] ss:$24 sps:$4 sm:$0xff]  }
 0x400   :  { %10160 = vst [vmem:[#allocation28_spill] sm:$0xff] %v9178_v2  ;;  %v9180_v54 = vld [vmem:[#allocation3 + $0x274] ss:$24 sps:$4 sm:$0xff]  }
 0x401   :  { %v2480_v17 = vpack.c.bf16 %v8986_v49, %v8986_v49  ;;  %v2468_v29 = vcombine.low %v8981_v63, %v8986_v49 }
 0x403   :  { %3121 = vmatprep.mubr.bf16.mxu1 %v2480_v17  ;;  %3162 = vmatprep.mubr.bf16.mxu0 %v2480_v17  ;;  %7324 = vst.sshfl [vmem:[%s9950_s4 + $0x8] sm:$0x33 pattern:$0x76325410] %v2468_v29  ;;  %v9187_v29 = vld [vmem:[#allocation3 + $0x270] ss:$24 sps:$4 sm:$0xff]  }
 0x404   :  { %3122 = vmatmul.mubr.bf16.vlgmr.msra.gmra.mrb[16].mxu1 %v2479_v43  ;;  %3163 = vmatmul.mubr.bf16.vlgmr.msra.gmra.mrb[20].mxu0 %v2479_v43 }
 0x405   :  { %3172 = vmatpush1.bf16.msra.mxu1 %v8798_v61  ;;  %3203 = vmatprep.mubr.bf16.mxu1 %v2480_v17  ;;  %v9030_v61 = vld [vmem:[#allocation3 + $0x4] ss:$24 sps:$4 sm:$0xff]  }
 0x406   :  { %3173 = vmatprep.subr.bf16.mxu1 %v8806_v34  ;;  %v9032_v34 = vld [vmem:[#allocation3 + $0x8] ss:$24 sps:$4 sm:$0xff]   ;;  %3891 = vmatprep.subr.bf16.mxu0 %v9030_v61  ;;  %v9183_v17 = vld [vmem:[#allocation3 + $0x27c] ss:$24 sps:$4 sm:$0xff]  }
 0x407   :  { %3892 = vmatpush1.bf16.msra.mxu0 %v9028_v10  ;;  %10161 = vst [vmem:[#allocation30_spill] sm:$0xff] %v9183_v17 }
 0x409   :  { %3174 = vmatpush1.bf16.msra.mxu1 %v8814_v44  ;;  %v9034_v44 = vld [vmem:[#allocation3 + $0xc] ss:$24 sps:$4 sm:$0xff]  }
 0x40a   :  { %3175 = vmatprep.subr.bf16.mxu1 %v8817_v28  ;;  %v9036_v28 = vld [vmem:[#allocation3 + $0x34] ss:$24 sps:$4 sm:$0xff]  }
 0x40b   :  { %3893 = vmatprep.subr.bf16.mxu0 %v9036_v28 }
 0x40d   :  { %3176 = vmatpush1.bf16.msra.mxu1 %v8822_v18  ;;  %v9039_v18 = vld [vmem:[#allocation3 + $0x3c] ss:$24 sps:$4 sm:$0xff]  }
 0x40e   :  { %3177 = vmatprep.subr.bf16.mxu1 %v8825_v8  ;;  %v9043_v8 = vld [vmem:[#allocation3 + $0x30] ss:$24 sps:$4 sm:$0xff]  }
 0x40f   :  { %3894 = vmatpush1.bf16.msra.mxu0 %v9043_v8 }
 0x411   :  { %3178 = vmatpush1.bf16.msra.mxu1 %v8830_v32  ;;  %v9047_v32 = vld [vmem:[#allocation3 + $0x38] ss:$24 sps:$4 sm:$0xff]  }
 0x412   :  { %3179 = vmatprep.subr.bf16.mxu1 %v8833_v48  ;;  %v9049_v48 = vld [vmem:[#allocation3 + $0x64] ss:$24 sps:$4 sm:$0xff]  }
 0x413   :  { %3895 = vmatprep.subr.bf16.mxu0 %v9049_v48 }
 0x415   :  { %3180 = vmatpush1.bf16.msra.mxu1 %v8838_v27  ;;  %v9052_v27 = vld [vmem:[#allocation3 + $0x6c] ss:$24 sps:$4 sm:$0xff]  }
 0x416   :  { %3181 = vmatprep.subr.bf16.mxu1 %v8841_v52  ;;  %10139 = vst [vmem:[#allocation9_spill] sm:$0xff] %v9052_v27  ;;  %v9055_v52 = vld [vmem:[#allocation3 + $0x60] ss:$24 sps:$4 sm:$0xff]  }
 0x417   :  { %3896 = vmatpush1.bf16.msra.mxu0 %v9055_v52 }
 0x419   :  { %3182 = vmatpush1.bf16.msra.mxu1 %v8846_v1  ;;  %v9059_v1 = vld [vmem:[#allocation3 + $0x68] ss:$24 sps:$4 sm:$0xff]  }
 0x41a   :  { %3183 = vmatprep.subr.bf16.mxu1 %v8849_v3  ;;  %10140 = vst [vmem:[#allocation10_spill] sm:$0xff] %v9059_v1  ;;  %v9061_v3 = vld [vmem:[#allocation3 + $0x94] ss:$24 sps:$4 sm:$0xff]  }
 0x41b   :  { %3897 = vmatprep.subr.bf16.mxu0 %v9061_v3 }
 0x41d   :  { %3184 = vmatpush1.bf16.msra.mxu1 %v8854_v5  ;;  %v9064_v5 = vld [vmem:[#allocation3 + $0x9c] ss:$24 sps:$4 sm:$0xff]  }
 0x41e   :  { %3185 = vmatprep.subr.bf16.mxu1 %v8857_v7  ;;  %10141 = vst [vmem:[#allocation11_spill] sm:$0xff] %v9064_v5  ;;  %v9067_v7 = vld [vmem:[#allocation3 + $0x90] ss:$24 sps:$4 sm:$0xff]  }
 0x41f   :  { %3898 = vmatpush1.bf16.msra.mxu0 %v9067_v7 }
 0x421   :  { %3186 = vmatpush1.bf16.msra.mxu1 %v8862_v11  ;;  %v9071_v11 = vld [vmem:[#allocation3 + $0x98] ss:$24 sps:$4 sm:$0xff]  }
 0x422   :  { %3187 = vmatprep.subr.bf16.mxu1 %v8865_v15  ;;  %10142 = vst [vmem:[#allocation12_spill] sm:$0xff] %v9071_v11  ;;  %v9073_v15 = vld [vmem:[#allocation3 + $0xc4] ss:$24 sps:$4 sm:$0xff]  }
 0x423   :  { %3899 = vmatprep.subr.bf16.mxu0 %v9073_v15 }
 0x425   :  { %3188 = vmatpush1.bf16.msra.mxu1 %v8870_v20  ;;  %v9076_v20 = vld [vmem:[#allocation3 + $0xcc] ss:$24 sps:$4 sm:$0xff]  }
 0x426   :  { %3189 = vmatprep.subr.bf16.mxu1 %v8873_v25  ;;  %10143 = vst [vmem:[#allocation13_spill] sm:$0xff] %v9076_v20  ;;  %v9079_v25 = vld [vmem:[#allocation3 + $0xc0] ss:$24 sps:$4 sm:$0xff]  }
 0x427   :  { %3900 = vmatpush1.bf16.msra.mxu0 %v9079_v25 }
 0x429   :  { %3190 = vmatpush1.bf16.msra.mxu1 %v8878_v30  ;;  %v9083_v30 = vld [vmem:[#allocation3 + $0xc8] ss:$24 sps:$4 sm:$0xff]  }
 0x42a   :  { %3191 = vmatprep.subr.bf16.mxu1 %v8881_v31  ;;  %10144 = vst [vmem:[#allocation14_spill] sm:$0xff] %v9083_v30  ;;  %v9085_v31 = vld [vmem:[#allocation3 + $0xf4] ss:$24 sps:$4 sm:$0xff]  }
 0x42b   :  { %3901 = vmatprep.subr.bf16.mxu0 %v9085_v31 }
 0x42d   :  { %3192 = vmatpush1.bf16.msra.mxu1 %v8886_v57  ;;  %v9088_v57 = vld [vmem:[#allocation3 + $0xfc] ss:$24 sps:$4 sm:$0xff]  }
 0x42e   :  { %3193 = vmatprep.subr.bf16.mxu1 %v8889_v58  ;;  %10145 = vst [vmem:[#allocation15_spill] sm:$0xff] %v9088_v57  ;;  %v9091_v58 = vld [vmem:[#allocation3 + $0xf0] ss:$24 sps:$4 sm:$0xff]  }
 0x42f   :  { %3902 = vmatpush1.bf16.msra.mxu0 %v9091_v58 }
 0x431   :  { %3194 = vmatpush1.bf16.msra.mxu1 %v8894_v62  ;;  %v9095_v62 = vld [vmem:[#allocation3 + $0xf8] ss:$24 sps:$4 sm:$0xff]  }
 0x432   :  { %3195 = vmatprep.subr.bf16.mxu1 %v8897_v40  ;;  %10146 = vst [vmem:[#allocation16_spill] sm:$0xff] %v9095_v62  ;;  %v9097_v40 = vld [vmem:[#allocation3 + $0x124] ss:$24 sps:$4 sm:$0xff]  }
 0x433   :  { %3903 = vmatprep.subr.bf16.mxu0 %v9097_v40 }
 0x435   :  { %3196 = vmatpush1.bf16.msra.mxu1 %v8902_v12  ;;  %v9101_v12 = vld [vmem:[#allocation3 + $0x120] ss:$24 sps:$4 sm:$0xff]  }
 0x436   :  { %3197 = vmatprep.subr.bf16.mxu1 %v8905_v13  ;;  %3904 = vmatpush1.bf16.msra.mxu0 %v9101_v12  ;;  %v9106_v13 = vld [vmem:[#allocation3 + $0x12c] ss:$24 sps:$4 sm:$0xff]  }
 0x437   :  { %10147 = vst [vmem:[#allocation6_spill] sm:$0xff] %v9106_v13 }
 0x439   :  { %3198 = vmatpush1.bf16.msra.mxu1 %v8910_v19  ;;  %v9108_v19 = vld [vmem:[#allocation3 + $0x128] ss:$24 sps:$4 sm:$0xff]  }
 0x43a   :  { %3199 = vmatprep.subr.bf16.mxu1 %v8913_v22  ;;  %10148 = vst [vmem:[#allocation17_spill] sm:$0xff] %v9108_v19  ;;  %v9112_v22 = vld [vmem:[#allocation3 + $0x154] ss:$24 sps:$4 sm:$0xff]  }
 0x43b   :  { %3905 = vmatprep.subr.bf16.mxu0 %v9112_v22 }
 0x43d   :  { %3200 = vmatpush1.bf16.msra.mxu1 %v8918_v33  ;;  %v9114_v33 = vld [vmem:[#allocation3 + $0x150] ss:$24 sps:$4 sm:$0xff]  }
 0x43e   :  { %3201 = vmatprep.subr.bf16.mxu1 %v8921_v37  ;;  %v9116_v37 = vld [vmem:[#allocation3 + $0x15c] ss:$24 sps:$4 sm:$0xff]   ;;  %3906 = vmatpush1.bf16.msra.mxu0 %v9114_v33 }
 0x43f   :  { %10149 = vst [vmem:[#allocation18_spill] sm:$0xff] %v9116_v37  ;;  %3907 = vmatprep.subr.bf16.mxu0 %v9124_v24 }
 0x441   :  { %3202 = vmatpush1.bf16.msra.mxu1 %v8926_v45  ;;  %v9119_v45 = vld [vmem:[#allocation3 + $0x158] ss:$24 sps:$4 sm:$0xff]  }
 0x442   :  { %3932 = vmatprep.subr.bf16.mxu1 %v9034_v44  ;;  %10150 = vst [vmem:[#allocation19_spill] sm:$0xff] %v9119_v45  ;;  %3908 = vmatpush1.bf16.msra.mxu0 %v9126_v56 }
 0x443   :  { %3909 = vmatprep.subr.bf16.mxu0 %v9136_v16 }
 0x444   :  { %3204 = vmatmul.mubr.bf16.vlgmr.msra.gmra.mrb[20].mxu1 %v2479_v43  ;;  %v9191_v43 = vld [vmem:[#allocation3 + $0x278] ss:$24 sps:$4 sm:$0xff]  }
 0x445   :  { %3933 = vmatpush1.bf16.msra.mxu1 %v9032_v34  ;;  %10162 = vst [vmem:[#allocation31_spill] sm:$0xff] %v9191_v43 }
 0x446   :  { %3934 = vmatprep.subr.bf16.mxu1 %v9039_v18  ;;  %3910 = vmatpush1.bf16.msra.mxu0 %v9138_v41 }
 0x447   :  { %3911 = vmatprep.subr.bf16.mxu0 %v9148_v51 }
 0x449   :  { %3935 = vmatpush1.bf16.msra.mxu1 %v9047_v32 }
 0x44a   :  { %3936 = vmatprep.subr.bf16.mxu1 %v9052_v27  ;;  %3912 = vmatpush1.bf16.msra.mxu0 %v9150_v60 }
 0x44b   :  { %3913 = vmatprep.subr.bf16.mxu0 %v9160_v4 }
 0x44d   :  { %3937 = vmatpush1.bf16.msra.mxu1 %v9059_v1 }
 0x44e   :  { %3938 = vmatprep.subr.bf16.mxu1 %v9064_v5  ;;  %3914 = vmatpush1.bf16.msra.mxu0 %v9162_v50 }
 0x44f   :  { %3915 = vmatprep.subr.bf16.mxu0 %v9173_v26 }
 0x451   :  { %3939 = vmatpush1.bf16.msra.mxu1 %v9071_v11 }
 0x452   :  { %3940 = vmatprep.subr.bf16.mxu1 %v9076_v20  ;;  %3916 = vmatpush1.bf16.msra.mxu0 %v9171_v55 }
 0x453   :  { %3917 = vmatprep.subr.bf16.mxu0 %v9180_v54 }
 0x455   :  { %3941 = vmatpush1.bf16.msra.mxu1 %v9083_v30 }
 0x456   :  { %3942 = vmatprep.subr.bf16.mxu1 %v9088_v57  ;;  %3918 = vmatpush1.bf16.msra.mxu0 %v9187_v29 }
 0x459   :  { %3943 = vmatpush1.bf16.msra.mxu1 %v9095_v62 }
 0x45a   :  { %3944 = vmatprep.subr.bf16.mxu1 %v9106_v13 }
 0x45d   :  { %3945 = vmatpush1.bf16.msra.mxu1 %v9108_v19 }
 0x45e   :  { %3946 = vmatprep.subr.bf16.mxu1 %v9116_v37 }
 0x461   :  { %3947 = vmatpush1.bf16.msra.mxu1 %v9119_v45 }
 0x462   :  { %3948 = vmatprep.subr.bf16.mxu1 %v9128_v38 }
 0x465   :  { %3949 = vmatpush1.bf16.msra.mxu1 %v9131_v14 }
 0x466   :  { %3950 = vmatprep.subr.bf16.mxu1 %v9140_v47 }
 0x469   :  { %3951 = vmatpush1.bf16.msra.mxu1 %v9143_v46  ;;  %v9215_v46 = vld [vmem:[#allocation3 + $0x2d8] ss:$24 sps:$4 sm:$0xff]  }
 0x46a   :  { %3952 = vmatprep.subr.bf16.mxu1 %v9152_v36  ;;  %v9208_v36 = vld [vmem:[#allocation3 + $0x2dc] ss:$24 sps:$4 sm:$0xff]   ;;  %10166 = vst [vmem:[#allocation35_spill] sm:$0xff] %v9215_v46 }
 0x46b   :  { %10165 = vst [vmem:[#allocation34_spill] sm:$0xff] %v9208_v36 }
 0x46d   :  { %3953 = vmatpush1.bf16.msra.mxu1 %v9155_v59  ;;  %v9199_v59 = vld [vmem:[#allocation3 + $0x2a0] ss:$24 sps:$4 sm:$0xff]  }
 0x46e   :  { %3954 = vmatprep.subr.bf16.mxu1 %v9164_v6  ;;  %v9196_v6 = vld [vmem:[#allocation3 + $0x2ac] ss:$24 sps:$4 sm:$0xff]  }
 0x46f   :  { %10163 = vst [vmem:[#allocation32_spill] sm:$0xff] %v9196_v6 }
 0x471   :  { %3955 = vmatpush1.bf16.msra.mxu1 %v9167_v21  ;;  %v9193_v21 = vld [vmem:[#allocation3 + $0x2a4] ss:$24 sps:$4 sm:$0xff]  }
 0x472   :  { %3956 = vmatprep.subr.bf16.mxu1 %v9178_v2  ;;  %3919 = vmatprep.subr.bf16.mxu0 %v9193_v21  ;;  %v9203_v2 = vld [vmem:[#allocation3 + $0x2a8] ss:$24 sps:$4 sm:$0xff]  }
 0x473   :  { %10164 = vst [vmem:[#allocation33_spill] sm:$0xff] %v9203_v2  ;;  %3920 = vmatpush1.bf16.msra.mxu0 %v9199_v59 }
 0x475   :  { %3957 = vmatpush1.bf16.msra.mxu1 %v9176_v9  ;;  %v9205_v9 = vld [vmem:[#allocation3 + $0x2d4] ss:$24 sps:$4 sm:$0xff]  }
 0x476   :  { %3958 = vmatprep.subr.bf16.mxu1 %v9183_v17  ;;  %v9211_v17 = vld [vmem:[#allocation3 + $0x2d0] ss:$24 sps:$4 sm:$0xff]   ;;  %3921 = vmatprep.subr.bf16.mxu0 %v9205_v9 }
 0x477   :  { %3922 = vmatpush1.bf16.msra.mxu0 %v9211_v17 }
 0x479   :  { %3959 = vmatpush1.bf16.msra.mxu1 %v9191_v43  ;;  %v9220_v43 = vld [vmem:[#allocation3 + $0x14] ss:$24 sps:$4 sm:$0xff]  }
 0x47a   :  { %3960 = vmatprep.subr.bf16.mxu1 %v9196_v6  ;;  %3973 = vmatprep.subr.bf16.mxu0 %v9220_v43 }
 0x47d   :  { %3961 = vmatpush1.bf16.msra.mxu1 %v9203_v2  ;;  %v2577_v2 = vld [vmem:[%s9949_s3] sm:$0x3f] }
 0x47e   :  { %3962 = vmatprep.subr.bf16.mxu1 %v9208_v36  ;;  %v2582_v6 = vrot.slane %v2577_v2, %v10137_v42  ;;  %v2586_v47 = vrot.slane %v2577_v2, %v10138_v35  ;;  %v6904_v36 = vld [vmem:[%s9946_s0 + $0x12] sm:$0x3f] }
 0x47f   :  { %v3222_v19 = vrot.slane %v6904_v36, 2 }
 0x481   :  { %3963 = vmatpush1.bf16.msra.mxu1 %v9215_v46 }
 0x482   :  { %4693 = vmatprep.subr.bf16.mxu1 %v9030_v61 }
 0x4d7   :  { %v3123_v14 = vpop.f32.mrb[16].mxu1  ;;  %v3164_v46 = vpop.f32.mrb[20].mxu0 }
 0x4d8   :  { %v3124_v38 = vadd.f32 %v3123_v14, %v2582_v6  ;;  %v3125_v45 = vpop.f32.mrb[17].mxu1  ;;  %v3166_v37 = vpop.f32.mrb[21].mxu0  ;;  %v2594_v14 = vrot.slane %v2577_v2, %v8516_v0  ;;  %v2590_v6 = vrot.slane %v2577_v2, %v8519_v23 }
 0x4d9   :  { %v3126_v61 = vadd.f32 %v3125_v45, %v2586_v47  ;;  %v3127_v13 = vpop.f32.mrb[18].mxu1  ;;  %v3168_v62 = vpop.f32.mrb[22].mxu0 }
 0x4da   :  { %v3214_v57 = vadd.f32 %v6904_v36, %v3124_v38  ;;  %v3128_v30 = vpop.f32.mrb[19].mxu1  ;;  %v3169_v20 = vpop.f32.mrb[23].mxu0  ;;  %v3167_v47 = vadd.f32 %v3166_v37, %v2594_v14  ;;  %v3165_v13 = vadd.f32 %v3164_v46, %v2590_v6  ;;  %v3232_v62 = vrot.slane %v6904_v36, 4 }
 0x4db   :  { %v3224_v42 = vadd.f32 %v3222_v19, %v3126_v61  ;;  %v6907_v20 = vld [vmem:[%s9947_s1 + $0x18] sm:$0x3f]  ;;  %v2598_v61 = vrot.slane %v2577_v2, %v8531_v39  ;;  %v2602_v14 = vrot.slane %v2577_v2, %v8534_v53 }
 0x4dc   :  { %v6905_v11 = vmul.f32 -1.442695, %v3214_v57  ;;  %v3250_v6 = vrot.slane %v6907_v20, 2 }
 0x4dd   :  { %v6906_v35 = vmul.f32 -1.442695, %v3224_v42  ;;  %v3242_v42 = vadd.f32 %v6907_v20, %v3167_v47 }
 0x4de   :  { %7971 = vpow2.f32 %v6905_v11 }
 0x4df   :  { %7973 = vpow2.f32 %v6906_v35 }
 0x4e8   :  { %v7972_v5 = vpop.eup %7971 }
 0x4e9   :  { %v3218_v1 = vadd.f32 1.0, %v7972_v5  ;;  %v7974_v27 = vpop.eup %7973 }
 0x4ea   :  { %v3228_v45 = vadd.f32 1.0, %v7974_v27 }
 0x4eb   :  { %7975 = vrcp.f32 %v3218_v1  ;;  %v6908_v1 = vmul.f32 -1.442695, %v3242_v42 }
 0x4ec   :  { %7977 = vrcp.f32 %v3228_v45 }
 0x4f5   :  { %v7976_v30 = vpop.eup %7975 }
 0x4f6   :  { %v3231_v11 = vmul.f32 %v7976_v30, %v3165_v13  ;;  %v7978_v5 = vpop.eup %7977 }
 0x4f7   :  { %v3236_v57 = vsub.f32 1.0, %v7978_v5  ;;  %v3238_v27 = vmul.f32 %v7978_v5, %v8981_v63  ;;  %v3260_v5 = vrot.slane %v6907_v20, 4 }
 0x4f8   :  { %v3234_v35 = vadd.f32 %v3232_v62, %v3231_v11 }
 0x4fa   :  { %7979 = vtanh.f32 %v3234_v35 }
 0x4fb   :  { %7981 = vpow2.f32 %v6908_v1 }
 0x504   :  { %v7980_v19 = vpop.eup %7979 }
 0x505   :  { %v3237_v38 = vmul.f32 %v7980_v19, %v3236_v57  ;;  %v7982_v46 = vpop.eup %7981 }
 0x506   :  { %v3246_v36 = vadd.f32 1.0, %v7982_v46 }
 0x507   :  { %v9238_v37 = vadd.f32 %v3238_v27, %v3237_v38 }
 0x508   :  { %7983 = vrcp.f32 %v3246_v36 }
 0x512   :  { %v7984_v11 = vpop.eup %7983 }
 0x517   :  { %v3205_v45 = vpop.f32.mrb[20].mxu1 }
 0x518   :  { %v3206_v47 = vadd.f32 %v3205_v45, %v2598_v61  ;;  %v3207_v13 = vpop.f32.mrb[21].mxu1  ;;  %v9247_v45 = vld [vmem:[#allocation3 + $0x10] ss:$24 sps:$4 sm:$0xff]  }
 0x519   :  { %v3208_v62 = vadd.f32 %v3207_v13, %v2602_v14  ;;  %v3209_v30 = vpop.f32.mrb[22].mxu1  ;;  %v9255_v13 = vld [vmem:[#allocation3 + $0x44] ss:$24 sps:$4 sm:$0xff]  }
 0x51a   :  { %v3252_v42 = vadd.f32 %v3250_v6, %v3206_v47  ;;  %v3210_v35 = vpop.f32.mrb[23].mxu1  ;;  %v9253_v47 = vpack.c.bf16 %v9238_v37, %v9238_v37  ;;  %v9271_v30 = vld [vmem:[#allocation3 + $0x70] ss:$24 sps:$4 sm:$0xff]  }
 0x51b   :  { %v3259_v1 = vmul.f32 %v7984_v11, %v3208_v62  ;;  %v9266_v62 = vld [vmem:[#allocation3 + $0x74] ss:$24 sps:$4 sm:$0xff]   ;;  %v9274_v11 = vld [vmem:[#allocation3 + $0xa4] ss:$24 sps:$4 sm:$0xff]  }
 0x51c   :  { %v6909_v63 = vmul.f32 -1.442695, %v3252_v42  ;;  %v9279_v42 = vld [vmem:[#allocation3 + $0xa0] ss:$24 sps:$4 sm:$0xff]   ;;  %v10179_v35 = vld [vmem:[#allocation20_spill] sm:$0xff] }
 0x51d   :  { %v3262_v38 = vadd.f32 %v3260_v5, %v3259_v1  ;;  %v10180_v1 = vld [vmem:[#allocation21_spill] sm:$0xff]  ;;  %v10182_v5 = vld [vmem:[#allocation23_spill] sm:$0xff] }
 0x51e   :  { %7985 = vpow2.f32 %v6909_v63  ;;  %v10181_v63 = vld [vmem:[#allocation22_spill] sm:$0xff] }
 0x528   :  { %v7986_v57 = vpop.eup %7985 }
 0x529   :  { %v3256_v19 = vadd.f32 1.0, %v7986_v57  ;;  %v10183_v57 = vld [vmem:[#allocation24_spill] sm:$0xff] }
 0x52b   :  { %7987 = vrcp.f32 %v3256_v19  ;;  %v10184_v19 = vld [vmem:[#allocation25_spill] sm:$0xff] }
 0x52c   :  { %7989 = vtanh.f32 %v3262_v38  ;;  %v10185_v38 = vld [vmem:[#allocation26_spill] sm:$0xff] }
 0x535   :  { %v7988_v27 = vpop.eup %7987 }
 0x536   :  { %v3264_v2 = vsub.f32 1.0, %v7988_v27  ;;  %v7990_v46 = vpop.eup %7989  ;;  %v3266_v61 = vmul.f32 %v7988_v27, %v8986_v49  ;;  %v9263_v49 = vld [vmem:[#allocation3 + $0x40] ss:$24 sps:$4 sm:$0xff]   ;;  %v10186_v27 = vld [vmem:[#allocation27_spill] sm:$0xff] }
 0x538   :  { %v3265_v36 = vmul.f32 %v7990_v46, %v3264_v2  ;;  %v10187_v2 = vld [vmem:[#allocation28_spill] sm:$0xff]  ;;  %v10188_v46 = vld [vmem:[#allocation29_spill] sm:$0xff] }
 0x53a   :  { %v9243_v14 = vadd.f32 %v3266_v61, %v3265_v36  ;;  %v10189_v36 = vld [vmem:[#allocation30_spill] sm:$0xff]  ;;  %v10190_v61 = vld [vmem:[#allocation31_spill] sm:$0xff] }
 0x53c   :  { %v3282_v6 = vpack.c.bf16 %v9243_v14, %v9243_v14  ;;  %v3270_v20 = vcombine.low %v9238_v37, %v9243_v14 }
 0x53e   :  { %3923 = vmatprep.mubr.bf16.mxu0 %v3282_v6  ;;  %3964 = vmatprep.mubr.bf16.mxu1 %v3282_v6  ;;  %7325 = vst.sshfl [vmem:[%s9950_s4 + $0xc] sm:$0x33 pattern:$0x76325410] %v3270_v20  ;;  %v10192_v20 = vld [vmem:[#allocation33_spill] sm:$0xff] }
 0x53f   :  { %3924 = vmatmul.mubr.bf16.vlgmr.msra.gmra.mrb[24].mxu0 %v9253_v47  ;;  %3965 = vmatmul.mubr.bf16.vlgmr.msra.gmra.mrb[24].mxu1 %v9253_v47 }
 0x540   :  { %3974 = vmatpush1.bf16.msra.mxu0 %v9247_v45  ;;  %4005 = vmatprep.mubr.bf16.mxu0 %v3282_v6  ;;  %v10191_v6 = vld [vmem:[#allocation32_spill] sm:$0xff] }
 0x541   :  { %3975 = vmatprep.subr.bf16.mxu0 %v9255_v13  ;;  %4694 = vmatpush1.bf16.msra.mxu1 %v9028_v10  ;;  %v9282_v10 = vld [vmem:[#allocation3 + $0xd4] ss:$24 sps:$4 sm:$0xff]  }
 0x542   :  { %4695 = vmatprep.subr.bf16.mxu1 %v9036_v28  ;;  %v9287_v28 = vld [vmem:[#allocation3 + $0xd0] ss:$24 sps:$4 sm:$0xff]  }
 0x544   :  { %3976 = vmatpush1.bf16.msra.mxu0 %v9263_v49 }
 0x545   :  { %3977 = vmatprep.subr.bf16.mxu0 %v9266_v62  ;;  %4696 = vmatpush1.bf16.msra.mxu1 %v9043_v8  ;;  %v9290_v8 = vld [vmem:[#allocation3 + $0x104] ss:$24 sps:$4 sm:$0xff]  }
 0x546   :  { %4697 = vmatprep.subr.bf16.mxu1 %v9049_v48  ;;  %v9295_v48 = vld [vmem:[#allocation3 + $0x100] ss:$24 sps:$4 sm:$0xff]  }
 0x548   :  { %3978 = vmatpush1.bf16.msra.mxu0 %v9271_v30 }
 0x549   :  { %3979 = vmatprep.subr.bf16.mxu0 %v9274_v11  ;;  %4698 = vmatpush1.bf16.msra.mxu1 %v9055_v52  ;;  %v9298_v52 = vld [vmem:[#allocation3 + $0x134] ss:$24 sps:$4 sm:$0xff]  }
 0x54a   :  { %4699 = vmatprep.subr.bf16.mxu1 %v9061_v3  ;;  %v9303_v3 = vld [vmem:[#allocation3 + $0x130] ss:$24 sps:$4 sm:$0xff]  }
 0x54c   :  { %3980 = vmatpush1.bf16.msra.mxu0 %v9279_v42 }
 0x54d   :  { %3981 = vmatprep.subr.bf16.mxu0 %v9282_v10  ;;  %4700 = vmatpush1.bf16.msra.mxu1 %v9067_v7  ;;  %v9306_v7 = vld [vmem:[#allocation3 + $0x164] ss:$24 sps:$4 sm:$0xff]  }
 0x54e   :  { %4701 = vmatprep.subr.bf16.mxu1 %v9073_v15  ;;  %v9311_v15 = vld [vmem:[#allocation3 + $0x160] ss:$24 sps:$4 sm:$0xff]  }
 0x550   :  { %3982 = vmatpush1.bf16.msra.mxu0 %v9287_v28 }
 0x551   :  { %3983 = vmatprep.subr.bf16.mxu0 %v9290_v8  ;;  %4702 = vmatpush1.bf16.msra.mxu1 %v9079_v25  ;;  %v9314_v25 = vld [vmem:[#allocation3 + $0x194] ss:$24 sps:$4 sm:$0xff]  }
 0x552   :  { %4703 = vmatprep.subr.bf16.mxu1 %v9085_v31  ;;  %v9319_v31 = vld [vmem:[#allocation3 + $0x190] ss:$24 sps:$4 sm:$0xff]  }
 0x554   :  { %3984 = vmatpush1.bf16.msra.mxu0 %v9295_v48 }
 0x555   :  { %3985 = vmatprep.subr.bf16.mxu0 %v9298_v52  ;;  %4704 = vmatpush1.bf16.msra.mxu1 %v9091_v58  ;;  %v9322_v58 = vld [vmem:[#allocation3 + $0x1c4] ss:$24 sps:$4 sm:$0xff]  }
 0x556   :  { %4705 = vmatprep.subr.bf16.mxu1 %v9097_v40  ;;  %v9327_v40 = vld [vmem:[#allocation3 + $0x1c0] ss:$24 sps:$4 sm:$0xff]  }
 0x558   :  { %3986 = vmatpush1.bf16.msra.mxu0 %v9303_v3 }
 0x559   :  { %3987 = vmatprep.subr.bf16.mxu0 %v9306_v7  ;;  %4706 = vmatpush1.bf16.msra.mxu1 %v9101_v12  ;;  %v9330_v12 = vld [vmem:[#allocation3 + $0x1f4] ss:$24 sps:$4 sm:$0xff]  }
 0x55a   :  { %4707 = vmatprep.subr.bf16.mxu1 %v9112_v22  ;;  %v9335_v22 = vld [vmem:[#allocation3 + $0x1f0] ss:$24 sps:$4 sm:$0xff]  }
 0x55c   :  { %3988 = vmatpush1.bf16.msra.mxu0 %v9311_v15 }
 0x55d   :  { %3989 = vmatprep.subr.bf16.mxu0 %v9314_v25  ;;  %4708 = vmatpush1.bf16.msra.mxu1 %v9114_v33  ;;  %v9338_v33 = vld [vmem:[#allocation3 + $0x224] ss:$24 sps:$4 sm:$0xff]  }
 0x55e   :  { %4709 = vmatprep.subr.bf16.mxu1 %v9124_v24  ;;  %v9343_v24 = vld [vmem:[#allocation3 + $0x220] ss:$24 sps:$4 sm:$0xff]  }
 0x560   :  { %3990 = vmatpush1.bf16.msra.mxu0 %v9319_v31 }
 0x561   :  { %3991 = vmatprep.subr.bf16.mxu0 %v9322_v58  ;;  %4710 = vmatpush1.bf16.msra.mxu1 %v9126_v56  ;;  %v9346_v56 = vld [vmem:[#allocation3 + $0x254] ss:$24 sps:$4 sm:$0xff]  }
 0x562   :  { %4711 = vmatprep.subr.bf16.mxu1 %v9136_v16  ;;  %v9351_v16 = vld [vmem:[#allocation3 + $0x250] ss:$24 sps:$4 sm:$0xff]  }
 0x564   :  { %3992 = vmatpush1.bf16.msra.mxu0 %v9327_v40 }
 0x565   :  { %3993 = vmatprep.subr.bf16.mxu0 %v9330_v12  ;;  %4712 = vmatpush1.bf16.msra.mxu1 %v9138_v41  ;;  %v9354_v41 = vld [vmem:[#allocation3 + $0x284] ss:$24 sps:$4 sm:$0xff]  }
 0x566   :  { %4713 = vmatprep.subr.bf16.mxu1 %v9148_v51  ;;  %v9359_v51 = vld [vmem:[#allocation3 + $0x280] ss:$24 sps:$4 sm:$0xff]  }
 0x568   :  { %3994 = vmatpush1.bf16.msra.mxu0 %v9335_v22 }
 0x569   :  { %3995 = vmatprep.subr.bf16.mxu0 %v9338_v33  ;;  %4714 = vmatpush1.bf16.msra.mxu1 %v9150_v60  ;;  %v9362_v60 = vld [vmem:[#allocation3 + $0x2b4] ss:$24 sps:$4 sm:$0xff]  }
 0x56a   :  { %4715 = vmatprep.subr.bf16.mxu1 %v9160_v4  ;;  %v9367_v4 = vld [vmem:[#allocation3 + $0x2b0] ss:$24 sps:$4 sm:$0xff]  }
 0x56c   :  { %3996 = vmatpush1.bf16.msra.mxu0 %v9343_v24 }
 0x56d   :  { %3997 = vmatprep.subr.bf16.mxu0 %v9346_v56  ;;  %4716 = vmatpush1.bf16.msra.mxu1 %v9162_v50  ;;  %v9370_v50 = vld [vmem:[#allocation3 + $0x2e4] ss:$24 sps:$4 sm:$0xff]  }
 0x56e   :  { %4717 = vmatprep.subr.bf16.mxu1 %v9173_v26  ;;  %v9375_v26 = vld [vmem:[#allocation3 + $0x2e0] ss:$24 sps:$4 sm:$0xff]  }
 0x570   :  { %3998 = vmatpush1.bf16.msra.mxu0 %v9351_v16 }
 0x571   :  { %3999 = vmatprep.subr.bf16.mxu0 %v9354_v41  ;;  %4718 = vmatpush1.bf16.msra.mxu1 %v9171_v55  ;;  %v10169_v55 = vld [vmem:[#allocation11_spill] sm:$0xff] }
 0x572   :  { %4719 = vmatprep.subr.bf16.mxu1 %v9180_v54  ;;  %v10172_v54 = vld [vmem:[#allocation14_spill] sm:$0xff] }
 0x574   :  { %4000 = vmatpush1.bf16.msra.mxu0 %v9359_v51 }
 0x575   :  { %4001 = vmatprep.subr.bf16.mxu0 %v9362_v60  ;;  %4720 = vmatpush1.bf16.msra.mxu1 %v9187_v29  ;;  %v10174_v29 = vld [vmem:[#allocation16_spill] sm:$0xff] }
 0x576   :  { %4721 = vmatprep.subr.bf16.mxu1 %v9193_v21  ;;  %v10167_v21 = vld [vmem:[#allocation9_spill] sm:$0xff] }
 0x578   :  { %4002 = vmatpush1.bf16.msra.mxu0 %v9367_v4 }
 0x579   :  { %4003 = vmatprep.subr.bf16.mxu0 %v9370_v50  ;;  %4722 = vmatpush1.bf16.msra.mxu1 %v9199_v59  ;;  %v10168_v59 = vld [vmem:[#allocation10_spill] sm:$0xff] }
 0x57a   :  { %4723 = vmatprep.subr.bf16.mxu1 %v9205_v9  ;;  %v10170_v9 = vld [vmem:[#allocation12_spill] sm:$0xff] }
 0x57c   :  { %4004 = vmatpush1.bf16.msra.mxu0 %v9375_v26 }
 0x57d   :  { %4734 = vmatprep.subr.bf16.mxu0 %v9034_v44  ;;  %4724 = vmatpush1.bf16.msra.mxu1 %v9211_v17  ;;  %v10171_v44 = vld [vmem:[#allocation13_spill] sm:$0xff]  ;;  %v10173_v17 = vld [vmem:[#allocation15_spill] sm:$0xff] }
 0x57e   :  { %4775 = vmatprep.subr.bf16.mxu1 %v9220_v43  ;;  %v10178_v43 = vld [vmem:[#allocation19_spill] sm:$0xff] }
 0x57f   :  { %4006 = vmatmul.mubr.bf16.vlgmr.msra.gmra.mrb[28].mxu0 %v9253_v47  ;;  %v10193_v47 = vld [vmem:[#allocation34_spill] sm:$0xff] }
 0x580   :  { %4735 = vmatpush1.bf16.msra.mxu0 %v9032_v34  ;;  %v10175_v34 = vld [vmem:[#allocation6_spill] sm:$0xff] }
 0x581   :  { %4736 = vmatprep.subr.bf16.mxu0 %v9039_v18  ;;  %v10176_v18 = vld [vmem:[#allocation17_spill] sm:$0xff] }
 0x584   :  { %4737 = vmatpush1.bf16.msra.mxu0 %v9047_v32  ;;  %v10177_v32 = vld [vmem:[#allocation18_spill] sm:$0xff] }
 0x585   :  { %4738 = vmatprep.subr.bf16.mxu0 %v10167_v21  ;;  %v10194_v21 = vld [vmem:[#allocation35_spill] sm:$0xff] }
 0x588   :  { %4739 = vmatpush1.bf16.msra.mxu0 %v10168_v59  ;;  %v3379_v59 = vld [vmem:[%s9949_s3] sm:$0x3f] }
 0x589   :  { %4740 = vmatprep.subr.bf16.mxu0 %v10169_v55  ;;  %v10195_v55 = vld [vmem:[#allocation7_spill] sm:$0xff] }
 0x58c   :  { %4741 = vmatpush1.bf16.msra.mxu0 %v10170_v9  ;;  %v3384_v9 = vrot.slane %v3379_v59, %v10195_v55 }
 0x58d   :  { %4742 = vmatprep.subr.bf16.mxu0 %v10171_v44  ;;  %v10196_v44 = vld [vmem:[#allocation8_spill] sm:$0xff] }
 0x590   :  { %4743 = vmatpush1.bf16.msra.mxu0 %v10172_v54  ;;  %v3388_v54 = vrot.slane %v3379_v59, %v10196_v44 }
 0x591   :  { %4744 = vmatprep.subr.bf16.mxu0 %v10173_v17  ;;  %v7007_v17 = vld [vmem:[%s9946_s0 + $0x18] sm:$0x3f] }
 0x594   :  { %4745 = vmatpush1.bf16.msra.mxu0 %v10174_v29 }
 0x595   :  { %4746 = vmatprep.subr.bf16.mxu0 %v10175_v34 }
 0x598   :  { %4747 = vmatpush1.bf16.msra.mxu0 %v10176_v18 }
 0x599   :  { %4748 = vmatprep.subr.bf16.mxu0 %v10177_v32 }
 0x59c   :  { %4749 = vmatpush1.bf16.msra.mxu0 %v10178_v43 }
 0x59d   :  { %4750 = vmatprep.subr.bf16.mxu0 %v10179_v35 }
 0x5a0   :  { %4751 = vmatpush1.bf16.msra.mxu0 %v10180_v1  ;;  %v4024_v1 = vrot.slane %v7007_v17, 2 }
 0x5a1   :  { %4752 = vmatprep.subr.bf16.mxu0 %v10181_v63 }
 0x5a4   :  { %4753 = vmatpush1.bf16.msra.mxu0 %v10182_v5 }
 0x5a5   :  { %4754 = vmatprep.subr.bf16.mxu0 %v10183_v57 }
 0x5a8   :  { %4755 = vmatpush1.bf16.msra.mxu0 %v10184_v19 }
 0x5a9   :  { %4756 = vmatprep.subr.bf16.mxu0 %v10185_v38 }
 0x5ac   :  { %4757 = vmatpush1.bf16.msra.mxu0 %v10186_v27 }
 0x5ad   :  { %4758 = vmatprep.subr.bf16.mxu0 %v10187_v2 }
 0x5b0   :  { %4759 = vmatpush1.bf16.msra.mxu0 %v10188_v46 }
 0x5b1   :  { %4760 = vmatprep.subr.bf16.mxu0 %v10189_v36 }
 0x5b4   :  { %4761 = vmatpush1.bf16.msra.mxu0 %v10190_v61 }
 0x5b5   :  { %4762 = vmatprep.subr.bf16.mxu0 %v10191_v6 }
 0x5b8   :  { %4763 = vmatpush1.bf16.msra.mxu0 %v10192_v20  ;;  %v3396_v20 = vrot.slane %v3379_v59, %v8516_v0 }
 0x5b9   :  { %4764 = vmatprep.subr.bf16.mxu0 %v10193_v47  ;;  %v3392_v47 = vrot.slane %v3379_v59, %v8519_v23 }
 0x5bc   :  { %4765 = vmatpush1.bf16.msra.mxu0 %v10194_v21 }
 0x612   :  { %v3925_v29 = vpop.f32.mrb[24].mxu0  ;;  %v3966_v34 = vpop.f32.mrb[24].mxu1 }
 0x613   :  { %v3926_v18 = vadd.f32 %v3925_v29, %v3384_v9  ;;  %v3927_v32 = vpop.f32.mrb[25].mxu0  ;;  %v3968_v43 = vpop.f32.mrb[25].mxu1  ;;  %v4034_v29 = vrot.slane %v7007_v17, 4 }
 0x614   :  { %v3928_v35 = vadd.f32 %v3927_v32, %v3388_v54  ;;  %v3929_v63 = vpop.f32.mrb[26].mxu0  ;;  %v3970_v5 = vpop.f32.mrb[26].mxu1  ;;  %v3969_v9 = vadd.f32 %v3968_v43, %v3396_v20  ;;  %v3967_v54 = vadd.f32 %v3966_v34, %v3392_v47 }
 0x615   :  { %v4016_v57 = vadd.f32 %v7007_v17, %v3926_v18  ;;  %v3930_v19 = vpop.f32.mrb[27].mxu0  ;;  %v3971_v38 = vpop.f32.mrb[27].mxu1  ;;  %v7010_v18 = vld [vmem:[%s9947_s1 + $0x12] sm:$0x3f] }
 0x616   :  { %v4026_v2 = vadd.f32 %v4024_v1, %v3928_v35  ;;  %v4044_v1 = vadd.f32 %v7010_v18, %v3969_v9 }
 0x617   :  { %v7008_v27 = vmul.f32 -1.442695, %v4016_v57 }
 0x618   :  { %v7009_v46 = vmul.f32 -1.442695, %v4026_v2  ;;  %v7011_v5 = vmul.f32 -1.442695, %v4044_v1  ;;  %v4062_v1 = vrot.slane %v7010_v18, 4 }
 0x619   :  { %7991 = vpow2.f32 %v7008_v27 }
 0x61a   :  { %7993 = vpow2.f32 %v7009_v46  ;;  %v3400_v46 = vrot.slane %v3379_v59, %v8531_v39 }
 0x623   :  { %v7992_v36 = vpop.eup %7991 }
 0x624   :  { %v4020_v61 = vadd.f32 1.0, %v7992_v36  ;;  %v7994_v6 = vpop.eup %7993  ;;  %v3404_v36 = vrot.slane %v3379_v59, %v8534_v53 }
 0x625   :  { %v4030_v21 = vadd.f32 1.0, %v7994_v6 }
 0x626   :  { %7995 = vrcp.f32 %v4020_v61  ;;  %v4052_v61 = vrot.slane %v7010_v18, 2 }
 0x627   :  { %7997 = vrcp.f32 %v4030_v21 }
 0x630   :  { %v7996_v32 = vpop.eup %7995 }
 0x631   :  { %v4033_v35 = vmul.f32 %v7996_v32, %v3967_v54  ;;  %v7998_v57 = vpop.eup %7997 }
 0x632   :  { %v4038_v19 = vsub.f32 1.0, %v7998_v57  ;;  %v4040_v43 = vmul.f32 %v7998_v57, %v9238_v37 }
 0x633   :  { %v4036_v63 = vadd.f32 %v4034_v29, %v4033_v35 }
 0x635   :  { %7999 = vtanh.f32 %v4036_v63 }
 0x636   :  { %8001 = vpow2.f32 %v7011_v5 }
 0x63f   :  { %v8000_v38 = vpop.eup %7999 }
 0x640   :  { %v4039_v27 = vmul.f32 %v8000_v38, %v4038_v19  ;;  %v8002_v17 = vpop.eup %8001 }
 0x641   :  { %v4048_v2 = vadd.f32 1.0, %v8002_v17 }
 0x642   :  { %v9430_v34 = vadd.f32 %v4040_v43, %v4039_v27 }
 0x643   :  { %8003 = vrcp.f32 %v4048_v2 }
 0x644   :  { %v4083_v18 = vpack.c.bf16 %v9430_v34, %v9430_v34 }
 0x64d   :  { %v8004_v54 = vpop.eup %8003 }
 0x652   :  { %v4007_v6 = vpop.f32.mrb[28].mxu0 }
 0x653   :  { %v4008_v20 = vadd.f32 %v4007_v6, %v3400_v46  ;;  %v4009_v47 = vpop.f32.mrb[29].mxu0  ;;  %v9577_v6 = vld [vmem:[#allocation3 + $0x18c] ss:$24 sps:$4 sm:$0xff]  }
 0x654   :  { %v4010_v21 = vadd.f32 %v4009_v47, %v3404_v36  ;;  %v4011_v9 = vpop.f32.mrb[30].mxu0  ;;  %v9573_v36 = vld [vmem:[#allocation3 + $0x184] ss:$24 sps:$4 sm:$0xff]   ;;  %10209 = vst [vmem:[#allocation20_spill] sm:$0xff] %v9577_v6  ;;  %v9585_v47 = vld [vmem:[#allocation3 + $0x1b4] ss:$24 sps:$4 sm:$0xff]  }
 0x655   :  { %v4054_v29 = vadd.f32 %v4052_v61, %v4008_v20  ;;  %v4012_v32 = vpop.f32.mrb[31].mxu0  ;;  %v9575_v61 = vld [vmem:[#allocation3 + $0x180] ss:$24 sps:$4 sm:$0xff]   ;;  %v9589_v9 = vld [vmem:[#allocation3 + $0x1bc] ss:$24 sps:$4 sm:$0xff]  }
 0x656   :  { %v4061_v35 = vmul.f32 %v8004_v54, %v4010_v21  ;;  %v9580_v20 = vld [vmem:[#allocation3 + $0x188] ss:$24 sps:$4 sm:$0xff]   ;;  %10211 = vst [vmem:[#allocation22_spill] sm:$0xff] %v9589_v9  ;;  %v9592_v54 = vld [vmem:[#allocation3 + $0x1b8] ss:$24 sps:$4 sm:$0xff]  }
 0x657   :  { %v7012_v37 = vmul.f32 -1.442695, %v4054_v29  ;;  %10210 = vst [vmem:[#allocation21_spill] sm:$0xff] %v9580_v20  ;;  %v9587_v21 = vld [vmem:[#allocation3 + $0x1b0] ss:$24 sps:$4 sm:$0xff]   ;;  %10212 = vst [vmem:[#allocation23_spill] sm:$0xff] %v9592_v54 }
 0x658   :  { %v4064_v57 = vadd.f32 %v4062_v1, %v4061_v35  ;;  %v9597_v29 = vld [vmem:[#allocation3 + $0x1e4] ss:$24 sps:$4 sm:$0xff]   ;;  %v9599_v32 = vld [vmem:[#allocation3 + $0x1e0] ss:$24 sps:$4 sm:$0xff]   ;;  %v9609_v1 = vld [vmem:[#allocation3 + $0x214] ss:$24 sps:$4 sm:$0xff]  }
 0x659   :  { %8005 = vpow2.f32 %v7012_v37  ;;  %v9601_v35 = vld [vmem:[#allocation3 + $0x1ec] ss:$24 sps:$4 sm:$0xff]   ;;  %v9604_v37 = vld [vmem:[#allocation3 + $0x1e8] ss:$24 sps:$4 sm:$0xff]  }
 0x65a   :  { %10213 = vst [vmem:[#allocation24_spill] sm:$0xff] %v9601_v35  ;;  %10214 = vst [vmem:[#allocation25_spill] sm:$0xff] %v9604_v37 }
 0x663   :  { %v8006_v63 = vpop.eup %8005 }
 0x664   :  { %v4058_v5 = vadd.f32 1.0, %v8006_v63  ;;  %v9611_v63 = vld [vmem:[#allocation3 + $0x210] ss:$24 sps:$4 sm:$0xff]  }
 0x666   :  { %8007 = vrcp.f32 %v4058_v5  ;;  %v9613_v5 = vld [vmem:[#allocation3 + $0x21c] ss:$24 sps:$4 sm:$0xff]  }
 0x667   :  { %8009 = vtanh.f32 %v4064_v57  ;;  %10215 = vst [vmem:[#allocation26_spill] sm:$0xff] %v9613_v5  ;;  %v9616_v57 = vld [vmem:[#allocation3 + $0x218] ss:$24 sps:$4 sm:$0xff]  }
 0x668   :  { %10216 = vst [vmem:[#allocation27_spill] sm:$0xff] %v9616_v57 }
 0x670   :  { %v8008_v19 = vpop.eup %8007 }
 0x671   :  { %v4066_v59 = vsub.f32 1.0, %v8008_v19  ;;  %v8010_v38 = vpop.eup %8009  ;;  %v4068_v43 = vmul.f32 %v8008_v19, %v9243_v14  ;;  %v9477_v14 = vld [vmem:[#allocation3] ss:$24 sps:$4 sm:$0xff]  }
 0x672   :  { %v9620_v19 = vld [vmem:[#allocation3 + $0x240] ss:$24 sps:$4 sm:$0xff]  }
 0x673   :  { %v4067_v27 = vmul.f32 %v8010_v38, %v4066_v59  ;;  %v9622_v59 = vld [vmem:[#allocation3 + $0x244] ss:$24 sps:$4 sm:$0xff]   ;;  %v9625_v38 = vld [vmem:[#allocation3 + $0x248] ss:$24 sps:$4 sm:$0xff]  }
 0x674   :  { %10217 = vst [vmem:[#allocation28_spill] sm:$0xff] %v9625_v38 }
 0x675   :  { %v9435_v17 = vadd.f32 %v4068_v43, %v4067_v27  ;;  %v9627_v27 = vld [vmem:[#allocation3 + $0x24c] ss:$24 sps:$4 sm:$0xff]  }
 0x676   :  { %10218 = vst [vmem:[#allocation29_spill] sm:$0xff] %v9627_v27  ;;  %v9629_v43 = vld [vmem:[#allocation3 + $0x274] ss:$24 sps:$4 sm:$0xff]  }
 0x677   :  { %v4084_v2 = vpack.c.bf16 %v9435_v17, %v9435_v17  ;;  %v4072_v46 = vcombine.low %v9430_v34, %v9435_v17 }
 0x679   :  { %4725 = vmatprep.mubr.bf16.mxu1 %v4084_v2  ;;  %4766 = vmatprep.mubr.bf16.mxu0 %v4084_v2  ;;  %7326 = vst.sshfl [vmem:[%s9950_s4 + $0x10] sm:$0x33 pattern:$0x76325410] %v4072_v46  ;;  %v9636_v46 = vld [vmem:[#allocation3 + $0x270] ss:$24 sps:$4 sm:$0xff]  }
 0x67a   :  { %4726 = vmatmul.mubr.bf16.vlgmr.msra.gmra.mrb[28].mxu1 %v4083_v18  ;;  %4767 = vmatmul.mubr.bf16.vlgmr.msra.gmra.mrb[32].mxu0 %v4083_v18 }
 0x67b   :  { %4776 = vmatpush1.bf16.msra.mxu1 %v9247_v45  ;;  %4807 = vmatprep.mubr.bf16.mxu1 %v4084_v2  ;;  %v9479_v45 = vld [vmem:[#allocation3 + $0x4] ss:$24 sps:$4 sm:$0xff]  }
 0x67c   :  { %4777 = vmatprep.subr.bf16.mxu1 %v9255_v13  ;;  %v9481_v13 = vld [vmem:[#allocation3 + $0x8] ss:$24 sps:$4 sm:$0xff]   ;;  %5495 = vmatprep.subr.bf16.mxu0 %v9479_v45  ;;  %v9632_v2 = vld [vmem:[#allocation3 + $0x27c] ss:$24 sps:$4 sm:$0xff]  }
 0x67d   :  { %5496 = vmatpush1.bf16.msra.mxu0 %v9477_v14  ;;  %10219 = vst [vmem:[#allocation30_spill] sm:$0xff] %v9632_v2 }
 0x67f   :  { %4778 = vmatpush1.bf16.msra.mxu1 %v9263_v49  ;;  %v9483_v49 = vld [vmem:[#allocation3 + $0xc] ss:$24 sps:$4 sm:$0xff]  }
 0x680   :  { %4779 = vmatprep.subr.bf16.mxu1 %v9266_v62  ;;  %v9485_v62 = vld [vmem:[#allocation3 + $0x34] ss:$24 sps:$4 sm:$0xff]  }
 0x681   :  { %5497 = vmatprep.subr.bf16.mxu0 %v9485_v62 }
 0x683   :  { %4780 = vmatpush1.bf16.msra.mxu1 %v9271_v30  ;;  %v9488_v30 = vld [vmem:[#allocation3 + $0x3c] ss:$24 sps:$4 sm:$0xff]  }
 0x684   :  { %4781 = vmatprep.subr.bf16.mxu1 %v9274_v11  ;;  %v9492_v11 = vld [vmem:[#allocation3 + $0x30] ss:$24 sps:$4 sm:$0xff]  }
 0x685   :  { %5498 = vmatpush1.bf16.msra.mxu0 %v9492_v11 }
 0x687   :  { %4782 = vmatpush1.bf16.msra.mxu1 %v9279_v42  ;;  %v9496_v42 = vld [vmem:[#allocation3 + $0x38] ss:$24 sps:$4 sm:$0xff]  }
 0x688   :  { %4783 = vmatprep.subr.bf16.mxu1 %v9282_v10  ;;  %v9498_v10 = vld [vmem:[#allocation3 + $0x64] ss:$24 sps:$4 sm:$0xff]  }
 0x689   :  { %5499 = vmatprep.subr.bf16.mxu0 %v9498_v10 }
 0x68b   :  { %4784 = vmatpush1.bf16.msra.mxu1 %v9287_v28  ;;  %v9501_v28 = vld [vmem:[#allocation3 + $0x6c] ss:$24 sps:$4 sm:$0xff]  }
 0x68c   :  { %4785 = vmatprep.subr.bf16.mxu1 %v9290_v8  ;;  %10197 = vst [vmem:[#allocation9_spill] sm:$0xff] %v9501_v28  ;;  %v9504_v8 = vld [vmem:[#allocation3 + $0x60] ss:$24 sps:$4 sm:$0xff]  }
 0x68d   :  { %5500 = vmatpush1.bf16.msra.mxu0 %v9504_v8 }
 0x68f   :  { %4786 = vmatpush1.bf16.msra.mxu1 %v9295_v48  ;;  %v9508_v48 = vld [vmem:[#allocation3 + $0x68] ss:$24 sps:$4 sm:$0xff]  }
 0x690   :  { %4787 = vmatprep.subr.bf16.mxu1 %v9298_v52  ;;  %10198 = vst [vmem:[#allocation10_spill] sm:$0xff] %v9508_v48  ;;  %v9510_v52 = vld [vmem:[#allocation3 + $0x94] ss:$24 sps:$4 sm:$0xff]  }
 0x691   :  { %5501 = vmatprep.subr.bf16.mxu0 %v9510_v52 }
 0x693   :  { %4788 = vmatpush1.bf16.msra.mxu1 %v9303_v3  ;;  %v9513_v3 = vld [vmem:[#allocation3 + $0x9c] ss:$24 sps:$4 sm:$0xff]  }
 0x694   :  { %4789 = vmatprep.subr.bf16.mxu1 %v9306_v7  ;;  %10199 = vst [vmem:[#allocation11_spill] sm:$0xff] %v9513_v3  ;;  %v9516_v7 = vld [vmem:[#allocation3 + $0x90] ss:$24 sps:$4 sm:$0xff]  }
 0x695   :  { %5502 = vmatpush1.bf16.msra.mxu0 %v9516_v7 }
 0x697   :  { %4790 = vmatpush1.bf16.msra.mxu1 %v9311_v15  ;;  %v9520_v15 = vld [vmem:[#allocation3 + $0x98] ss:$24 sps:$4 sm:$0xff]  }
 0x698   :  { %4791 = vmatprep.subr.bf16.mxu1 %v9314_v25  ;;  %10200 = vst [vmem:[#allocation12_spill] sm:$0xff] %v9520_v15  ;;  %v9522_v25 = vld [vmem:[#allocation3 + $0xc4] ss:$24 sps:$4 sm:$0xff]  }
 0x699   :  { %5503 = vmatprep.subr.bf16.mxu0 %v9522_v25 }
 0x69b   :  { %4792 = vmatpush1.bf16.msra.mxu1 %v9319_v31  ;;  %v9525_v31 = vld [vmem:[#allocation3 + $0xcc] ss:$24 sps:$4 sm:$0xff]  }
 0x69c   :  { %4793 = vmatprep.subr.bf16.mxu1 %v9322_v58  ;;  %10201 = vst [vmem:[#allocation13_spill] sm:$0xff] %v9525_v31  ;;  %v9528_v58 = vld [vmem:[#allocation3 + $0xc0] ss:$24 sps:$4 sm:$0xff]  }
 0x69d   :  { %5504 = vmatpush1.bf16.msra.mxu0 %v9528_v58 }
 0x69f   :  { %4794 = vmatpush1.bf16.msra.mxu1 %v9327_v40  ;;  %v9532_v40 = vld [vmem:[#allocation3 + $0xc8] ss:$24 sps:$4 sm:$0xff]  }
 0x6a0   :  { %4795 = vmatprep.subr.bf16.mxu1 %v9330_v12  ;;  %10202 = vst [vmem:[#allocation14_spill] sm:$0xff] %v9532_v40  ;;  %v9534_v12 = vld [vmem:[#allocation3 + $0xf4] ss:$24 sps:$4 sm:$0xff]  }
 0x6a1   :  { %5505 = vmatprep.subr.bf16.mxu0 %v9534_v12 }
 0x6a3   :  { %4796 = vmatpush1.bf16.msra.mxu1 %v9335_v22  ;;  %v9537_v22 = vld [vmem:[#allocation3 + $0xfc] ss:$24 sps:$4 sm:$0xff]  }
 0x6a4   :  { %4797 = vmatprep.subr.bf16.mxu1 %v9338_v33  ;;  %10203 = vst [vmem:[#allocation15_spill] sm:$0xff] %v9537_v22  ;;  %v9540_v33 = vld [vmem:[#allocation3 + $0xf0] ss:$24 sps:$4 sm:$0xff]  }
 0x6a5   :  { %5506 = vmatpush1.bf16.msra.mxu0 %v9540_v33 }
 0x6a7   :  { %4798 = vmatpush1.bf16.msra.mxu1 %v9343_v24  ;;  %v9544_v24 = vld [vmem:[#allocation3 + $0xf8] ss:$24 sps:$4 sm:$0xff]  }
 0x6a8   :  { %4799 = vmatprep.subr.bf16.mxu1 %v9346_v56  ;;  %10204 = vst [vmem:[#allocation16_spill] sm:$0xff] %v9544_v24  ;;  %v9546_v56 = vld [vmem:[#allocation3 + $0x124] ss:$24 sps:$4 sm:$0xff]  }
 0x6a9   :  { %5507 = vmatprep.subr.bf16.mxu0 %v9546_v56 }
 0x6ab   :  { %4800 = vmatpush1.bf16.msra.mxu1 %v9351_v16  ;;  %v9550_v16 = vld [vmem:[#allocation3 + $0x120] ss:$24 sps:$4 sm:$0xff]  }
 0x6ac   :  { %4801 = vmatprep.subr.bf16.mxu1 %v9354_v41  ;;  %5508 = vmatpush1.bf16.msra.mxu0 %v9550_v16  ;;  %v9555_v41 = vld [vmem:[#allocation3 + $0x12c] ss:$24 sps:$4 sm:$0xff]  }
 0x6ad   :  { %10205 = vst [vmem:[#allocation6_spill] sm:$0xff] %v9555_v41 }
 0x6af   :  { %4802 = vmatpush1.bf16.msra.mxu1 %v9359_v51  ;;  %v9557_v51 = vld [vmem:[#allocation3 + $0x128] ss:$24 sps:$4 sm:$0xff]  }
 0x6b0   :  { %4803 = vmatprep.subr.bf16.mxu1 %v9362_v60  ;;  %10206 = vst [vmem:[#allocation17_spill] sm:$0xff] %v9557_v51  ;;  %v9561_v60 = vld [vmem:[#allocation3 + $0x154] ss:$24 sps:$4 sm:$0xff]  }
 0x6b1   :  { %5509 = vmatprep.subr.bf16.mxu0 %v9561_v60 }
 0x6b3   :  { %4804 = vmatpush1.bf16.msra.mxu1 %v9367_v4  ;;  %v9563_v4 = vld [vmem:[#allocation3 + $0x150] ss:$24 sps:$4 sm:$0xff]  }
 0x6b4   :  { %4805 = vmatprep.subr.bf16.mxu1 %v9370_v50  ;;  %v9565_v50 = vld [vmem:[#allocation3 + $0x15c] ss:$24 sps:$4 sm:$0xff]   ;;  %5510 = vmatpush1.bf16.msra.mxu0 %v9563_v4 }
 0x6b5   :  { %10207 = vst [vmem:[#allocation18_spill] sm:$0xff] %v9565_v50  ;;  %5511 = vmatprep.subr.bf16.mxu0 %v9573_v36 }
 0x6b7   :  { %4806 = vmatpush1.bf16.msra.mxu1 %v9375_v26  ;;  %v9568_v26 = vld [vmem:[#allocation3 + $0x158] ss:$24 sps:$4 sm:$0xff]  }
 0x6b8   :  { %5536 = vmatprep.subr.bf16.mxu1 %v9483_v49  ;;  %10208 = vst [vmem:[#allocation19_spill] sm:$0xff] %v9568_v26  ;;  %5512 = vmatpush1.bf16.msra.mxu0 %v9575_v61 }
 0x6b9   :  { %5513 = vmatprep.subr.bf16.mxu0 %v9585_v47 }
 0x6ba   :  { %4808 = vmatmul.mubr.bf16.vlgmr.msra.gmra.mrb[32].mxu1 %v4083_v18  ;;  %v9640_v18 = vld [vmem:[#allocation3 + $0x278] ss:$24 sps:$4 sm:$0xff]  }
 0x6bb   :  { %5537 = vmatpush1.bf16.msra.mxu1 %v9481_v13  ;;  %10220 = vst [vmem:[#allocation31_spill] sm:$0xff] %v9640_v18 }
 0x6bc   :  { %5538 = vmatprep.subr.bf16.mxu1 %v9488_v30  ;;  %5514 = vmatpush1.bf16.msra.mxu0 %v9587_v21 }
 0x6bd   :  { %5515 = vmatprep.subr.bf16.mxu0 %v9597_v29 }
 0x6bf   :  { %5539 = vmatpush1.bf16.msra.mxu1 %v9496_v42 }
 0x6c0   :  { %5540 = vmatprep.subr.bf16.mxu1 %v9501_v28  ;;  %5516 = vmatpush1.bf16.msra.mxu0 %v9599_v32 }
 0x6c1   :  { %5517 = vmatprep.subr.bf16.mxu0 %v9609_v1 }
 0x6c3   :  { %5541 = vmatpush1.bf16.msra.mxu1 %v9508_v48 }
 0x6c4   :  { %5542 = vmatprep.subr.bf16.mxu1 %v9513_v3  ;;  %5518 = vmatpush1.bf16.msra.mxu0 %v9611_v63 }
 0x6c5   :  { %5519 = vmatprep.subr.bf16.mxu0 %v9622_v59 }
 0x6c7   :  { %5543 = vmatpush1.bf16.msra.mxu1 %v9520_v15 }
 0x6c8   :  { %5544 = vmatprep.subr.bf16.mxu1 %v9525_v31  ;;  %5520 = vmatpush1.bf16.msra.mxu0 %v9620_v19 }
 0x6c9   :  { %5521 = vmatprep.subr.bf16.mxu0 %v9629_v43 }
 0x6cb   :  { %5545 = vmatpush1.bf16.msra.mxu1 %v9532_v40 }
 0x6cc   :  { %5546 = vmatprep.subr.bf16.mxu1 %v9537_v22  ;;  %5522 = vmatpush1.bf16.msra.mxu0 %v9636_v46 }
 0x6cf   :  { %5547 = vmatpush1.bf16.msra.mxu1 %v9544_v24 }
 0x6d0   :  { %5548 = vmatprep.subr.bf16.mxu1 %v9555_v41 }
 0x6d3   :  { %5549 = vmatpush1.bf16.msra.mxu1 %v9557_v51 }
 0x6d4   :  { %5550 = vmatprep.subr.bf16.mxu1 %v9565_v50 }
 0x6d7   :  { %5551 = vmatpush1.bf16.msra.mxu1 %v9568_v26 }
 0x6d8   :  { %5552 = vmatprep.subr.bf16.mxu1 %v9577_v6 }
 0x6db   :  { %5553 = vmatpush1.bf16.msra.mxu1 %v9580_v20 }
 0x6dc   :  { %5554 = vmatprep.subr.bf16.mxu1 %v9589_v9 }
 0x6df   :  { %5555 = vmatpush1.bf16.msra.mxu1 %v9592_v54  ;;  %v9664_v54 = vld [vmem:[#allocation3 + $0x2d8] ss:$24 sps:$4 sm:$0xff]  }
 0x6e0   :  { %5556 = vmatprep.subr.bf16.mxu1 %v9601_v35  ;;  %v9657_v35 = vld [vmem:[#allocation3 + $0x2dc] ss:$24 sps:$4 sm:$0xff]   ;;  %10224 = vst [vmem:[#allocation35_spill] sm:$0xff] %v9664_v54 }
 0x6e1   :  { %10223 = vst [vmem:[#allocation34_spill] sm:$0xff] %v9657_v35 }
 0x6e3   :  { %5557 = vmatpush1.bf16.msra.mxu1 %v9604_v37  ;;  %v9648_v37 = vld [vmem:[#allocation3 + $0x2a0] ss:$24 sps:$4 sm:$0xff]  }
 0x6e4   :  { %5558 = vmatprep.subr.bf16.mxu1 %v9613_v5  ;;  %v9645_v5 = vld [vmem:[#allocation3 + $0x2ac] ss:$24 sps:$4 sm:$0xff]  }
 0x6e5   :  { %10221 = vst [vmem:[#allocation32_spill] sm:$0xff] %v9645_v5 }
 0x6e7   :  { %5559 = vmatpush1.bf16.msra.mxu1 %v9616_v57  ;;  %v9642_v57 = vld [vmem:[#allocation3 + $0x2a4] ss:$24 sps:$4 sm:$0xff]  }
 0x6e8   :  { %5560 = vmatprep.subr.bf16.mxu1 %v9627_v27  ;;  %5523 = vmatprep.subr.bf16.mxu0 %v9642_v57  ;;  %v9652_v27 = vld [vmem:[#allocation3 + $0x2a8] ss:$24 sps:$4 sm:$0xff]  }
 0x6e9   :  { %10222 = vst [vmem:[#allocation33_spill] sm:$0xff] %v9652_v27  ;;  %5524 = vmatpush1.bf16.msra.mxu0 %v9648_v37 }
 0x6eb   :  { %5561 = vmatpush1.bf16.msra.mxu1 %v9625_v38  ;;  %v9654_v38 = vld [vmem:[#allocation3 + $0x2d4] ss:$24 sps:$4 sm:$0xff]  }
 0x6ec   :  { %5562 = vmatprep.subr.bf16.mxu1 %v9632_v2  ;;  %v9660_v2 = vld [vmem:[#allocation3 + $0x2d0] ss:$24 sps:$4 sm:$0xff]   ;;  %5525 = vmatprep.subr.bf16.mxu0 %v9654_v38 }
 0x6ed   :  { %5526 = vmatpush1.bf16.msra.mxu0 %v9660_v2 }
 0x6ef   :  { %5563 = vmatpush1.bf16.msra.mxu1 %v9640_v18  ;;  %v9669_v18 = vld [vmem:[#allocation3 + $0x14] ss:$24 sps:$4 sm:$0xff]  }
 0x6f0   :  { %5564 = vmatprep.subr.bf16.mxu1 %v9645_v5  ;;  %5577 = vmatprep.subr.bf16.mxu0 %v9669_v18 }
 0x6f3   :  { %5565 = vmatpush1.bf16.msra.mxu1 %v9652_v27  ;;  %v4181_v27 = vld [vmem:[%s9949_s3] sm:$0x3f] }
 0x6f4   :  { %5566 = vmatprep.subr.bf16.mxu1 %v9657_v35  ;;  %v4186_v5 = vrot.slane %v4181_v27, %v10195_v55  ;;  %v4190_v9 = vrot.slane %v4181_v27, %v10196_v44  ;;  %v7110_v35 = vld [vmem:[%s9946_s0 + $0x1e] sm:$0x3f] }
 0x6f5   :  { %v4826_v51 = vrot.slane %v7110_v35, 2 }
 0x6f7   :  { %5567 = vmatpush1.bf16.msra.mxu1 %v9664_v54 }
 0x6f8   :  { %6297 = vmatprep.subr.bf16.mxu1 %v9479_v45 }
 0x74d   :  { %v4727_v20 = vpop.f32.mrb[28].mxu1  ;;  %v4768_v54 = vpop.f32.mrb[32].mxu0 }
 0x74e   :  { %v4728_v6 = vadd.f32 %v4727_v20, %v4186_v5  ;;  %v4729_v26 = vpop.f32.mrb[29].mxu1  ;;  %v4770_v50 = vpop.f32.mrb[33].mxu0  ;;  %v4198_v20 = vrot.slane %v4181_v27, %v8516_v0  ;;  %v4194_v5 = vrot.slane %v4181_v27, %v8519_v23 }
 0x74f   :  { %v4730_v45 = vadd.f32 %v4729_v26, %v4190_v9  ;;  %v4731_v41 = vpop.f32.mrb[30].mxu1  ;;  %v4772_v24 = vpop.f32.mrb[34].mxu0 }
 0x750   :  { %v4818_v22 = vadd.f32 %v7110_v35, %v4728_v6  ;;  %v4732_v40 = vpop.f32.mrb[31].mxu1  ;;  %v4773_v31 = vpop.f32.mrb[35].mxu0  ;;  %v4771_v9 = vadd.f32 %v4770_v50, %v4198_v20  ;;  %v4769_v41 = vadd.f32 %v4768_v54, %v4194_v5  ;;  %v4836_v24 = vrot.slane %v7110_v35, 4 }
 0x751   :  { %v4828_v55 = vadd.f32 %v4826_v51, %v4730_v45  ;;  %v7113_v31 = vld [vmem:[%s9947_s1 + $0xc] sm:$0x3f]  ;;  %v4202_v45 = vrot.slane %v4181_v27, %v8531_v39  ;;  %v4206_v20 = vrot.slane %v4181_v27, %v8534_v53 }
 0x752   :  { %v7111_v15 = vmul.f32 -1.442695, %v4818_v22  ;;  %v4854_v5 = vrot.slane %v7113_v31, 2 }
 0x753   :  { %v7112_v44 = vmul.f32 -1.442695, %v4828_v55  ;;  %v4846_v55 = vadd.f32 %v7113_v31, %v4771_v9 }
 0x754   :  { %8011 = vpow2.f32 %v7111_v15 }
 0x755   :  { %8013 = vpow2.f32 %v7112_v44 }
 0x75e   :  { %v8012_v3 = vpop.eup %8011 }
 0x75f   :  { %v4822_v48 = vadd.f32 1.0, %v8012_v3  ;;  %v8014_v28 = vpop.eup %8013 }
 0x760   :  { %v4832_v26 = vadd.f32 1.0, %v8014_v28 }
 0x761   :  { %8015 = vrcp.f32 %v4822_v48  ;;  %v7114_v48 = vmul.f32 -1.442695, %v4846_v55 }
 0x762   :  { %8017 = vrcp.f32 %v4832_v26 }
 0x76b   :  { %v8016_v40 = vpop.eup %8015 }
 0x76c   :  { %v4835_v15 = vmul.f32 %v8016_v40, %v4769_v41  ;;  %v8018_v3 = vpop.eup %8017 }
 0x76d   :  { %v4840_v22 = vsub.f32 1.0, %v8018_v3  ;;  %v4842_v28 = vmul.f32 %v8018_v3, %v9430_v34  ;;  %v4864_v3 = vrot.slane %v7113_v31, 4 }
 0x76e   :  { %v4838_v44 = vadd.f32 %v4836_v24, %v4835_v15 }
 0x770   :  { %8019 = vtanh.f32 %v4838_v44 }
 0x771   :  { %8021 = vpow2.f32 %v7114_v48 }
 0x77a   :  { %v8020_v51 = vpop.eup %8019 }
 0x77b   :  { %v4841_v6 = vmul.f32 %v8020_v51, %v4840_v22  ;;  %v8022_v54 = vpop.eup %8021 }
 0x77c   :  { %v4850_v35 = vadd.f32 1.0, %v8022_v54 }
 0x77d   :  { %v9687_v50 = vadd.f32 %v4842_v28, %v4841_v6 }
 0x77e   :  { %8023 = vrcp.f32 %v4850_v35 }
 0x788   :  { %v8024_v15 = vpop.eup %8023 }
 0x78d   :  { %v4809_v26 = vpop.f32.mrb[32].mxu1 }
 0x78e   :  { %v4810_v9 = vadd.f32 %v4809_v26, %v4202_v45  ;;  %v4811_v41 = vpop.f32.mrb[33].mxu1  ;;  %v9696_v26 = vld [vmem:[#allocation3 + $0x10] ss:$24 sps:$4 sm:$0xff]  }
 0x78f   :  { %v4812_v24 = vadd.f32 %v4811_v41, %v4206_v20  ;;  %v4813_v40 = vpop.f32.mrb[34].mxu1  ;;  %v9704_v41 = vld [vmem:[#allocation3 + $0x44] ss:$24 sps:$4 sm:$0xff]  }
 0x790   :  { %v4856_v55 = vadd.f32 %v4854_v5, %v4810_v9  ;;  %v4814_v44 = vpop.f32.mrb[35].mxu1  ;;  %v9702_v9 = vpack.c.bf16 %v9687_v50, %v9687_v50  ;;  %v9720_v40 = vld [vmem:[#allocation3 + $0x70] ss:$24 sps:$4 sm:$0xff]  }
 0x791   :  { %v4863_v48 = vmul.f32 %v8024_v15, %v4812_v24  ;;  %v9715_v24 = vld [vmem:[#allocation3 + $0x74] ss:$24 sps:$4 sm:$0xff]   ;;  %v9723_v15 = vld [vmem:[#allocation3 + $0xa4] ss:$24 sps:$4 sm:$0xff]  }
 0x792   :  { %v7115_v34 = vmul.f32 -1.442695, %v4856_v55  ;;  %v9728_v55 = vld [vmem:[#allocation3 + $0xa0] ss:$24 sps:$4 sm:$0xff]   ;;  %v10237_v44 = vld [vmem:[#allocation20_spill] sm:$0xff] }
 0x793   :  { %v4866_v6 = vadd.f32 %v4864_v3, %v4863_v48  ;;  %v10238_v48 = vld [vmem:[#allocation21_spill] sm:$0xff]  ;;  %v10240_v3 = vld [vmem:[#allocation23_spill] sm:$0xff] }
 0x794   :  { %8025 = vpow2.f32 %v7115_v34  ;;  %v10239_v34 = vld [vmem:[#allocation22_spill] sm:$0xff] }
 0x79e   :  { %v8026_v22 = vpop.eup %8025 }
 0x79f   :  { %v4860_v51 = vadd.f32 1.0, %v8026_v22  ;;  %v10241_v22 = vld [vmem:[#allocation24_spill] sm:$0xff] }
 0x7a1   :  { %8027 = vrcp.f32 %v4860_v51  ;;  %v10242_v51 = vld [vmem:[#allocation25_spill] sm:$0xff] }
 0x7a2   :  { %8029 = vtanh.f32 %v4866_v6  ;;  %v10243_v6 = vld [vmem:[#allocation26_spill] sm:$0xff] }
 0x7ab   :  { %v8028_v28 = vpop.eup %8027 }
 0x7ac   :  { %v4868_v27 = vsub.f32 1.0, %v8028_v28  ;;  %v8030_v54 = vpop.eup %8029  ;;  %v4870_v45 = vmul.f32 %v8028_v28, %v9435_v17  ;;  %v9712_v17 = vld [vmem:[#allocation3 + $0x40] ss:$24 sps:$4 sm:$0xff]   ;;  %v10244_v28 = vld [vmem:[#allocation27_spill] sm:$0xff] }
 0x7ae   :  { %v4869_v35 = vmul.f32 %v8030_v54, %v4868_v27  ;;  %v10245_v27 = vld [vmem:[#allocation29_spill] sm:$0xff]  ;;  %v10246_v54 = vld [vmem:[#allocation28_spill] sm:$0xff] }
 0x7b0   :  { %v9692_v20 = vadd.f32 %v4870_v45, %v4869_v35  ;;  %v10247_v35 = vld [vmem:[#allocation30_spill] sm:$0xff]  ;;  %v10248_v45 = vld [vmem:[#allocation31_spill] sm:$0xff] }
 0x7b2   :  { %v4886_v5 = vpack.c.bf16 %v9692_v20, %v9692_v20  ;;  %v4874_v31 = vcombine.low %v9687_v50, %v9692_v20 }
 0x7b4   :  { %5527 = vmatprep.mubr.bf16.mxu0 %v4886_v5  ;;  %5568 = vmatprep.mubr.bf16.mxu1 %v4886_v5  ;;  %7327 = vst.sshfl [vmem:[%s9950_s4 + $0x14] sm:$0x33 pattern:$0x76325410] %v4874_v31  ;;  %v10250_v31 = vld [vmem:[#allocation33_spill] sm:$0xff] }
 0x7b5   :  { %5528 = vmatmul.mubr.bf16.vlgmr.msra.gmra.mrb[36].mxu0 %v9702_v9  ;;  %5569 = vmatmul.mubr.bf16.vlgmr.msra.gmra.mrb[36].mxu1 %v9702_v9 }
 0x7b6   :  { %5578 = vmatpush1.bf16.msra.mxu0 %v9696_v26  ;;  %5609 = vmatprep.mubr.bf16.mxu0 %v4886_v5  ;;  %v10249_v5 = vld [vmem:[#allocation32_spill] sm:$0xff] }
 0x7b7   :  { %5579 = vmatprep.subr.bf16.mxu0 %v9704_v41  ;;  %6298 = vmatpush1.bf16.msra.mxu1 %v9477_v14  ;;  %v9731_v14 = vld [vmem:[#allocation3 + $0xd4] ss:$24 sps:$4 sm:$0xff]  }
 0x7b8   :  { %6299 = vmatprep.subr.bf16.mxu1 %v9485_v62  ;;  %v9736_v62 = vld [vmem:[#allocation3 + $0xd0] ss:$24 sps:$4 sm:$0xff]  }
 0x7ba   :  { %5580 = vmatpush1.bf16.msra.mxu0 %v9712_v17 }
 0x7bb   :  { %5581 = vmatprep.subr.bf16.mxu0 %v9715_v24  ;;  %6300 = vmatpush1.bf16.msra.mxu1 %v9492_v11  ;;  %v9739_v11 = vld [vmem:[#allocation3 + $0x104] ss:$24 sps:$4 sm:$0xff]  }
 0x7bc   :  { %6301 = vmatprep.subr.bf16.mxu1 %v9498_v10  ;;  %v9744_v10 = vld [vmem:[#allocation3 + $0x100] ss:$24 sps:$4 sm:$0xff]  }
 0x7be   :  { %5582 = vmatpush1.bf16.msra.mxu0 %v9720_v40 }
 0x7bf   :  { %5583 = vmatprep.subr.bf16.mxu0 %v9723_v15  ;;  %6302 = vmatpush1.bf16.msra.mxu1 %v9504_v8  ;;  %v9747_v8 = vld [vmem:[#allocation3 + $0x134] ss:$24 sps:$4 sm:$0xff]  }
 0x7c0   :  { %6303 = vmatprep.subr.bf16.mxu1 %v9510_v52  ;;  %v9752_v52 = vld [vmem:[#allocation3 + $0x130] ss:$24 sps:$4 sm:$0xff]  }
 0x7c2   :  { %5584 = vmatpush1.bf16.msra.mxu0 %v9728_v55 }
 0x7c3   :  { %5585 = vmatprep.subr.bf16.mxu0 %v9731_v14  ;;  %6304 = vmatpush1.bf16.msra.mxu1 %v9516_v7  ;;  %v9755_v7 = vld [vmem:[#allocation3 + $0x164] ss:$24 sps:$4 sm:$0xff]  }
 0x7c4   :  { %6305 = vmatprep.subr.bf16.mxu1 %v9522_v25  ;;  %v9760_v25 = vld [vmem:[#allocation3 + $0x160] ss:$24 sps:$4 sm:$0xff]  }
 0x7c6   :  { %5586 = vmatpush1.bf16.msra.mxu0 %v9736_v62 }
 0x7c7   :  { %5587 = vmatprep.subr.bf16.mxu0 %v9739_v11  ;;  %6306 = vmatpush1.bf16.msra.mxu1 %v9528_v58  ;;  %v9763_v58 = vld [vmem:[#allocation3 + $0x194] ss:$24 sps:$4 sm:$0xff]  }
 0x7c8   :  { %6307 = vmatprep.subr.bf16.mxu1 %v9534_v12  ;;  %v9768_v12 = vld [vmem:[#allocation3 + $0x190] ss:$24 sps:$4 sm:$0xff]  }
 0x7ca   :  { %5588 = vmatpush1.bf16.msra.mxu0 %v9744_v10 }
 0x7cb   :  { %5589 = vmatprep.subr.bf16.mxu0 %v9747_v8  ;;  %6308 = vmatpush1.bf16.msra.mxu1 %v9540_v33  ;;  %v9771_v33 = vld [vmem:[#allocation3 + $0x1c4] ss:$24 sps:$4 sm:$0xff]  }
 0x7cc   :  { %6309 = vmatprep.subr.bf16.mxu1 %v9546_v56  ;;  %v9776_v56 = vld [vmem:[#allocation3 + $0x1c0] ss:$24 sps:$4 sm:$0xff]  }
 0x7ce   :  { %5590 = vmatpush1.bf16.msra.mxu0 %v9752_v52 }
 0x7cf   :  { %5591 = vmatprep.subr.bf16.mxu0 %v9755_v7  ;;  %6310 = vmatpush1.bf16.msra.mxu1 %v9550_v16  ;;  %v9779_v16 = vld [vmem:[#allocation3 + $0x1f4] ss:$24 sps:$4 sm:$0xff]  }
 0x7d0   :  { %6311 = vmatprep.subr.bf16.mxu1 %v9561_v60  ;;  %v9784_v60 = vld [vmem:[#allocation3 + $0x1f0] ss:$24 sps:$4 sm:$0xff]  }
 0x7d2   :  { %5592 = vmatpush1.bf16.msra.mxu0 %v9760_v25 }
 0x7d3   :  { %5593 = vmatprep.subr.bf16.mxu0 %v9763_v58  ;;  %6312 = vmatpush1.bf16.msra.mxu1 %v9563_v4  ;;  %v9787_v4 = vld [vmem:[#allocation3 + $0x224] ss:$24 sps:$4 sm:$0xff]  }
 0x7d4   :  { %6313 = vmatprep.subr.bf16.mxu1 %v9573_v36  ;;  %v9792_v36 = vld [vmem:[#allocation3 + $0x220] ss:$24 sps:$4 sm:$0xff]  }
 0x7d6   :  { %5594 = vmatpush1.bf16.msra.mxu0 %v9768_v12 }
 0x7d7   :  { %5595 = vmatprep.subr.bf16.mxu0 %v9771_v33  ;;  %6314 = vmatpush1.bf16.msra.mxu1 %v9575_v61  ;;  %v9795_v61 = vld [vmem:[#allocation3 + $0x254] ss:$24 sps:$4 sm:$0xff]  }
 0x7d8   :  { %6315 = vmatprep.subr.bf16.mxu1 %v9585_v47  ;;  %v9800_v47 = vld [vmem:[#allocation3 + $0x250] ss:$24 sps:$4 sm:$0xff]  }
 0x7da   :  { %5596 = vmatpush1.bf16.msra.mxu0 %v9776_v56 }
 0x7db   :  { %5597 = vmatprep.subr.bf16.mxu0 %v9779_v16  ;;  %6316 = vmatpush1.bf16.msra.mxu1 %v9587_v21  ;;  %v9803_v21 = vld [vmem:[#allocation3 + $0x284] ss:$24 sps:$4 sm:$0xff]  }
 0x7dc   :  { %6317 = vmatprep.subr.bf16.mxu1 %v9597_v29  ;;  %v9808_v29 = vld [vmem:[#allocation3 + $0x280] ss:$24 sps:$4 sm:$0xff]  }
 0x7de   :  { %5598 = vmatpush1.bf16.msra.mxu0 %v9784_v60 }
 0x7df   :  { %5599 = vmatprep.subr.bf16.mxu0 %v9787_v4  ;;  %6318 = vmatpush1.bf16.msra.mxu1 %v9599_v32  ;;  %v9811_v32 = vld [vmem:[#allocation3 + $0x2b4] ss:$24 sps:$4 sm:$0xff]  }
 0x7e0   :  { %6319 = vmatprep.subr.bf16.mxu1 %v9609_v1  ;;  %v9816_v1 = vld [vmem:[#allocation3 + $0x2b0] ss:$24 sps:$4 sm:$0xff]  }
 0x7e2   :  { %5600 = vmatpush1.bf16.msra.mxu0 %v9792_v36 }
 0x7e3   :  { %5601 = vmatprep.subr.bf16.mxu0 %v9795_v61  ;;  %6320 = vmatpush1.bf16.msra.mxu1 %v9611_v63  ;;  %v9819_v63 = vld [vmem:[#allocation3 + $0x2e4] ss:$24 sps:$4 sm:$0xff]  }
 0x7e4   :  { %6321 = vmatprep.subr.bf16.mxu1 %v9622_v59  ;;  %v9824_v59 = vld [vmem:[#allocation3 + $0x2e0] ss:$24 sps:$4 sm:$0xff]  }
 0x7e6   :  { %5602 = vmatpush1.bf16.msra.mxu0 %v9800_v47 }
 0x7e7   :  { %5603 = vmatprep.subr.bf16.mxu0 %v9803_v21  ;;  %6322 = vmatpush1.bf16.msra.mxu1 %v9620_v19  ;;  %v10227_v19 = vld [vmem:[#allocation11_spill] sm:$0xff] }
 0x7e8   :  { %6323 = vmatprep.subr.bf16.mxu1 %v9629_v43  ;;  %v10230_v43 = vld [vmem:[#allocation14_spill] sm:$0xff] }
 0x7ea   :  { %5604 = vmatpush1.bf16.msra.mxu0 %v9808_v29 }
 0x7eb   :  { %5605 = vmatprep.subr.bf16.mxu0 %v9811_v32  ;;  %6324 = vmatpush1.bf16.msra.mxu1 %v9636_v46  ;;  %v10232_v46 = vld [vmem:[#allocation16_spill] sm:$0xff] }
 0x7ec   :  { %6325 = vmatprep.subr.bf16.mxu1 %v9642_v57  ;;  %v10225_v57 = vld [vmem:[#allocation9_spill] sm:$0xff] }
 0x7ee   :  { %5606 = vmatpush1.bf16.msra.mxu0 %v9816_v1 }
 0x7ef   :  { %5607 = vmatprep.subr.bf16.mxu0 %v9819_v63  ;;  %6326 = vmatpush1.bf16.msra.mxu1 %v9648_v37  ;;  %v10226_v37 = vld [vmem:[#allocation10_spill] sm:$0xff] }
 0x7f0   :  { %6327 = vmatprep.subr.bf16.mxu1 %v9654_v38  ;;  %v10228_v38 = vld [vmem:[#allocation12_spill] sm:$0xff] }
 0x7f2   :  { %5608 = vmatpush1.bf16.msra.mxu0 %v9824_v59 }
 0x7f3   :  { %6338 = vmatprep.subr.bf16.mxu0 %v9483_v49  ;;  %6328 = vmatpush1.bf16.msra.mxu1 %v9660_v2  ;;  %v10229_v49 = vld [vmem:[#allocation13_spill] sm:$0xff]  ;;  %v10231_v2 = vld [vmem:[#allocation15_spill] sm:$0xff] }
 0x7f4   :  { %6379 = vmatprep.subr.bf16.mxu1 %v9669_v18  ;;  %v10236_v18 = vld [vmem:[#allocation19_spill] sm:$0xff] }
 0x7f5   :  { %5610 = vmatmul.mubr.bf16.vlgmr.msra.gmra.mrb[40].mxu0 %v9702_v9  ;;  %v10251_v9 = vld [vmem:[#allocation34_spill] sm:$0xff] }
 0x7f6   :  { %6339 = vmatpush1.bf16.msra.mxu0 %v9481_v13  ;;  %v10233_v13 = vld [vmem:[#allocation6_spill] sm:$0xff] }
 0x7f7   :  { %6340 = vmatprep.subr.bf16.mxu0 %v9488_v30  ;;  %v10234_v30 = vld [vmem:[#allocation17_spill] sm:$0xff] }
 0x7fa   :  { %6341 = vmatpush1.bf16.msra.mxu0 %v9496_v42  ;;  %v10235_v42 = vld [vmem:[#allocation18_spill] sm:$0xff] }
 0x7fb   :  { %6342 = vmatprep.subr.bf16.mxu0 %v10225_v57  ;;  %v10252_v57 = vld [vmem:[#allocation35_spill] sm:$0xff] }
 0x7fe   :  { %6343 = vmatpush1.bf16.msra.mxu0 %v10226_v37  ;;  %v4983_v37 = vld [vmem:[%s9949_s3] sm:$0x3f] }
 0x7ff   :  { %6344 = vmatprep.subr.bf16.mxu0 %v10227_v19  ;;  %v10253_v19 = vld [vmem:[#allocation7_spill] sm:$0xff] }
 0x802   :  { %6345 = vmatpush1.bf16.msra.mxu0 %v10228_v38  ;;  %v4988_v38 = vrot.slane %v4983_v37, %v10253_v19 }
 0x803   :  { %6346 = vmatprep.subr.bf16.mxu0 %v10229_v49  ;;  %v10254_v49 = vld [vmem:[#allocation8_spill] sm:$0xff] }
 0x806   :  { %6347 = vmatpush1.bf16.msra.mxu0 %v10230_v43  ;;  %v4992_v43 = vrot.slane %v4983_v37, %v10254_v49 }
 0x807   :  { %6348 = vmatprep.subr.bf16.mxu0 %v10231_v2  ;;  %v7213_v2 = vld [vmem:[%s9946_s0 + $0x24] sm:$0x3f] }
 0x80a   :  { %6349 = vmatpush1.bf16.msra.mxu0 %v10232_v46 }
 0x80b   :  { %6350 = vmatprep.subr.bf16.mxu0 %v10233_v13 }
 0x80e   :  { %6351 = vmatpush1.bf16.msra.mxu0 %v10234_v30 }
 0x80f   :  { %6352 = vmatprep.subr.bf16.mxu0 %v10235_v42 }
 0x812   :  { %6353 = vmatpush1.bf16.msra.mxu0 %v10236_v18 }
 0x813   :  { %6354 = vmatprep.subr.bf16.mxu0 %v10237_v44 }
 0x816   :  { %6355 = vmatpush1.bf16.msra.mxu0 %v10238_v48  ;;  %v5628_v48 = vrot.slane %v7213_v2, 2 }
 0x817   :  { %6356 = vmatprep.subr.bf16.mxu0 %v10239_v34 }
 0x81a   :  { %6357 = vmatpush1.bf16.msra.mxu0 %v10240_v3 }
 0x81b   :  { %6358 = vmatprep.subr.bf16.mxu0 %v10241_v22 }
 0x81e   :  { %6359 = vmatpush1.bf16.msra.mxu0 %v10242_v51 }
 0x81f   :  { %6360 = vmatprep.subr.bf16.mxu0 %v10243_v6 }
 0x822   :  { %6361 = vmatpush1.bf16.msra.mxu0 %v10244_v28 }
 0x823   :  { %6362 = vmatprep.subr.bf16.mxu0 %v10245_v27 }
 0x826   :  { %6363 = vmatpush1.bf16.msra.mxu0 %v10246_v54 }
 0x827   :  { %6364 = vmatprep.subr.bf16.mxu0 %v10247_v35 }
 0x82a   :  { %6365 = vmatpush1.bf16.msra.mxu0 %v10248_v45 }
 0x82b   :  { %6366 = vmatprep.subr.bf16.mxu0 %v10249_v5 }
 0x82e   :  { %6367 = vmatpush1.bf16.msra.mxu0 %v10250_v31  ;;  %v5000_v31 = vrot.slane %v4983_v37, %v8516_v0 }
 0x82f   :  { %6368 = vmatprep.subr.bf16.mxu0 %v10251_v9  ;;  %v4996_v9 = vrot.slane %v4983_v37, %v8519_v23 }
 0x832   :  { %6369 = vmatpush1.bf16.msra.mxu0 %v10252_v57 }
 0x888   :  { %v5529_v46 = vpop.f32.mrb[36].mxu0  ;;  %v5570_v13 = vpop.f32.mrb[36].mxu1 }
 0x889   :  { %v5530_v30 = vadd.f32 %v5529_v46, %v4988_v38  ;;  %v5531_v42 = vpop.f32.mrb[37].mxu0  ;;  %v5572_v18 = vpop.f32.mrb[37].mxu1  ;;  %v5638_v46 = vrot.slane %v7213_v2, 4 }
 0x88a   :  { %v5532_v44 = vadd.f32 %v5531_v42, %v4992_v43  ;;  %v5533_v34 = vpop.f32.mrb[38].mxu0  ;;  %v5574_v3 = vpop.f32.mrb[38].mxu1  ;;  %v5573_v38 = vadd.f32 %v5572_v18, %v5000_v31  ;;  %v5571_v43 = vadd.f32 %v5570_v13, %v4996_v9 }
 0x88b   :  { %v5620_v22 = vadd.f32 %v7213_v2, %v5530_v30  ;;  %v5534_v51 = vpop.f32.mrb[39].mxu0  ;;  %v5575_v6 = vpop.f32.mrb[39].mxu1  ;;  %v7216_v30 = vld [vmem:[%s9947_s1 + $0x6] sm:$0x3f] }
 0x88c   :  { %v5630_v27 = vadd.f32 %v5628_v48, %v5532_v44  ;;  %v5648_v48 = vadd.f32 %v7216_v30, %v5573_v38 }
 0x88d   :  { %v7214_v28 = vmul.f32 -1.442695, %v5620_v22 }
 0x88e   :  { %v7215_v54 = vmul.f32 -1.442695, %v5630_v27  ;;  %v7217_v3 = vmul.f32 -1.442695, %v5648_v48  ;;  %v5666_v48 = vrot.slane %v7216_v30, 4 }
 0x88f   :  { %8031 = vpow2.f32 %v7214_v28 }
 0x890   :  { %8033 = vpow2.f32 %v7215_v54  ;;  %v5004_v54 = vrot.slane %v4983_v37, %v8531_v39 }
 0x899   :  { %v8032_v35 = vpop.eup %8031 }
 0x89a   :  { %v5624_v45 = vadd.f32 1.0, %v8032_v35  ;;  %v8034_v5 = vpop.eup %8033  ;;  %v5008_v35 = vrot.slane %v4983_v37, %v8534_v53 }
 0x89b   :  { %v5634_v57 = vadd.f32 1.0, %v8034_v5 }
 0x89c   :  { %8035 = vrcp.f32 %v5624_v45  ;;  %v5656_v45 = vrot.slane %v7216_v30, 2 }
 0x89d   :  { %8037 = vrcp.f32 %v5634_v57 }
 0x8a6   :  { %v8036_v42 = vpop.eup %8035 }
 0x8a7   :  { %v5637_v44 = vmul.f32 %v8036_v42, %v5571_v43  ;;  %v8038_v22 = vpop.eup %8037 }
 0x8a8   :  { %v5642_v51 = vsub.f32 1.0, %v8038_v22  ;;  %v5644_v18 = vmul.f32 %v8038_v22, %v9687_v50 }
 0x8a9   :  { %v5640_v34 = vadd.f32 %v5638_v46, %v5637_v44 }
 0x8ab   :  { %8039 = vtanh.f32 %v5640_v34 }
 0x8ac   :  { %8041 = vpow2.f32 %v7217_v3 }
 0x8b5   :  { %v8040_v6 = vpop.eup %8039 }
 0x8b6   :  { %v5643_v28 = vmul.f32 %v8040_v6, %v5642_v51  ;;  %v8042_v2 = vpop.eup %8041 }
 0x8b7   :  { %v5652_v27 = vadd.f32 1.0, %v8042_v2 }
 0x8b8   :  { %v9879_v13 = vadd.f32 %v5644_v18, %v5643_v28 }
 0x8b9   :  { %8043 = vrcp.f32 %v5652_v27 }
 0x8ba   :  { %v5687_v30 = vpack.c.bf16 %v9879_v13, %v9879_v13 }
 0x8c3   :  { %v8044_v43 = vpop.eup %8043 }
 0x8c8   :  { %v5611_v5 = vpop.f32.mrb[40].mxu0 }
 0x8c9   :  { %v5612_v31 = vadd.f32 %v5611_v5, %v5004_v54  ;;  %v5613_v9 = vpop.f32.mrb[41].mxu0 }
 0x8ca   :  { %v5614_v57 = vadd.f32 %v5613_v9, %v5008_v35  ;;  %v5615_v38 = vpop.f32.mrb[42].mxu0 }
 0x8cb   :  { %v5658_v46 = vadd.f32 %v5656_v45, %v5612_v31  ;;  %v5616_v42 = vpop.f32.mrb[43].mxu0 }
 0x8cc   :  { %v5665_v44 = vmul.f32 %v8044_v43, %v5614_v57 }
 0x8cd   :  { %v7218_v50 = vmul.f32 -1.442695, %v5658_v46 }
 0x8ce   :  { %v5668_v22 = vadd.f32 %v5666_v48, %v5665_v44 }
 0x8cf   :  { %8045 = vpow2.f32 %v7218_v50 }
 0x8d9   :  { %v8046_v34 = vpop.eup %8045 }
 0x8da   :  { %v5662_v3 = vadd.f32 1.0, %v8046_v34 }
 0x8dc   :  { %8047 = vrcp.f32 %v5662_v3 }
 0x8dd   :  { %8049 = vtanh.f32 %v5668_v22 }
 0x8e6   :  { %v8048_v51 = vpop.eup %8047 }
 0x8e7   :  { %v5670_v37 = vsub.f32 1.0, %v8048_v51  ;;  %v8050_v6 = vpop.eup %8049  ;;  %v5672_v18 = vmul.f32 %v8048_v51, %v9692_v20  ;;  %v5785_v20 = vld [vmem:[%s9949_s3] sm:$0x3f] }
 0x8e8   :  { %v5806_v38 = vrot.slane %v5785_v20, %v8531_v39  ;;  %v5810_v43 = vrot.slane %v5785_v20, %v8534_v53 }
 0x8e9   :  { %v5671_v28 = vmul.f32 %v8050_v6, %v5670_v37 }
 0x8eb   :  { %v9884_v2 = vadd.f32 %v5672_v18, %v5671_v28 }
 0x8ed   :  { %v5688_v27 = vpack.c.bf16 %v9884_v2, %v9884_v2  ;;  %v5676_v54 = vcombine.low %v9879_v13, %v9884_v2 }
 0x8ef   :  { %6329 = vmatprep.mubr.bf16.mxu1 %v5688_v27  ;;  %6370 = vmatprep.mubr.bf16.mxu0 %v5688_v27  ;;  %7328 = vst.sshfl [vmem:[%s9950_s4 + $0x18] sm:$0x33 pattern:$0x76325410] %v5676_v54 }
 0x8f0   :  { %6330 = vmatmul.mubr.bf16.vlgmr.msra.gmra.mrb[40].mxu1 %v5687_v30  ;;  %6371 = vmatmul.mubr.bf16.vlgmr.msra.gmra.mrb[44].mxu0 %v5687_v30 }
 0x8f1   :  { %6380 = vmatpush1.bf16.msra.mxu1 %v9696_v26  ;;  %6411 = vmatprep.mubr.bf16.mxu1 %v5688_v27  ;;  %v5790_v26 = vrot.slane %v5785_v20, %v10253_v19 }
 0x8f2   :  { %6381 = vmatprep.subr.bf16.mxu1 %v9704_v41  ;;  %v5794_v41 = vrot.slane %v5785_v20, %v10254_v49 }
 0x8f5   :  { %6382 = vmatpush1.bf16.msra.mxu1 %v9712_v17  ;;  %v7316_v17 = vld [vmem:[%s9946_s0 + $0x2a] sm:$0x3f] }
 0x8f6   :  { %6383 = vmatprep.subr.bf16.mxu1 %v9715_v24 }
 0x8f9   :  { %6384 = vmatpush1.bf16.msra.mxu1 %v9720_v40 }
 0x8fa   :  { %6385 = vmatprep.subr.bf16.mxu1 %v9723_v15 }
 0x8fd   :  { %6386 = vmatpush1.bf16.msra.mxu1 %v9728_v55 }
 0x8fe   :  { %6387 = vmatprep.subr.bf16.mxu1 %v9731_v14 }
 0x901   :  { %6388 = vmatpush1.bf16.msra.mxu1 %v9736_v62 }
 0x902   :  { %6389 = vmatprep.subr.bf16.mxu1 %v9739_v11  ;;  %v6430_v11 = vrot.slane %v7316_v17, 2 }
 0x905   :  { %6390 = vmatpush1.bf16.msra.mxu1 %v9744_v10 }
 0x906   :  { %6391 = vmatprep.subr.bf16.mxu1 %v9747_v8 }
 0x909   :  { %6392 = vmatpush1.bf16.msra.mxu1 %v9752_v52 }
 0x90a   :  { %6393 = vmatprep.subr.bf16.mxu1 %v9755_v7 }
 0x90d   :  { %6394 = vmatpush1.bf16.msra.mxu1 %v9760_v25 }
 0x90e   :  { %6395 = vmatprep.subr.bf16.mxu1 %v9763_v58 }
 0x911   :  { %6396 = vmatpush1.bf16.msra.mxu1 %v9768_v12 }
 0x912   :  { %6397 = vmatprep.subr.bf16.mxu1 %v9771_v33 }
 0x915   :  { %6398 = vmatpush1.bf16.msra.mxu1 %v9776_v56 }
 0x916   :  { %6399 = vmatprep.subr.bf16.mxu1 %v9779_v16 }
 0x919   :  { %6400 = vmatpush1.bf16.msra.mxu1 %v9784_v60 }
 0x91a   :  { %6401 = vmatprep.subr.bf16.mxu1 %v9787_v4  ;;  %v5802_v4 = vrot.slane %v5785_v20, %v8516_v0 }
 0x91d   :  { %6402 = vmatpush1.bf16.msra.mxu1 %v9792_v36  ;;  %v5798_v36 = vrot.slane %v5785_v20, %v8519_v23 }
 0x91e   :  { %6403 = vmatprep.subr.bf16.mxu1 %v9795_v61 }
 0x921   :  { %6404 = vmatpush1.bf16.msra.mxu1 %v9800_v47 }
 0x922   :  { %6405 = vmatprep.subr.bf16.mxu1 %v9803_v21 }
 0x925   :  { %6406 = vmatpush1.bf16.msra.mxu1 %v9808_v29  ;;  %v6440_v29 = vrot.slane %v7316_v17, 4 }
 0x926   :  { %6407 = vmatprep.subr.bf16.mxu1 %v9811_v32  ;;  %v6448_v32 = vld [vmem:[%s9947_s1] sm:$0x3f] }
 0x927   :  { %v6457_v46 = vrot.slane %v6448_v32, 2 }
 0x929   :  { %6408 = vmatpush1.bf16.msra.mxu1 %v9816_v1 }
 0x92a   :  { %6409 = vmatprep.subr.bf16.mxu1 %v9819_v63 }
 0x92d   :  { %6410 = vmatpush1.bf16.msra.mxu1 %v9824_v59 }
 0x930   :  { %6412 = vmatmul.mubr.bf16.vlgmr.msra.gmra.mrb[44].mxu1 %v5687_v30 }
 0x9c3   :  { %v6331_v24 = vpop.f32.mrb[40].mxu1  ;;  %v6372_v40 = vpop.f32.mrb[44].mxu0 }
 0x9c4   :  { %v6332_v15 = vadd.f32 %v6331_v24, %v5790_v26  ;;  %v6333_v55 = vpop.f32.mrb[41].mxu1  ;;  %v6374_v14 = vpop.f32.mrb[45].mxu0  ;;  %v6373_v21 = vadd.f32 %v6372_v40, %v5798_v36 }
 0x9c5   :  { %v6334_v62 = vadd.f32 %v6333_v55, %v5794_v41  ;;  %v6335_v10 = vpop.f32.mrb[42].mxu1  ;;  %v6376_v8 = vpop.f32.mrb[46].mxu0  ;;  %v6375_v47 = vadd.f32 %v6374_v14, %v5802_v4 }
 0x9c6   :  { %v6422_v52 = vadd.f32 %v7316_v17, %v6332_v15  ;;  %v6336_v7 = vpop.f32.mrb[43].mxu1  ;;  %v6377_v25 = vpop.f32.mrb[47].mxu0 }
 0x9c7   :  { %v6432_v12 = vadd.f32 %v6430_v11, %v6334_v62  ;;  %v6449_v59 = vadd.f32 %v6448_v32, %v6375_v47 }
 0x9c8   :  { %v7317_v58 = vmul.f32 -1.442695, %v6422_v52 }
 0x9c9   :  { %v7318_v33 = vmul.f32 -1.442695, %v6432_v12  ;;  %v7319_v49 = vmul.f32 -1.442695, %v6449_v59 }
 0x9ca   :  { %8051 = vpow2.f32 %v7317_v58 }
 0x9cb   :  { %8053 = vpow2.f32 %v7318_v33 }
 0x9d4   :  { %v8052_v56 = vpop.eup %8051 }
 0x9d5   :  { %v6426_v16 = vadd.f32 1.0, %v8052_v56  ;;  %v8054_v60 = vpop.eup %8053 }
 0x9d6   :  { %v6436_v61 = vadd.f32 1.0, %v8054_v60 }
 0x9d7   :  { %8055 = vrcp.f32 %v6426_v16 }
 0x9d8   :  { %8057 = vrcp.f32 %v6436_v61 }
 0x9e1   :  { %v8056_v1 = vpop.eup %8055 }
 0x9e2   :  { %v6439_v63 = vmul.f32 %v8056_v1, %v6373_v21  ;;  %v8058_v35 = vpop.eup %8057 }
 0x9e3   :  { %v6444_v0 = vsub.f32 1.0, %v8058_v35  ;;  %v6446_v5 = vmul.f32 %v8058_v35, %v9879_v13  ;;  %v6467_v13 = vrot.slane %v6448_v32, 4 }
 0x9e4   :  { %v6442_v19 = vadd.f32 %v6440_v29, %v6439_v63 }
 0x9e6   :  { %8059 = vtanh.f32 %v6442_v19 }
 0x9e7   :  { %8061 = vpow2.f32 %v7319_v49 }
 0x9f0   :  { %v8060_v45 = vpop.eup %8059 }
 0x9f1   :  { %v6445_v23 = vmul.f32 %v8060_v45, %v6444_v0  ;;  %v8062_v9 = vpop.eup %8061 }
 0x9f2   :  { %v6453_v57 = vadd.f32 1.0, %v8062_v9 }
 0x9f3   :  { %v6447_v31 = vadd.f32 %v6446_v5, %v6445_v23 }
 0x9f4   :  { %8063 = vrcp.f32 %v6453_v57 }
 0x9fe   :  { %v8064_v3 = vpop.eup %8063 }
 0xa03   :  { %v6413_v42 = vpop.f32.mrb[44].mxu1 }
 0xa04   :  { %v6414_v44 = vadd.f32 %v6413_v42, %v5806_v38  ;;  %v6415_v50 = vpop.f32.mrb[45].mxu1 }
 0xa05   :  { %v6416_v48 = vadd.f32 %v6415_v50, %v5810_v43  ;;  %v6417_v34 = vpop.f32.mrb[46].mxu1 }
 0xa06   :  { %v6459_v22 = vadd.f32 %v6457_v46, %v6414_v44  ;;  %v6418_v51 = vpop.f32.mrb[47].mxu1 }
 0xa07   :  { %v6466_v37 = vmul.f32 %v8064_v3, %v6416_v48 }
 0xa08   :  { %v7320_v6 = vmul.f32 -1.442695, %v6459_v22 }
 0xa09   :  { %v6469_v27 = vadd.f32 %v6467_v13, %v6466_v37 }
 0xa0a   :  { %8065 = vpow2.f32 %v7320_v6 }
 0xa14   :  { %v8066_v28 = vpop.eup %8065 }
 0xa15   :  { %v6463_v18 = vadd.f32 1.0, %v8066_v28 }
 0xa17   :  { %8067 = vrcp.f32 %v6463_v18 }
 0xa18   :  { %8069 = vtanh.f32 %v6469_v27 }
 0xa21   :  { %v8068_v39 = vpop.eup %8067 }
 0xa22   :  { %v6471_v53 = vsub.f32 1.0, %v8068_v39  ;;  %v8070_v54 = vpop.eup %8069  ;;  %v6473_v30 = vmul.f32 %v8068_v39, %v9884_v2 }
 0xa24   :  { %v6472_v20 = vmul.f32 %v8070_v54, %v6471_v53 }
 0xa26   :  { %v6474_v26 = vadd.f32 %v6473_v30, %v6472_v20 }
 0xa28   :  { %v6477_v41 = vcombine.low %v6447_v31, %v6474_v26 }
 0xa2a   :  { %7329 = vst.sshfl [vmem:[%s9950_s4 + $0x1c] sm:$0x33 pattern:$0x76325410] %v6477_v41 }
 0xa2b   :  { %7322 = vst.sshfl [vmem:[#allocation2] sm:$0x33 pattern:$0x76325410] %v6477_v41 }
 0xa2c   :  { %6493 = vsyncpa [#allocation4], 1 }

</bundles_post_ra>
